<compile_context>
chip_gen: v7x
topology: tpu7x:2x2x1
jax: 0.10.0
libtpu: 0.0.40
codegen_flags: <defaults>
</compile_context>

<pallas_src>
import functools

import jax
import jax.numpy as jnp
from jax.experimental import pallas as pl
from jax.experimental.pallas import tpu as pltpu


# ---------------------------------------------------------------------------
# Weight folding: 3x3 conv on a nearest-2x upsampled image == four 2x2 convs
# on the original image.  _FOLD_SETS[a][ry] lists which original kernel rows
# (ky) collapse onto relative source row ry for output-row parity a (same
# for columns with b / rx / kx).
# ---------------------------------------------------------------------------
_FOLD_SETS = (((0,), (1, 2)), ((0, 1), (2,)))


def _fold_weights(w_pt):
    """w_pt: [Cout, Cin, 3, 3] (PyTorch OIHW) -> folded [4, 4*Cin, Cout].

    folded[2*a + b][(2*ry + rx)*Cin : +Cin, :] = K_ab[ry, rx]  (Cin x Cout).
    """
    w = jnp.transpose(w_pt, (2, 3, 1, 0))  # [ky, kx, Cin, Cout]
    folded = []
    for a in range(2):
        for b in range(2):
            taps = []
            for ry in range(2):
                for rx in range(2):
                    k = sum(w[ky, kx]
                            for ky in _FOLD_SETS[a][ry]
                            for kx in _FOLD_SETS[b][rx])
                    taps.append(k)                        # [Cin, Cout]
            folded.append(jnp.concatenate(taps, axis=0))  # [4*Cin, Cout]
    return jnp.stack(folded, axis=0)                      # [4, 4*Cin, Cout]


# ---------------------------------------------------------------------------
# Fused upsample+conv kernel.  Per grid step (n, t) it sees a (TH+2)-row slab
# of the padded NHWC input (TH rows + 2 halo rows) and writes the four output
# parity planes for those TH source rows.
# ---------------------------------------------------------------------------
def _upsample_conv_kernel(xm_ref, xh1_ref, xh2_ref, w_ref, b_ref, o_ref, *,
                          fold):
    th = xm_ref.shape[1]
    wp = xm_ref.shape[2]          # padded width = W + 2
    c = xm_ref.shape[3]
    w_out = wp - 2
    cout = w_ref.shape[2]

    # [TH+2, Wp, C] slab (concat along the leading, untiled dim is a cheap
    # VMEM-local copy; no HBM materialisation).
    s = jnp.concatenate(
        [xm_ref[0], xh1_ref[0], xh2_ref[0]], axis=0).astype(jnp.float32)
    bias = b_ref[...].astype(jnp.float32)                 # [1, Cout]

    if fold:
        # Lane-aligned channels: one wide-K matmul per output parity.
        for a in range(2):            # output row parity
            for b in range(2):        # output col parity
                taps = [
                    s[a + ry:a + ry + th, b + rx:b + rx + w_out, :]
                    .reshape(th * w_out, c)
                    for ry in range(2) for rx in range(2)
                ]
                x4 = jnp.concatenate(taps, axis=-1)       # [TH*W, 4C]
                acc = jnp.dot(x4, w_ref[2 * a + b],
                              preferred_element_type=jnp.float32)
                y = (acc + bias).astype(o_ref.dtype)
                # Dense [TH, W, Cout] store (lanes = Cout, sublanes = W).
                o_ref[0, a, b] = y.reshape(th, w_out, cout)
    else:
        # Unaligned channels: 9 shared shifted views (computed once, reused
        # by all 4 parities) + 4-term accumulate per parity.
        t9 = {}
        for dy in range(3):
            for dx in range(3):
                t9[(dy, dx)] = (
                    s[dy:dy + th, dx:dx + w_out, :].reshape(th * w_out, c))
        for a in range(2):
            for b in range(2):
                wab = w_ref[2 * a + b]                    # [4C, Cout]
                acc = jnp.zeros((th * w_out, cout), jnp.float32)
                for ry in range(2):
                    for rx in range(2):
                        k = 2 * ry + rx
                        acc = acc + jnp.dot(
                            t9[(a + ry, b + rx)], wab[k * c:(k + 1) * c, :],
                            preferred_element_type=jnp.float32)
                y = (acc + bias).astype(o_ref.dtype)
                o_ref[0, a, b] = y.reshape(th, w_out, cout)


def _pick_tile_h(h, wp, w, c, cout, itemsize=4,
                 budget_bytes=12 * 1024 * 1024):
    """Largest divisor of H whose per-step VMEM footprint stays in budget."""
    best = 1
    for th in range(1, h + 1):
        if h % th:
            continue
        in_slab = 2 * th * wp * c * itemsize            # double-buffered input
        halo = 2 * 2 * wp * c * itemsize                # two 1-row halo specs
        out_blk = 2 * 4 * th * w * cout * itemsize      # double-buffered output
        work = (th + 2) * wp * c * itemsize             # concatenated slab
        work += th * w * (4 * c) * itemsize             # widest im2col
        work += th * w * cout * itemsize                # accumulator
        if in_slab + halo + out_blk + work <= budget_bytes:
            best = th
    return best


def upsample_forward(params, x, *, tile_h=None):
    """UpSample forward.  x: [N, C, H, W] (NCHW) -> [N, C, 2H, 2W]."""
    w_pt = params["w"]            # [Cout, Cin, 3, 3]
    bias = params["b"]            # [Cout]
    n, c, h, wdt = x.shape
    cout = w_pt.shape[0]
    assert w_pt.shape == (cout, c, 3, 3)

    wp = wdt + 2
    th = tile_h if tile_h is not None else _pick_tile_h(h, wp, wdt, c, cout)
    assert h % th == 0

    # NCHW -> NHWC (channels on lanes), zero-pad spatially by 1 (fuses into
    # one XLA copy).
    x_nhwc = jnp.transpose(x, (0, 2, 3, 1))
    xp = jnp.pad(x_nhwc, ((0, 0), (1, 1), (1, 1), (0, 0)))  # [N, H+2, W+2, C]

    w_folded = _fold_weights(w_pt).astype(jnp.float32)       # [4, 4C, Cout]
    b2 = bias.reshape(1, cout).astype(jnp.float32)

    fold = (c % 128 == 0)  # fold taps into K only when lane aligned
    kernel = functools.partial(_upsample_conv_kernel, fold=fold)

    # Advisory cost hint: 16 MACs per (Cin, Cout) pair per source pixel.
    flops = int(2 * 16 * c * cout * n * h * wdt)
    bytes_accessed = int(4 * (n * (h + 2) * wp * c        # padded input read
                              + 4 * 4 * c * cout + cout   # weights + bias
                              + n * 4 * h * wdt * cout))  # output write

    grid = (n, h // th)
    out6 = pl.pallas_call(
        kernel,
        out_shape=jax.ShapeDtypeStruct((n, 2, 2, h, wdt, cout), x.dtype),
        grid=grid,
        in_specs=[
            # main TH-row slab of the padded input
            pl.BlockSpec((1, th, wp, c), lambda i, t: (i, t, 0, 0)),
            # 2-row halo below the tile (two 1-row blocks of the SAME array)
            pl.BlockSpec((1, 1, wp, c), lambda i, t: (i, (t + 1) * th, 0, 0)),
            pl.BlockSpec((1, 1, wp, c),
                         lambda i, t: (i, (t + 1) * th + 1, 0, 0)),
            # folded weights / bias: constant index map -> stays resident
            pl.BlockSpec((4, 4 * c, cout), lambda i, t: (0, 0, 0)),
            pl.BlockSpec((1, cout), lambda i, t: (0, 0)),
        ],
        out_specs=pl.BlockSpec((1, 2, 2, th, wdt, cout),
                               lambda i, t: (i, 0, 0, t, 0, 0)),
        compiler_params=pltpu.CompilerParams(
            dimension_semantics=("parallel", "parallel"),
            vmem_limit_bytes=32 * 1024 * 1024),
        cost_estimate=pl.CostEstimate(flops=flops, transcendentals=0,
                                      bytes_accessed=bytes_accessed),
    )(xp, xp, xp, w_folded, b2)

    # [N,2,2,H,W,C] -> [N,C,H,2,W,2] -> [N,C,2H,2W]  (one fused XLA copy)
    out = jnp.transpose(out6, (0, 5, 3, 1, 4, 2))
    return out.reshape(n, cout, 2 * h, 2 * wdt)


# ---------------------------------------------------------------------------
# Pure-JAX reference (nearest 2x upsample + conv) for a correctness check.
# ---------------------------------------------------------------------------
def upsample_ref(params, x):
    u = jnp.repeat(jnp.repeat(x, 2, axis=2), 2, axis=3)
    y = jax.lax.conv_general_dilated(
        u, params["w"], window_strides=(1, 1), padding=((1, 1), (1, 1)),
        dimension_numbers=("NCHW", "OIHW", "NCHW"))
    return y + params["b"][None, :, None, None]


if __name__ == "__main__":
    key = jax.random.PRNGKey(0)
    k1, k2, k3 = jax.random.split(key, 3)

    # Autoencoder-style channel count (lane aligned -> folded wide-K path);
    # spatial kept small.
    N, C, H, W = 2, 128, 16, 16
    x = jax.random.normal(k1, (N, C, H, W), jnp.float32)
    params = {
        "w": 0.05 * jax.random.normal(k2, (C, C, 3, 3), jnp.float32),
        "b": 0.01 * jax.random.normal(k3, (C,), jnp.float32),
    }

    out = jax.block_until_ready(jax.jit(upsample_forward)(params, x))
    ref = jax.block_until_ready(jax.jit(upsample_ref)(params, x))

    assert out.shape == (N, C, 2 * H, 2 * W), out.shape
    assert bool(jnp.all(jnp.isfinite(out)))
    assert bool(jnp.allclose(out, ref, rtol=1e-3, atol=1e-3)), float(
        jnp.max(jnp.abs(out - ref)))

    # Second config with forced smaller row tiles: exercises the multi-tile
    # grid and the halo index maps at t > 0.
    out2 = jax.block_until_ready(
        jax.jit(functools.partial(upsample_forward, tile_h=8))(params, x))
    assert bool(jnp.allclose(out2, ref, rtol=1e-3, atol=1e-3)), float(
        jnp.max(jnp.abs(out2 - ref)))

    print("KERNEL_OK")
</pallas_src>

<mosaic_0001>
module attributes {stable_mosaic.version = 11 : i64} {
  func.func @_upsample_conv_kernel(%arg0: i32, %arg1: i32, %arg2: memref<1x16x18x128xf32, #tpu.memory_space<vmem>>, %arg3: memref<1x1x18x128xf32, #tpu.memory_space<vmem>>, %arg4: memref<1x1x18x128xf32, #tpu.memory_space<vmem>>, %arg5: memref<4x512x128xf32, #tpu.memory_space<vmem>>, %arg6: memref<1x128xf32, #tpu.memory_space<vmem>>, %arg7: memref<1x2x2x16x16x128xf32, #tpu.memory_space<vmem>>) attributes {dimension_semantics = [#tpu.dimension_semantics<parallel>, #tpu.dimension_semantics<parallel>], iteration_bounds = array<i64: 2, 1>, scalar_prefetch = 0 : i64, scratch_operands = 0 : i64, tpu.core_type = #tpu.core_type<tc>, window_params = [{transform_indices = @transform_0, window_bounds = array<i64: 1, 16, 18, 128>}, {transform_indices = @transform_1, window_bounds = array<i64: 1, 1, 18, 128>}, {transform_indices = @transform_2, window_bounds = array<i64: 1, 1, 18, 128>}, {pipeline_mode = #tpu.pipeline_mode<synchronous>, transform_indices = @transform_3, window_bounds = array<i64: 4, 512, 128>}, {pipeline_mode = #tpu.pipeline_mode<synchronous>, transform_indices = @transform_4, window_bounds = array<i64: 1, 128>}, {transform_indices = @transform_5, window_bounds = array<i64: 1, 2, 2, 16, 16, 128>}]} {
    %c0 = arith.constant 0 : index
    %c0_0 = arith.constant 0 : index
    %c0_1 = arith.constant 0 : index
    %c0_2 = arith.constant 0 : index
    %0 = vector.load %arg2[%c0, %c0_0, %c0_1, %c0_2] : memref<1x16x18x128xf32, #tpu.memory_space<vmem>>, vector<1x16x18x128xf32>
    %1 = vector.shape_cast %0 : vector<1x16x18x128xf32> to vector<16x18x128xf32>
    %c0_3 = arith.constant 0 : index
    %c0_4 = arith.constant 0 : index
    %c0_5 = arith.constant 0 : index
    %c0_6 = arith.constant 0 : index
    %2 = vector.load %arg3[%c0_3, %c0_4, %c0_5, %c0_6] : memref<1x1x18x128xf32, #tpu.memory_space<vmem>>, vector<1x1x18x128xf32>
    %3 = vector.shape_cast %2 : vector<1x1x18x128xf32> to vector<1x18x128xf32>
    %c0_7 = arith.constant 0 : index
    %c0_8 = arith.constant 0 : index
    %c0_9 = arith.constant 0 : index
    %c0_10 = arith.constant 0 : index
    %4 = vector.load %arg4[%c0_7, %c0_8, %c0_9, %c0_10] : memref<1x1x18x128xf32, #tpu.memory_space<vmem>>, vector<1x1x18x128xf32>
    %5 = vector.shape_cast %4 : vector<1x1x18x128xf32> to vector<1x18x128xf32>
    %6 = tpu.concatenate %1, %3, %5 in 0 : vector<16x18x128xf32>, vector<1x18x128xf32>, vector<1x18x128xf32> -> vector<18x18x128xf32>
    %c0_11 = arith.constant 0 : index
    %c0_12 = arith.constant 0 : index
    %7 = vector.load %arg6[%c0_11, %c0_12] : memref<1x128xf32, #tpu.memory_space<vmem>>, vector<1x128xf32>
    %8 = vector.extract_strided_slice %6 {offsets = [0, 0, 0], sizes = [16, 16, 128], strides = [1, 1, 1]} : vector<18x18x128xf32> to vector<16x16x128xf32>
    %9 = vector.shape_cast %8 : vector<16x16x128xf32> to vector<256x128xf32>
    %10 = vector.extract_strided_slice %6 {offsets = [0, 1, 0], sizes = [16, 16, 128], strides = [1, 1, 1]} : vector<18x18x128xf32> to vector<16x16x128xf32>
    %11 = vector.shape_cast %10 : vector<16x16x128xf32> to vector<256x128xf32>
    %12 = vector.extract_strided_slice %6 {offsets = [1, 0, 0], sizes = [16, 16, 128], strides = [1, 1, 1]} : vector<18x18x128xf32> to vector<16x16x128xf32>
    %13 = vector.shape_cast %12 : vector<16x16x128xf32> to vector<256x128xf32>
    %14 = vector.extract_strided_slice %6 {offsets = [1, 1, 0], sizes = [16, 16, 128], strides = [1, 1, 1]} : vector<18x18x128xf32> to vector<16x16x128xf32>
    %15 = vector.shape_cast %14 : vector<16x16x128xf32> to vector<256x128xf32>
    %16 = tpu.concatenate %9, %11, %13, %15 in 1 : vector<256x128xf32>, vector<256x128xf32>, vector<256x128xf32>, vector<256x128xf32> -> vector<256x512xf32>
    %c0_13 = arith.constant 0 : index
    %c0_14 = arith.constant 0 : index
    %c0_15 = arith.constant 0 : index
    %17 = vector.load %arg5[%c0_13, %c0_14, %c0_15] : memref<4x512x128xf32, #tpu.memory_space<vmem>>, vector<1x512x128xf32>
    %18 = vector.shape_cast %17 : vector<1x512x128xf32> to vector<512x128xf32>
    %cst = arith.constant dense<0.000000e+00> : vector<256x128xf32>
    %19 = tpu.matmul %16, %18, %cst {dimension_numbers = #tpu.dot_dimension_numbers<[1], [0], [0], [1], [0, 0, 1, 1], [], []>} : vector<256x512xf32>, vector<512x128xf32>, vector<256x128xf32> -> vector<256x128xf32>
    %20 = vector.broadcast %7 : vector<1x128xf32> to vector<256x128xf32>
    %21 = arith.addf %19, %20 : vector<256x128xf32>
    %22 = vector.shape_cast %21 : vector<256x128xf32> to vector<16x16x128xf32>
    %c0_16 = arith.constant 0 : index
    %c0_17 = arith.constant 0 : index
    %c0_18 = arith.constant 0 : index
    %c0_19 = arith.constant 0 : index
    %c0_20 = arith.constant 0 : index
    %c0_21 = arith.constant 0 : index
    %23 = vector.load %arg7[%c0_16, %c0_17, %c0_18, %c0_19, %c0_20, %c0_21] : memref<1x2x2x16x16x128xf32, #tpu.memory_space<vmem>>, vector<1x1x1x16x16x128xf32>
    %24 = vector.shape_cast %23 : vector<1x1x1x16x16x128xf32> to vector<16x16x128xf32>
    %25 = vector.shape_cast %22 : vector<16x16x128xf32> to vector<1x1x1x16x16x128xf32>
    tpu.vector_store %arg7[%c0_16, %c0_17, %c0_18, %c0_19, %c0_20, %c0_21], %25 {strides = array<i32>} : memref<1x2x2x16x16x128xf32, #tpu.memory_space<vmem>>, vector<1x1x1x16x16x128xf32>,
    %26 = vector.extract_strided_slice %6 {offsets = [0, 1, 0], sizes = [16, 16, 128], strides = [1, 1, 1]} : vector<18x18x128xf32> to vector<16x16x128xf32>
    %27 = vector.shape_cast %26 : vector<16x16x128xf32> to vector<256x128xf32>
    %28 = vector.extract_strided_slice %6 {offsets = [0, 2, 0], sizes = [16, 16, 128], strides = [1, 1, 1]} : vector<18x18x128xf32> to vector<16x16x128xf32>
    %29 = vector.shape_cast %28 : vector<16x16x128xf32> to vector<256x128xf32>
    %30 = vector.extract_strided_slice %6 {offsets = [1, 1, 0], sizes = [16, 16, 128], strides = [1, 1, 1]} : vector<18x18x128xf32> to vector<16x16x128xf32>
    %31 = vector.shape_cast %30 : vector<16x16x128xf32> to vector<256x128xf32>
    %32 = vector.extract_strided_slice %6 {offsets = [1, 2, 0], sizes = [16, 16, 128], strides = [1, 1, 1]} : vector<18x18x128xf32> to vector<16x16x128xf32>
    %33 = vector.shape_cast %32 : vector<16x16x128xf32> to vector<256x128xf32>
    %34 = tpu.concatenate %27, %29, %31, %33 in 1 : vector<256x128xf32>, vector<256x128xf32>, vector<256x128xf32>, vector<256x128xf32> -> vector<256x512xf32>
    %c1 = arith.constant 1 : index
    %c0_22 = arith.constant 0 : index
    %c0_23 = arith.constant 0 : index
    %35 = vector.load %arg5[%c1, %c0_22, %c0_23] : memref<4x512x128xf32, #tpu.memory_space<vmem>>, vector<1x512x128xf32>
    %36 = vector.shape_cast %35 : vector<1x512x128xf32> to vector<512x128xf32>
    %cst_24 = arith.constant dense<0.000000e+00> : vector<256x128xf32>
    %37 = tpu.matmul %34, %36, %cst_24 {dimension_numbers = #tpu.dot_dimension_numbers<[1], [0], [0], [1], [0, 0, 1, 1], [], []>} : vector<256x512xf32>, vector<512x128xf32>, vector<256x128xf32> -> vector<256x128xf32>
    %38 = vector.broadcast %7 : vector<1x128xf32> to vector<256x128xf32>
    %39 = arith.addf %37, %38 : vector<256x128xf32>
    %40 = vector.shape_cast %39 : vector<256x128xf32> to vector<16x16x128xf32>
    %c0_25 = arith.constant 0 : index
    %c0_26 = arith.constant 0 : index
    %c1_27 = arith.constant 1 : index
    %c0_28 = arith.constant 0 : index
    %c0_29 = arith.constant 0 : index
    %c0_30 = arith.constant 0 : index
    %41 = vector.load %arg7[%c0_25, %c0_26, %c1_27, %c0_28, %c0_29, %c0_30] : memref<1x2x2x16x16x128xf32, #tpu.memory_space<vmem>>, vector<1x1x1x16x16x128xf32>
    %42 = vector.shape_cast %41 : vector<1x1x1x16x16x128xf32> to vector<16x16x128xf32>
    %43 = vector.shape_cast %40 : vector<16x16x128xf32> to vector<1x1x1x16x16x128xf32>
    tpu.vector_store %arg7[%c0_25, %c0_26, %c1_27, %c0_28, %c0_29, %c0_30], %43 {strides = array<i32>} : memref<1x2x2x16x16x128xf32, #tpu.memory_space<vmem>>, vector<1x1x1x16x16x128xf32>,
    %44 = vector.extract_strided_slice %6 {offsets = [1, 0, 0], sizes = [16, 16, 128], strides = [1, 1, 1]} : vector<18x18x128xf32> to vector<16x16x128xf32>
    %45 = vector.shape_cast %44 : vector<16x16x128xf32> to vector<256x128xf32>
    %46 = vector.extract_strided_slice %6 {offsets = [1, 1, 0], sizes = [16, 16, 128], strides = [1, 1, 1]} : vector<18x18x128xf32> to vector<16x16x128xf32>
    %47 = vector.shape_cast %46 : vector<16x16x128xf32> to vector<256x128xf32>
    %48 = vector.extract_strided_slice %6 {offsets = [2, 0, 0], sizes = [16, 16, 128], strides = [1, 1, 1]} : vector<18x18x128xf32> to vector<16x16x128xf32>
    %49 = vector.shape_cast %48 : vector<16x16x128xf32> to vector<256x128xf32>
    %50 = vector.extract_strided_slice %6 {offsets = [2, 1, 0], sizes = [16, 16, 128], strides = [1, 1, 1]} : vector<18x18x128xf32> to vector<16x16x128xf32>
    %51 = vector.shape_cast %50 : vector<16x16x128xf32> to vector<256x128xf32>
    %52 = tpu.concatenate %45, %47, %49, %51 in 1 : vector<256x128xf32>, vector<256x128xf32>, vector<256x128xf32>, vector<256x128xf32> -> vector<256x512xf32>
    %c2 = arith.constant 2 : index
    %c0_31 = arith.constant 0 : index
    %c0_32 = arith.constant 0 : index
    %53 = vector.load %arg5[%c2, %c0_31, %c0_32] : memref<4x512x128xf32, #tpu.memory_space<vmem>>, vector<1x512x128xf32>
    %54 = vector.shape_cast %53 : vector<1x512x128xf32> to vector<512x128xf32>
    %cst_33 = arith.constant dense<0.000000e+00> : vector<256x128xf32>
    %55 = tpu.matmul %52, %54, %cst_33 {dimension_numbers = #tpu.dot_dimension_numbers<[1], [0], [0], [1], [0, 0, 1, 1], [], []>} : vector<256x512xf32>, vector<512x128xf32>, vector<256x128xf32> -> vector<256x128xf32>
    %56 = vector.broadcast %7 : vector<1x128xf32> to vector<256x128xf32>
    %57 = arith.addf %55, %56 : vector<256x128xf32>
    %58 = vector.shape_cast %57 : vector<256x128xf32> to vector<16x16x128xf32>
    %c0_34 = arith.constant 0 : index
    %c1_35 = arith.constant 1 : index
    %c0_36 = arith.constant 0 : index
    %c0_37 = arith.constant 0 : index
    %c0_38 = arith.constant 0 : index
    %c0_39 = arith.constant 0 : index
    %59 = vector.load %arg7[%c0_34, %c1_35, %c0_36, %c0_37, %c0_38, %c0_39] : memref<1x2x2x16x16x128xf32, #tpu.memory_space<vmem>>, vector<1x1x1x16x16x128xf32>
    %60 = vector.shape_cast %59 : vector<1x1x1x16x16x128xf32> to vector<16x16x128xf32>
    %61 = vector.shape_cast %58 : vector<16x16x128xf32> to vector<1x1x1x16x16x128xf32>
    tpu.vector_store %arg7[%c0_34, %c1_35, %c0_36, %c0_37, %c0_38, %c0_39], %61 {strides = array<i32>} : memref<1x2x2x16x16x128xf32, #tpu.memory_space<vmem>>, vector<1x1x1x16x16x128xf32>,
    %62 = vector.extract_strided_slice %6 {offsets = [1, 1, 0], sizes = [16, 16, 128], strides = [1, 1, 1]} : vector<18x18x128xf32> to vector<16x16x128xf32>
    %63 = vector.shape_cast %62 : vector<16x16x128xf32> to vector<256x128xf32>
    %64 = vector.extract_strided_slice %6 {offsets = [1, 2, 0], sizes = [16, 16, 128], strides = [1, 1, 1]} : vector<18x18x128xf32> to vector<16x16x128xf32>
    %65 = vector.shape_cast %64 : vector<16x16x128xf32> to vector<256x128xf32>
    %66 = vector.extract_strided_slice %6 {offsets = [2, 1, 0], sizes = [16, 16, 128], strides = [1, 1, 1]} : vector<18x18x128xf32> to vector<16x16x128xf32>
    %67 = vector.shape_cast %66 : vector<16x16x128xf32> to vector<256x128xf32>
    %68 = vector.extract_strided_slice %6 {offsets = [2, 2, 0], sizes = [16, 16, 128], strides = [1, 1, 1]} : vector<18x18x128xf32> to vector<16x16x128xf32>
    %69 = vector.shape_cast %68 : vector<16x16x128xf32> to vector<256x128xf32>
    %70 = tpu.concatenate %63, %65, %67, %69 in 1 : vector<256x128xf32>, vector<256x128xf32>, vector<256x128xf32>, vector<256x128xf32> -> vector<256x512xf32>
    %c3 = arith.constant 3 : index
    %c0_40 = arith.constant 0 : index
    %c0_41 = arith.constant 0 : index
    %71 = vector.load %arg5[%c3, %c0_40, %c0_41] : memref<4x512x128xf32, #tpu.memory_space<vmem>>, vector<1x512x128xf32>
    %72 = vector.shape_cast %71 : vector<1x512x128xf32> to vector<512x128xf32>
    %cst_42 = arith.constant dense<0.000000e+00> : vector<256x128xf32>
    %73 = tpu.matmul %70, %72, %cst_42 {dimension_numbers = #tpu.dot_dimension_numbers<[1], [0], [0], [1], [0, 0, 1, 1], [], []>} : vector<256x512xf32>, vector<512x128xf32>, vector<256x128xf32> -> vector<256x128xf32>
    %74 = vector.broadcast %7 : vector<1x128xf32> to vector<256x128xf32>
    %75 = arith.addf %73, %74 : vector<256x128xf32>
    %76 = vector.shape_cast %75 : vector<256x128xf32> to vector<16x16x128xf32>
    %c0_43 = arith.constant 0 : index
    %c1_44 = arith.constant 1 : index
    %c1_45 = arith.constant 1 : index
    %c0_46 = arith.constant 0 : index
    %c0_47 = arith.constant 0 : index
    %c0_48 = arith.constant 0 : index
    %77 = vector.load %arg7[%c0_43, %c1_44, %c1_45, %c0_46, %c0_47, %c0_48] : memref<1x2x2x16x16x128xf32, #tpu.memory_space<vmem>>, vector<1x1x1x16x16x128xf32>
    %78 = vector.shape_cast %77 : vector<1x1x1x16x16x128xf32> to vector<16x16x128xf32>
    %79 = vector.shape_cast %76 : vector<16x16x128xf32> to vector<1x1x1x16x16x128xf32>
    tpu.vector_store %arg7[%c0_43, %c1_44, %c1_45, %c0_46, %c0_47, %c0_48], %79 {strides = array<i32>} : memref<1x2x2x16x16x128xf32, #tpu.memory_space<vmem>>, vector<1x1x1x16x16x128xf32>,
    return
  }
  func.func @transform_0(%arg0: i32, %arg1: i32) -> (i32, i32, i32, i32) {
    %c0_i32 = arith.constant 0 : i32
    %c0_i32_0 = arith.constant 0 : i32
    %c0_i32_1 = arith.constant 0 : i32
    return %arg0, %arg1, %c0_i32, %c0_i32_0 : i32, i32, i32, i32
  }
  func.func @transform_1(%arg0: i32, %arg1: i32) -> (i32, i32, i32, i32) {
    %c1_i32 = arith.constant 1 : i32
    %0 = arith.addi %arg1, %c1_i32 : i32
    %c16_i32 = arith.constant 16 : i32
    %1 = arith.muli %0, %c16_i32 : i32
    %c0_i32 = arith.constant 0 : i32
    %c0_i32_0 = arith.constant 0 : i32
    %c0_i32_1 = arith.constant 0 : i32
    return %arg0, %1, %c0_i32, %c0_i32_0 : i32, i32, i32, i32
  }
  func.func @transform_2(%arg0: i32, %arg1: i32) -> (i32, i32, i32, i32) {
    %c1_i32 = arith.constant 1 : i32
    %0 = arith.addi %arg1, %c1_i32 : i32
    %c16_i32 = arith.constant 16 : i32
    %1 = arith.muli %0, %c16_i32 : i32
    %c1_i32_0 = arith.constant 1 : i32
    %2 = arith.addi %1, %c1_i32_0 : i32
    %c0_i32 = arith.constant 0 : i32
    %c0_i32_1 = arith.constant 0 : i32
    %c0_i32_2 = arith.constant 0 : i32
    return %arg0, %2, %c0_i32, %c0_i32_1 : i32, i32, i32, i32
  }
  func.func @transform_3(%arg0: i32, %arg1: i32) -> (i32, i32, i32) {
    %c0_i32 = arith.constant 0 : i32
    %c0_i32_0 = arith.constant 0 : i32
    %c0_i32_1 = arith.constant 0 : i32
    %c0_i32_2 = arith.constant 0 : i32
    return %c0_i32, %c0_i32_0, %c0_i32_1 : i32, i32, i32
  }
  func.func @transform_4(%arg0: i32, %arg1: i32) -> (i32, i32) {
    %c0_i32 = arith.constant 0 : i32
    %c0_i32_0 = arith.constant 0 : i32
    %c0_i32_1 = arith.constant 0 : i32
    return %c0_i32, %c0_i32_0 : i32, i32
  }
  func.func @transform_5(%arg0: i32, %arg1: i32) -> (i32, i32, i32, i32, i32, i32) {
    %c0_i32 = arith.constant 0 : i32
    %c0_i32_0 = arith.constant 0 : i32
    %c0_i32_1 = arith.constant 0 : i32
    %c0_i32_2 = arith.constant 0 : i32
    %c0_i32_3 = arith.constant 0 : i32
    return %arg0, %c0_i32, %c0_i32_0, %arg1, %c0_i32_1, %c0_i32_2 : i32, i32, i32, i32, i32, i32
  }
}

</mosaic_0001>

<bundles_post_ra>
// kernel: upsample_forward.1
= control target key start
LH: loop header
LB: loop body
LE: loop exit
PB: predicated region body
PF: predicated region fallthrough
CT: control target
= control target key end

     0   :  { %s4284_s18 = smov 0   ;;  %s4286_s19 = smov 0   ;;  %s6481_s0 = inlined_call_operand.vmem [shape: f32[2,18,18,128], index: 0, kind: input, shape index: {}, may-alias: {0,1,2}]   ;;  %s6482_s1 = inlined_call_operand.vmem [shape: f32[2,18,18,128], index: 1, kind: input, shape index: {}, may-alias: {0,1,2}]   ;;  %s6483_s2 = inlined_call_operand.vmem [shape: f32[2,18,18,128], index: 2, kind: input, shape index: {}, may-alias: {0,1,2}]   ;;  %s6484_s3 = inlined_call_operand.vmem [shape: f32[4,512,128], index: 3, kind: input, shape index: {}]   ;;  %s6485_s4 = inlined_call_operand.vmem [shape: f32[1,128], index: 4, kind: input, shape index: {}]   ;;  %s6486_s5 = inlined_call_operand.vmem [shape: f32[2,2,2,16,16,128], index: 5, kind: output, shape index: {}]  }
   0x1   :  { %s4288_s20 = smov 0  }
   0x2 LB: > { %s27_s21 = sadd.s32 1, %s4247_s19  ;;  %p3098_p0 = scmp.ge.s32.totalorder %s4251_s20, 1  ;;  %s4251_s20 = sphi %s4288_s20, %s15_s20   ;;  %s4247_s19 = sphi %s4286_s19, %s6741_s19   ;;  %s4243_s18 = sphi %s4284_s18, %s6740_s18  }
   0x3   : > { %p29_p1 = scmp.ge.s32.totalorder %s27_s21, 2  ;;  %p271_p2 = scmp.lt.s32.totalorder %s4251_s20, 3 }
   0x5   : > { %s6743_s21 = smov (%p29_p1, %s27_s21), 0  ;;  %p272_p3 = pnand %p3098_p0, %p271_p2 }
   0x7   : > { %275 = sbr.rel (%p272_p3) target bundleno = 804 (0x324), region = 40 }
   0xe   : > { %v623_v0 = vld [vmem:[%s6484_s3] sm:$0xff]  ;;  %v624_v1 = vld [vmem:[%s6484_s3 + $0x8] sm:$0xff]  ;;  %p343_p4 = scmp.lt.s32.totalorder %s4243_s18, 1  ;;  %v6487_v3 = vmov 0.0|0.0   ;;  %v625_v6 = vld [vmem:[%s6484_s3 + $0x10] sm:$0xff]  ;;  %vm500_vm0 = vcmask 1046528  }
   0xf   : > { %v3105_v2 = vld [vmem:[%s6484_s3 + $0x200] sm:$0xff]  ;;  %3400 = vmatprep.subr.bf16.mxu0 %v6487_v3  ;;  %3496 = vmatprep.subr.bf16.mxu1 %v6487_v3  ;;  %v3401_v4 = vpack.c.bf16 %v624_v1, %v623_v0  ;;  %v3106_v5 = vld [vmem:[%s6484_s3 + $0x208] sm:$0xff]  ;;  %v626_v7 = vld [vmem:[%s6484_s3 + $0x18] sm:$0xff]  ;;  %vm1175_vm1 = vcmask 1045504  }
  0x10   : > { %v3497_v8 = vpack.c.bf16 %v3106_v5, %v3105_v2  ;;  %v3107_v9 = vld [vmem:[%s6484_s3 + $0x210] sm:$0xff]  ;;  %v3108_v10 = vld [vmem:[%s6484_s3 + $0x218] sm:$0xff]  ;;  %v3404_v11 = vpack.c.bf16 %v626_v7, %v625_v6  ;;  %s6745_s18 = smov (!%p343_p4, %s4243_s18), 1  ;;  %v627_v13 = vld [vmem:[%s6484_s3 + $0x20] sm:$0xff] }
  0x11   : > { %3402 = vmatpush1.bf16.msra.mxu0 %v3401_v4  ;;  %v3500_v12 = vpack.c.bf16 %v3108_v10, %v3107_v9  ;;  %v628_v14 = vld [vmem:[%s6484_s3 + $0x28] sm:$0xff]  ;;  %v3109_v15 = vld [vmem:[%s6484_s3 + $0x220] sm:$0xff]  ;;  %v629_v19 = vld [vmem:[%s6484_s3 + $0x30] sm:$0xff]  ;;  %s4373_s16 = smul.u32 432, %s6745_s18  ;;  %s3399_s7 = sshll.u32 %s6745_s18, 10 }
  0x12   : > { %3498 = vmatpush1.bf16.msra.mxu1 %v3497_v8  ;;  %3403 = vmatprep.subr.bf16.mxu0 %v6487_v3  ;;  %v3110_v16 = vld [vmem:[%s6484_s3 + $0x228] sm:$0xff]  ;;  %v3407_v17 = vpack.c.bf16 %v628_v14, %v627_v13  ;;  %v630_v20 = vld [vmem:[%s6484_s3 + $0x38] sm:$0xff]  ;;  %v3111_v21 = vld [vmem:[%s6484_s3 + $0x230] sm:$0xff]  ;;  %s6012_s12 = scalar_lea.vmem %s6486_s5, %s3399_s7 }
  0x13   : > { %3499 = vmatprep.subr.bf16.mxu1 %v6487_v3  ;;  %v3503_v18 = vpack.c.bf16 %v3110_v16, %v3109_v15  ;;  %v3112_v22 = vld [vmem:[%s6484_s3 + $0x238] sm:$0xff]  ;;  %v3410_v23 = vpack.c.bf16 %v630_v20, %v629_v19  ;;  %v631_v25 = vld [vmem:[%s6484_s3 + $0x40] sm:$0xff]  ;;  %v632_v26 = vld [vmem:[%s6484_s3 + $0x48] sm:$0xff]  ;;  %s4393_s6 = scalar_lea.vmem %s6481_s0, %s4373_s16  ;;  %s3396_s25 = sadd.s32 384, %s4373_s16 }
  0x14   : > { %v3506_v24 = vpack.c.bf16 %v3112_v22, %v3111_v21  ;;  %v3113_v27 = vld [vmem:[%s6484_s3 + $0x240] sm:$0xff]  ;;  %v3114_v28 = vld [vmem:[%s6484_s3 + $0x248] sm:$0xff]  ;;  %v3413_v29 = vpack.c.bf16 %v632_v26, %v631_v25  ;;  %v633_v31 = vld [vmem:[%s6484_s3 + $0x50] sm:$0xff]  ;;  %s5592_s28 = scalar_lea.vmem %s6482_s1, %s3396_s25  ;;  %s3398_s18 = sadd.s32 408, %s4373_s16 }
  0x15   : > { %3405 = vmatpush1.bf16.msra.mxu0 %v3404_v11  ;;  %v3509_v30 = vpack.c.bf16 %v3114_v28, %v3113_v27  ;;  %v634_v32 = vld [vmem:[%s6484_s3 + $0x58] sm:$0xff]  ;;  %v3115_v33 = vld [vmem:[%s6484_s3 + $0x250] sm:$0xff]  ;;  %v635_v37 = vld [vmem:[%s6484_s3 + $0x60] sm:$0xff]  ;;  %s382_s14 = scalar_lea.vmem %s6483_s2, %s3398_s18 }
  0x16   : > { %3501 = vmatpush1.bf16.msra.mxu1 %v3500_v12  ;;  %3406 = vmatprep.subr.bf16.mxu0 %v6487_v3  ;;  %v3116_v34 = vld [vmem:[%s6484_s3 + $0x258] sm:$0xff]  ;;  %v3416_v35 = vpack.c.bf16 %v634_v32, %v633_v31  ;;  %v636_v38 = vld [vmem:[%s6484_s3 + $0x68] sm:$0xff]  ;;  %v3117_v39 = vld [vmem:[%s6484_s3 + $0x260] sm:$0xff] }
  0x17   : > { %3502 = vmatprep.subr.bf16.mxu1 %v6487_v3  ;;  %v3512_v36 = vpack.c.bf16 %v3116_v34, %v3115_v33  ;;  %v3118_v40 = vld [vmem:[%s6484_s3 + $0x268] sm:$0xff]  ;;  %v4410_v41 = vld [vmem:[%s4393_s6] sm:$0xff]  ;;  %v3419_v46 = vpack.c.bf16 %v636_v38, %v635_v37  ;;  %v637_v49 = vld [vmem:[%s6484_s3 + $0x70] sm:$0xff] }
  0x18   : > { %v4413_v42 = vld [vmem:[%s4393_s6 + $0x8] sm:$0xff]  ;;  %v501_v43 = vrot.slane %v4410_v41, 1  ;;  %v1176_v45 = vrot.slane %v4410_v41, 2  ;;  %v3515_v48 = vpack.c.bf16 %v3118_v40, %v3117_v39  ;;  %v638_v50 = vld [vmem:[%s6484_s3 + $0x78] sm:$0xff]  ;;  %v3119_v52 = vld [vmem:[%s6484_s3 + $0x270] sm:$0xff] }
  0x19   : > { %3408 = vmatpush1.bf16.msra.mxu0 %v3407_v17  ;;  %v502_v44 = vrot.slane %v4413_v42, 1  ;;  %v1177_v47 = vrot.slane %v4413_v42, 2  ;;  %v3120_v53 = vld [vmem:[%s6484_s3 + $0x278] sm:$0xff]  ;;  %v3422_v55 = vpack.c.bf16 %v638_v50, %v637_v49  ;;  %v639_v57 = vld [vmem:[%s6484_s3 + $0x80] sm:$0xff]  ;;  %v640_v58 = vld [vmem:[%s6484_s3 + $0x88] sm:$0xff] }
  0x1a   : > { %3504 = vmatpush1.bf16.msra.mxu1 %v3503_v18  ;;  %3409 = vmatprep.subr.bf16.mxu0 %v6487_v3  ;;  %v3518_v56 = vpack.c.bf16 %v3120_v53, %v3119_v52  ;;  %v3121_v59 = vld [vmem:[%s6484_s3 + $0x280] sm:$0xff]  ;;  %v3122_v60 = vld [vmem:[%s6484_s3 + $0x288] sm:$0xff]  ;;  %v3425_v61 = vpack.c.bf16 %v640_v58, %v639_v57  ;;  %v641_v63 = vld [vmem:[%s6484_s3 + $0x90] sm:$0xff] }
  0x1b   : > { %3505 = vmatprep.subr.bf16.mxu1 %v6487_v3  ;;  %v4429_v51 = vsel %vm500_vm0, %v501_v43, %v502_v44  ;;  %v1178_v54 = vsel %vm1175_vm1, %v1176_v45, %v1177_v47  ;;  %v3521_v62 = vpack.c.bf16 %v3122_v60, %v3121_v59  ;;  %v642_v0 = vld [vmem:[%s6484_s3 + $0x98] sm:$0xff]  ;;  %v3123_v1 = vld [vmem:[%s6484_s3 + $0x290] sm:$0xff]  ;;  %v643_v6 = vld [vmem:[%s6484_s3 + $0xa0] sm:$0xff] }
  0x1c   : > { %757 = vmatprep.mubr.f32.mxu0 %v4429_v51  ;;  %1424 = vmatprep.mubr.f32.mxu1 %v1178_v54  ;;  %v3124_v2 = vld [vmem:[%s6484_s3 + $0x298] sm:$0xff]  ;;  %v3428_v4 = vpack.c.bf16 %v642_v0, %v641_v63  ;;  %v644_v7 = vld [vmem:[%s6484_s3 + $0xa8] sm:$0xff]  ;;  %v3125_v8 = vld [vmem:[%s6484_s3 + $0x2a0] sm:$0xff] }
  0x1d   : > { %3411 = vmatpush1.bf16.msra.mxu0 %v3410_v23  ;;  %v3524_v5 = vpack.c.bf16 %v3124_v2, %v3123_v1  ;;  %v3126_v9 = vld [vmem:[%s6484_s3 + $0x2a8] sm:$0xff]  ;;  %v3431_v10 = vpack.c.bf16 %v644_v7, %v643_v6  ;;  %v645_v12 = vld [vmem:[%s6484_s3 + $0xb0] sm:$0xff]  ;;  %v646_v13 = vld [vmem:[%s6484_s3 + $0xb8] sm:$0xff] }
  0x1e   : > { %3507 = vmatpush1.bf16.msra.mxu1 %v3506_v24  ;;  %3412 = vmatprep.subr.bf16.mxu0 %v6487_v3  ;;  %v3527_v11 = vpack.c.bf16 %v3126_v9, %v3125_v8  ;;  %v3127_v14 = vld [vmem:[%s6484_s3 + $0x2b0] sm:$0xff]  ;;  %v3128_v15 = vld [vmem:[%s6484_s3 + $0x2b8] sm:$0xff]  ;;  %v3434_v16 = vpack.c.bf16 %v646_v13, %v645_v12  ;;  %v647_v18 = vld [vmem:[%s6484_s3 + $0xc0] sm:$0xff] }
  0x1f   : > { %3508 = vmatprep.subr.bf16.mxu1 %v6487_v3  ;;  %v3530_v17 = vpack.c.bf16 %v3128_v15, %v3127_v14  ;;  %v648_v19 = vld [vmem:[%s6484_s3 + $0xc8] sm:$0xff]  ;;  %v3129_v20 = vld [vmem:[%s6484_s3 + $0x2c0] sm:$0xff]  ;;  %v649_v24 = vld [vmem:[%s6484_s3 + $0xd0] sm:$0xff] }
  0x20   : > { %v3130_v21 = vld [vmem:[%s6484_s3 + $0x2c8] sm:$0xff]  ;;  %v3437_v22 = vpack.c.bf16 %v648_v19, %v647_v18  ;;  %v650_v25 = vld [vmem:[%s6484_s3 + $0xd8] sm:$0xff]  ;;  %v3131_v26 = vld [vmem:[%s6484_s3 + $0x2d0] sm:$0xff] }
  0x21   : > { %3414 = vmatpush1.bf16.msra.mxu0 %v3413_v29  ;;  %v3533_v23 = vpack.c.bf16 %v3130_v21, %v3129_v20  ;;  %v3132_v27 = vld [vmem:[%s6484_s3 + $0x2d8] sm:$0xff]  ;;  %v3440_v28 = vpack.c.bf16 %v650_v25, %v649_v24  ;;  %v652_v31 = vld [vmem:[%s6484_s3 + $0xe8] sm:$0xff]  ;;  %v3133_v32 = vld [vmem:[%s6484_s3 + $0x2e0] sm:$0xff] }
  0x22   : > { %3510 = vmatpush1.bf16.msra.mxu1 %v3509_v30  ;;  %3415 = vmatprep.subr.bf16.mxu0 %v6487_v3  ;;  %v3536_v29 = vpack.c.bf16 %v3132_v27, %v3131_v26  ;;  %v651_v30 = vld [vmem:[%s6484_s3 + $0xe0] sm:$0xff]  ;;  %v3134_v33 = vld [vmem:[%s6484_s3 + $0x2e8] sm:$0xff]  ;;  %v654_v37 = vld [vmem:[%s6484_s3 + $0xf8] sm:$0xff] }
  0x23   : > { %3511 = vmatprep.subr.bf16.mxu1 %v6487_v3  ;;  %v3443_v34 = vpack.c.bf16 %v652_v31, %v651_v30  ;;  %v3135_v38 = vld [vmem:[%s6484_s3 + $0x2f0] sm:$0xff]  ;;  %v3136_v39 = vld [vmem:[%s6484_s3 + $0x2f8] sm:$0xff]  ;;  %v3137_v49 = vld [vmem:[%s6484_s3 + $0x300] sm:$0xff] }
  0x24   : > { %v399_v40 = vld [vmem:[%s4393_s6 + $0x10] sm:$0x3]  ;;  %v3542_v45 = vpack.c.bf16 %v3136_v39, %v3135_v38  ;;  %v3138_v50 = vld [vmem:[%s6484_s3 + $0x308] sm:$0xff]  ;;  %v4570_v53 = vld [vmem:[%s4393_s6 + $0x18] sm:$0xff] }
  0x25   : > { %3417 = vmatpush1.bf16.msra.mxu0 %v3416_v35  ;;  %v3539_v35 = vpack.c.bf16 %v3134_v33, %v3133_v32  ;;  %v504_v52 = vrot.slane %v399_v40, 1  ;;  %v4573_v54 = vld [vmem:[%s4393_s6 + $0x20] sm:$0xff]  ;;  %v3545_v57 = vpack.c.bf16 %v3138_v50, %v3137_v49  ;;  %v506_v58 = vrot.slane %v4570_v53, 1  ;;  %v657_v63 = vld [vmem:[%s6484_s3 + $0x110] sm:$0xff]  ;;  %v658_v0 = vld [vmem:[%s6484_s3 + $0x118] sm:$0xff] }
  0x26   : > { %3513 = vmatpush1.bf16.msra.mxu1 %v3512_v36  ;;  %3418 = vmatprep.subr.bf16.mxu0 %v6487_v3  ;;  %v653_v36 = vld [vmem:[%s6484_s3 + $0xf0] sm:$0xff]  ;;  %v507_v59 = vrot.slane %v4573_v54, 1  ;;  %v402_v1 = vld [vmem:[%s4393_s6 + $0x28] sm:$0x3]  ;;  %v3141_v12 = vld [vmem:[%s6484_s3 + $0x320] sm:$0xff] }
  0x27   : > { %3514 = vmatprep.subr.bf16.mxu1 %v6487_v3  ;;  %v3446_v43 = vpack.c.bf16 %v654_v37, %v653_v36  ;;  %v505_v60 = vsel %vm500_vm0, %v502_v44, %v504_v52  ;;  %v3139_v2 = vld [vmem:[%s6484_s3 + $0x310] sm:$0xff]  ;;  %v509_v6 = vrot.slane %v402_v1, 1  ;;  %v1184_v9 = vrot.slane %v402_v1, 2  ;;  %v3142_v13 = vld [vmem:[%s6484_s3 + $0x328] sm:$0xff]  ;;  %v405_v21 = vld [vmem:[%s4393_s6 + $0x40] sm:$0x3] }
  0x28   : > { %v3551_v20 = vpack.c.bf16 %v3142_v13, %v3141_v12  ;;  %v3143_v24 = vld [vmem:[%s6484_s3 + $0x330] sm:$0xff]  ;;  %v3144_v25 = vld [vmem:[%s6484_s3 + $0x338] sm:$0xff]  ;;  %v514_v27 = vrot.slane %v405_v21, 1  ;;  %v1189_v31 = vrot.slane %v405_v21, 2  ;;  %v3145_v36 = vld [vmem:[%s6484_s3 + $0x340] sm:$0xff] }
  0x29   : > { %3420 = vmatpush1.bf16.msra.mxu0 %v3419_v46  ;;  %v655_v46 = vld [vmem:[%s6484_s3 + $0x100] sm:$0xff]  ;;  %v4632_v14 = vsel %vm500_vm0, %v507_v59, %v509_v6  ;;  %v4670_v32 = vld [vmem:[%s4393_s6 + $0x50] sm:$0xff]  ;;  %v3554_v33 = vpack.c.bf16 %v3144_v25, %v3143_v24  ;;  %v3146_v37 = vld [vmem:[%s6484_s3 + $0x348] sm:$0xff] }
  0x2a   : > { %3516 = vmatpush1.bf16.msra.mxu1 %v3515_v48  ;;  %3421 = vmatprep.subr.bf16.mxu0 %v6487_v3  ;;  %v656_v48 = vld [vmem:[%s6484_s3 + $0x108] sm:$0xff]  ;;  %v408_v49 = vld [vmem:[%s4393_s6 + $0x58] sm:$0x3]  ;;  %v3557_v50 = vpack.c.bf16 %v3146_v37, %v3145_v36  ;;  %v665_v52 = vld [vmem:[%s6484_s3 + $0x150] sm:$0xff] }
  0x2b   : > { %3517 = vmatprep.subr.bf16.mxu1 %v6487_v3  ;;  %v3154_v36 = vld [vmem:[%s6484_s3 + $0x388] sm:$0xff] }
  0x2d   : > { %3423 = vmatpush1.bf16.msra.mxu0 %v3422_v55  ;;  %v1179_v55 = vrot.slane %v399_v40, 2  ;;  %v517_v40 = vrot.slane %v4670_v32, 1 }
  0x2e   : > { %3519 = vmatpush1.bf16.msra.mxu1 %v3518_v56  ;;  %3424 = vmatprep.subr.bf16.mxu0 %v6487_v3  ;;  %v3449_v56 = vpack.c.bf16 %v656_v48, %v655_v46  ;;  %v1192_v48 = vrot.slane %v4670_v32, 2 }
  0x2f   : > { %3520 = vmatprep.subr.bf16.mxu1 %v6487_v3  ;;  %v1180_v44 = vsel %vm1175_vm1, %v1177_v47, %v1179_v55  ;;  %v4606_v47 = vld [vmem:[%s4393_s6 + $0x30] sm:$0xff]  ;;  %v666_v55 = vld [vmem:[%s6484_s3 + $0x158] sm:$0xff] }
  0x30   : > { %v1186_v18 = vrot.slane %v4606_v47, 2 }
  0x31   : > { %3426 = vmatpush1.bf16.msra.mxu0 %v3425_v61  ;;  %v1181_v61 = vrot.slane %v4570_v53, 2 }
  0x32   : > { %3522 = vmatpush1.bf16.msra.mxu1 %v3521_v62  ;;  %3427 = vmatprep.subr.bf16.mxu0 %v6487_v3  ;;  %v1182_v62 = vrot.slane %v4573_v54, 2 }
  0x33   : > { %3523 = vmatprep.subr.bf16.mxu1 %v6487_v3 }
  0x34   : > { %v4609_v7 = vsel %vm1175_vm1, %v1181_v61, %v1182_v62  ;;  %v3464_v61 = vpack.c.bf16 %v666_v55, %v665_v52  ;;  %v673_v55 = vld [vmem:[%s6484_s3 + $0x190] sm:$0xff] }
  0x35   : > { %3429 = vmatpush1.bf16.msra.mxu0 %v3428_v4  ;;  %v3140_v4 = vld [vmem:[%s6484_s3 + $0x318] sm:$0xff]  ;;  %6591 = vst [vmem:[#allocation2_spill] sm:$0xff] %v4609_v7 }
  0x36   : > { %3525 = vmatpush1.bf16.msra.mxu1 %v3524_v5  ;;  %3430 = vmatprep.subr.bf16.mxu0 %v6487_v3  ;;  %v3452_v5 = vpack.c.bf16 %v658_v0, %v657_v63  ;;  %v3548_v8 = vpack.c.bf16 %v3140_v4, %v3139_v2  ;;  %v1194_v63 = vrot.slane %v408_v49, 2  ;;  %v4729_v0 = vld [vmem:[%s4393_s6 + $0x68] sm:$0xff]  ;;  %v3149_v4 = vld [vmem:[%s6484_s3 + $0x360] sm:$0xff] }
  0x37   : > { %3526 = vmatprep.subr.bf16.mxu1 %v6487_v3  ;;  %v668_v2 = vld [vmem:[%s6484_s3 + $0x168] sm:$0xff]  ;;  %v1197_v13 = vrot.slane %v4729_v0, 2 }
  0x39   : > { %3432 = vmatpush1.bf16.msra.mxu0 %v3431_v10  ;;  %v4613_v10 = vld [vmem:[%s4393_s6 + $0x38] sm:$0xff] }
  0x3a   : > { %3528 = vmatpush1.bf16.msra.mxu1 %v3527_v11  ;;  %3433 = vmatprep.subr.bf16.mxu0 %v6487_v3  ;;  %v660_v11 = vld [vmem:[%s6484_s3 + $0x128] sm:$0xff]  ;;  %v512_v15 = vrot.slane %v4613_v10, 1  ;;  %v1187_v19 = vrot.slane %v4613_v10, 2 }
  0x3b   : > { %3529 = vmatprep.subr.bf16.mxu1 %v6487_v3 }
  0x3c   : > { %v4667_v30 = vsel %vm1175_vm1, %v1186_v18, %v1187_v19  ;;  %v4691_v38 = vsel %vm500_vm0, %v512_v15, %v514_v27  ;;  %v670_v18 = vld [vmem:[%s6484_s3 + $0x178] sm:$0xff] }
  0x3d   : > { %3435 = vmatpush1.bf16.msra.mxu0 %v3434_v16 }
  0x3e   : > { %3531 = vmatpush1.bf16.msra.mxu1 %v3530_v17  ;;  %3436 = vmatprep.subr.bf16.mxu0 %v6487_v3  ;;  %v4637_v17 = vsel %vm1175_vm1, %v1182_v62, %v1184_v9  ;;  %v522_v9 = vrot.slane %v4729_v0, 1 }
  0x3f   : > { %3532 = vmatprep.subr.bf16.mxu1 %v6487_v3 }
  0x41   : > { %3438 = vmatpush1.bf16.msra.mxu0 %v3437_v22  ;;  %v661_v22 = vld [vmem:[%s6484_s3 + $0x130] sm:$0xff] }
  0x42   : > { %3534 = vmatpush1.bf16.msra.mxu1 %v3533_v23  ;;  %3439 = vmatprep.subr.bf16.mxu0 %v6487_v3  ;;  %v662_v23 = vld [vmem:[%s6484_s3 + $0x138] sm:$0xff] }
  0x43   : > { %3535 = vmatprep.subr.bf16.mxu1 %v6487_v3 }
  0x45   : > { %3441 = vmatpush1.bf16.msra.mxu0 %v3440_v28  ;;  %v4664_v28 = vld [vmem:[%s4393_s6 + $0x48] sm:$0xff] }
  0x46   : > { %3537 = vmatpush1.bf16.msra.mxu1 %v3536_v29  ;;  %3442 = vmatprep.subr.bf16.mxu0 %v6487_v3  ;;  %v3458_v29 = vpack.c.bf16 %v662_v23, %v661_v22  ;;  %v516_v39 = vrot.slane %v4664_v28, 1  ;;  %v1191_v46 = vrot.slane %v4664_v28, 2  ;;  %v4782_v23 = vld [vmem:[%s4393_s6 + $0x78] sm:$0xff] }
  0x47   : > { %3538 = vmatprep.subr.bf16.mxu1 %v6487_v3 }
  0x48   : > { %v4726_v62 = vsel %vm1175_vm1, %v1191_v46, %v1192_v48 }
  0x49   : > { %3444 = vmatpush1.bf16.msra.mxu0 %v3443_v34  ;;  %v663_v34 = vld [vmem:[%s6484_s3 + $0x140] sm:$0xff] }
  0x4a   : > { %3540 = vmatpush1.bf16.msra.mxu1 %v3539_v35  ;;  %3445 = vmatprep.subr.bf16.mxu0 %v6487_v3  ;;  %v664_v35 = vld [vmem:[%s6484_s3 + $0x148] sm:$0xff] }
  0x4b   : > { %3541 = vmatprep.subr.bf16.mxu1 %v6487_v3 }
  0x4d   : > { %3447 = vmatpush1.bf16.msra.mxu0 %v3446_v43  ;;  %v3461_v43 = vpack.c.bf16 %v664_v35, %v663_v34  ;;  %v672_v34 = vld [vmem:[%s6484_s3 + $0x188] sm:$0xff]  ;;  %v3153_v35 = vld [vmem:[%s6484_s3 + $0x380] sm:$0xff] }
  0x4e   : > { %3543 = vmatpush1.bf16.msra.mxu1 %v3542_v45  ;;  %3448 = vmatprep.subr.bf16.mxu0 %v6487_v3  ;;  %v4696_v45 = vsel %vm1175_vm1, %v1187_v19, %v1189_v31  ;;  %v3151_v19 = vld [vmem:[%s6484_s3 + $0x370] sm:$0xff]  ;;  %v3569_v52 = vpack.c.bf16 %v3154_v36, %v3153_v35  ;;  %v3160_v35 = vld [vmem:[%s6484_s3 + $0x3b8] sm:$0xff] }
  0x4f   : > { %3544 = vmatprep.subr.bf16.mxu1 %v6487_v3 }
  0x50   : > { %758 = vmatmul.mubr.f32.vlgmr.msra.gmra.mrb[0].mxu0 %v4410_v41  ;;  %v4603_v41 = vsel %vm500_vm0, %v506_v58, %v507_v59  ;;  %v4720_v58 = vsel %vm500_vm0, %v516_v39, %v517_v40  ;;  %v519_v59 = vrot.slane %v408_v49, 1  ;;  %v526_v39 = vrot.slane %v4782_v23, 1 }
  0x51   : > { %1425 = vmatmul.mubr.f32.vlgmr.msra.gmra.mrb[0].mxu1 %v4429_v51  ;;  %3450 = vmatpush1.bf16.msra.mxu0 %v3449_v56  ;;  %v659_v51 = vld [vmem:[%s6484_s3 + $0x120] sm:$0xff]  ;;  %v3147_v56 = vld [vmem:[%s6484_s3 + $0x350] sm:$0xff] }
  0x52   : > { %3546 = vmatpush1.bf16.msra.mxu1 %v3545_v57  ;;  %762 = vmatprep.mubr.f32.mxu0 %v505_v60  ;;  %v3455_v16 = vpack.c.bf16 %v660_v11, %v659_v51  ;;  %v3148_v57 = vld [vmem:[%s6484_s3 + $0x358] sm:$0xff]  ;;  %v4750_v6 = vsel %vm500_vm0, %v517_v40, %v519_v59  ;;  %v4755_v11 = vsel %vm1175_vm1, %v1192_v48, %v1194_v63  ;;  %v1201_v48 = vrot.slane %v4782_v23, 2 }
  0x53   : > { %1429 = vmatprep.mubr.f32.mxu1 %v1180_v44  ;;  %3451 = vmatprep.subr.bf16.mxu0 %v6487_v3  ;;  %v3560_v1 = vpack.c.bf16 %v3148_v57, %v3147_v56  ;;  %v667_v44 = vld [vmem:[%s6484_s3 + $0x160] sm:$0xff]  ;;  %v674_v56 = vld [vmem:[%s6484_s3 + $0x198] sm:$0xff]  ;;  %v3155_v57 = vld [vmem:[%s6484_s3 + $0x390] sm:$0xff] }
  0x54   : > { %763 = vmatmul.mubr.f32.gmra.mrb[2].mxu0 %v4413_v42  ;;  %3547 = vmatprep.subr.bf16.mxu1 %v6487_v3  ;;  %v511_v42 = vrot.slane %v4606_v47, 1  ;;  %v3467_v51 = vpack.c.bf16 %v668_v2, %v667_v44  ;;  %v3156_v59 = vld [vmem:[%s6484_s3 + $0x398] sm:$0xff]  ;;  %v3476_v44 = vpack.c.bf16 %v674_v56, %v673_v55  ;;  %v679_v55 = vld [vmem:[%s6484_s3 + $0x1c0] sm:$0xff]  ;;  %v680_v56 = vld [vmem:[%s6484_s3 + $0x1c8] sm:$0xff] }
  0x55   : > { %1430 = vmatmul.mubr.f32.gmra.mrb[2].mxu1 %v505_v60  ;;  %767 = vmatprep.mubr.f32.mxu0 %v4603_v41  ;;  %v4723_v60 = vld [vmem:[%s4393_s6 + $0x60] sm:$0xff] }
  0x56   : > { %1434 = vmatprep.mubr.f32.mxu1 %v4609_v7  ;;  %3453 = vmatpush1.bf16.msra.mxu0 %v3452_v5  ;;  %v4661_v26 = vsel %vm500_vm0, %v511_v42, %v512_v15  ;;  %v3150_v5 = vld [vmem:[%s6484_s3 + $0x368] sm:$0xff]  ;;  %v1196_v12 = vrot.slane %v4723_v60, 2  ;;  %v411_v42 = vld [vmem:[%s4393_s6 + $0x70] sm:$0x3] }
  0x57   : > { %3549 = vmatpush1.bf16.msra.mxu1 %v3548_v8  ;;  %3454 = vmatprep.subr.bf16.mxu0 %v6487_v3  ;;  %v521_v8 = vrot.slane %v4723_v60, 1  ;;  %v3563_v15 = vpack.c.bf16 %v3150_v5, %v3149_v4  ;;  %v524_v22 = vrot.slane %v411_v42, 1  ;;  %v1199_v27 = vrot.slane %v411_v42, 2  ;;  %v4847_v5 = vld [vmem:[%s4393_s6 + $0x98] sm:$0xff] }
  0x58   : > { %768 = vmatmul.mubr.f32.gmra.mrb[4].mxu0 %v4570_v53  ;;  %3550 = vmatprep.subr.bf16.mxu1 %v6487_v3  ;;  %v4785_v25 = vsel %vm1175_vm1, %v1196_v12, %v1197_v13  ;;  %v3157_v12 = vld [vmem:[%s6484_s3 + $0x3a0] sm:$0xff] }
  0x59   : > { %1435 = vmatmul.mubr.f32.gmra.mrb[4].mxu1 %v4603_v41  ;;  %772 = vmatprep.mubr.f32.mxu0 %v4632_v14  ;;  %v4779_v21 = vsel %vm500_vm0, %v521_v8, %v522_v9  ;;  %v4809_v37 = vsel %vm500_vm0, %v522_v9, %v524_v22  ;;  %v4814_v46 = vsel %vm1175_vm1, %v1197_v13, %v1199_v27  ;;  %v675_v9 = vld [vmem:[%s6484_s3 + $0x1a0] sm:$0xff]  ;;  %v3158_v13 = vld [vmem:[%s6484_s3 + $0x3a8] sm:$0xff]  ;;  %v1207_v22 = vrot.slane %v4847_v5, 2 }
  0x5a   : > { %1439 = vmatprep.mubr.f32.mxu1 %v4637_v17  ;;  %3456 = vmatpush1.bf16.msra.mxu0 %v3455_v16  ;;  %v669_v16 = vld [vmem:[%s6484_s3 + $0x170] sm:$0xff]  ;;  %v3572_v8 = vpack.c.bf16 %v3156_v59, %v3155_v57  ;;  %v3575_v27 = vpack.c.bf16 %v3158_v13, %v3157_v12  ;;  %v3161_v57 = vld [vmem:[%s6484_s3 + $0x3c0] sm:$0xff]  ;;  %v3162_v59 = vld [vmem:[%s6484_s3 + $0x3c8] sm:$0xff] }
  0x5b   : > { %3552 = vmatpush1.bf16.msra.mxu1 %v3551_v20  ;;  %3457 = vmatprep.subr.bf16.mxu0 %v6487_v3  ;;  %v3152_v20 = vld [vmem:[%s6484_s3 + $0x378] sm:$0xff]  ;;  %v3470_v24 = vpack.c.bf16 %v670_v18, %v669_v16  ;;  %v532_v16 = vrot.slane %v4847_v5, 1 }
  0x5c   : > { %773 = vmatmul.mubr.f32.gmra.mrb[6].mxu0 %v4573_v54  ;;  %3553 = vmatprep.subr.bf16.mxu1 %v6487_v3  ;;  %v3566_v31 = vpack.c.bf16 %v3152_v20, %v3151_v19  ;;  %v420_v13 = vld [vmem:[%s4393_s6 + $0xb8] sm:$0x3] }
  0x5d   : > { %1440 = vmatmul.mubr.f32.gmra.mrb[6].mxu1 %v4632_v14  ;;  %777 = vmatprep.mubr.f32.mxu0 %v4661_v26 }
  0x5e   : > { %1444 = vmatprep.mubr.f32.mxu1 %v4667_v30  ;;  %3459 = vmatpush1.bf16.msra.mxu0 %v3458_v29  ;;  %v4788_v29 = vld [vmem:[%s4393_s6 + $0x80] sm:$0xff] }
  0x5f   : > { %3555 = vmatpush1.bf16.msra.mxu1 %v3554_v33  ;;  %3460 = vmatprep.subr.bf16.mxu0 %v6487_v3  ;;  %v671_v33 = vld [vmem:[%s6484_s3 + $0x180] sm:$0xff]  ;;  %v527_v40 = vrot.slane %v4788_v29, 1  ;;  %v1202_v49 = vrot.slane %v4788_v29, 2 }
  0x60   : > { %778 = vmatmul.mubr.f32.gmra.mrb[8].mxu0 %v4606_v47  ;;  %3556 = vmatprep.subr.bf16.mxu1 %v6487_v3 }
  0x61   : > { %1445 = vmatmul.mubr.f32.gmra.mrb[8].mxu1 %v4661_v26  ;;  %782 = vmatprep.mubr.f32.mxu0 %v4691_v38  ;;  %v4844_v2 = vsel %vm1175_vm1, %v1201_v48, %v1202_v49 }
  0x62   : > { %1449 = vmatprep.mubr.f32.mxu1 %v4696_v45  ;;  %3462 = vmatpush1.bf16.msra.mxu0 %v3461_v43  ;;  %v3473_v43 = vpack.c.bf16 %v672_v34, %v671_v33  ;;  %v678_v33 = vld [vmem:[%s6484_s3 + $0x1b8] sm:$0xff]  ;;  %v3159_v34 = vld [vmem:[%s6484_s3 + $0x3b0] sm:$0xff] }
  0x63   : > { %3558 = vmatpush1.bf16.msra.mxu1 %v3557_v50  ;;  %3463 = vmatprep.subr.bf16.mxu0 %v6487_v3  ;;  %v414_v50 = vld [vmem:[%s4393_s6 + $0x88] sm:$0x3] }
  0x64   : > { %783 = vmatmul.mubr.f32.gmra.mrb[10].mxu0 %v4613_v10  ;;  %3559 = vmatprep.subr.bf16.mxu1 %v6487_v3  ;;  %v529_v63 = vrot.slane %v414_v50, 1  ;;  %v1204_v4 = vrot.slane %v414_v50, 2  ;;  %v4906_v50 = vld [vmem:[%s4393_s6 + $0xb0] sm:$0xff] }
  0x65   : > { %1450 = vmatmul.mubr.f32.gmra.mrb[10].mxu1 %v4691_v38  ;;  %787 = vmatprep.mubr.f32.mxu0 %v4720_v58  ;;  %v1212_v12 = vrot.slane %v4906_v50, 2 }
  0x66   : > { %1454 = vmatprep.mubr.f32.mxu1 %v4726_v62  ;;  %3465 = vmatpush1.bf16.msra.mxu0 %v3464_v61  ;;  %v4838_v61 = vsel %vm500_vm0, %v526_v39, %v527_v40  ;;  %v4868_v42 = vsel %vm500_vm0, %v527_v40, %v529_v63  ;;  %v4873_v19 = vsel %vm1175_vm1, %v1202_v49, %v1204_v4  ;;  %v4900_v40 = vld [vmem:[%s4393_s6 + $0xa8] sm:$0xff]  ;;  %v537_v4 = vrot.slane %v4906_v50, 1 }
  0x67   : > { %3561 = vmatpush1.bf16.msra.mxu1 %v3560_v1  ;;  %3466 = vmatprep.subr.bf16.mxu0 %v6487_v3  ;;  %v4841_v1 = vld [vmem:[%s4393_s6 + $0x90] sm:$0xff] }
  0x68   : > { %788 = vmatmul.mubr.f32.gmra.mrb[12].mxu0 %v4664_v28  ;;  %3562 = vmatprep.subr.bf16.mxu1 %v6487_v3  ;;  %v1206_v20 = vrot.slane %v4841_v1, 2 }
  0x69   : > { %1455 = vmatmul.mubr.f32.gmra.mrb[12].mxu1 %v4720_v58  ;;  %792 = vmatprep.mubr.f32.mxu0 %v4750_v6 }
  0x6a   : > { %1459 = vmatprep.mubr.f32.mxu1 %v4755_v11  ;;  %3468 = vmatpush1.bf16.msra.mxu0 %v3467_v51  ;;  %v676_v51 = vld [vmem:[%s6484_s3 + $0x1a8] sm:$0xff]  ;;  %v4903_v48 = vsel %vm1175_vm1, %v1206_v20, %v1207_v22  ;;  %v3163_v20 = vld [vmem:[%s6484_s3 + $0x3d0] sm:$0xff] }
  0x6b   : > { %3564 = vmatpush1.bf16.msra.mxu1 %v3563_v15  ;;  %3469 = vmatprep.subr.bf16.mxu0 %v6487_v3  ;;  %v531_v15 = vrot.slane %v4841_v1, 1  ;;  %v3479_v18 = vpack.c.bf16 %v676_v51, %v675_v9  ;;  %v1211_v51 = vrot.slane %v4900_v40, 2 }
  0x6c   : > { %793 = vmatmul.mubr.f32.gmra.mrb[14].mxu0 %v4670_v32  ;;  %3565 = vmatprep.subr.bf16.mxu1 %v6487_v3 }
  0x6d   : > { %1460 = vmatmul.mubr.f32.gmra.mrb[14].mxu1 %v4750_v6  ;;  %797 = vmatprep.mubr.f32.mxu0 %v4779_v21  ;;  %v4897_v36 = vsel %vm500_vm0, %v531_v15, %v532_v16  ;;  %v3581_v15 = vpack.c.bf16 %v3162_v59, %v3161_v57 }
  0x6e   : > { %1464 = vmatprep.mubr.f32.mxu1 %v4785_v25  ;;  %3471 = vmatpush1.bf16.msra.mxu0 %v3470_v24  ;;  %v417_v24 = vld [vmem:[%s4393_s6 + $0xa0] sm:$0x3] }
  0x6f   : > { %3567 = vmatpush1.bf16.msra.mxu1 %v3566_v31  ;;  %3472 = vmatprep.subr.bf16.mxu0 %v6487_v3  ;;  %v677_v31 = vld [vmem:[%s6484_s3 + $0x1b0] sm:$0xff]  ;;  %v534_v39 = vrot.slane %v417_v24, 1  ;;  %v1209_v49 = vrot.slane %v417_v24, 2 }
  0x70   : > { %798 = vmatmul.mubr.f32.gmra.mrb[16].mxu0 %v4723_v60  ;;  %3568 = vmatprep.subr.bf16.mxu1 %v6487_v3 }
  0x71   : > { %1465 = vmatmul.mubr.f32.gmra.mrb[16].mxu1 %v4779_v21  ;;  %802 = vmatprep.mubr.f32.mxu0 %v4809_v37  ;;  %v4927_v63 = vsel %vm500_vm0, %v532_v16, %v534_v39  ;;  %v4932_v9 = vsel %vm1175_vm1, %v1207_v22, %v1209_v49  ;;  %v681_v16 = vld [vmem:[%s6484_s3 + $0x1d0] sm:$0xff]  ;;  %v3164_v22 = vld [vmem:[%s6484_s3 + $0x3d8] sm:$0xff]  ;;  %v4965_v39 = vld [vmem:[%s4393_s6 + $0xc8] sm:$0xff] }
  0x72   : > { %1469 = vmatprep.mubr.f32.mxu1 %v4814_v46  ;;  %3474 = vmatpush1.bf16.msra.mxu0 %v3473_v43  ;;  %v3482_v43 = vpack.c.bf16 %v678_v33, %v677_v31  ;;  %v4959_v31 = vld [vmem:[%s4393_s6 + $0xc0] sm:$0xff]  ;;  %6592 = vst [vmem:[#allocation3_spill] sm:$0xff] %v4965_v39 }
  0x73   : > { %3570 = vmatpush1.bf16.msra.mxu1 %v3569_v52  ;;  %3475 = vmatprep.subr.bf16.mxu0 %v6487_v3  ;;  %v3578_v52 = vpack.c.bf16 %v3160_v35, %v3159_v34  ;;  %v4962_v34 = vsel %vm1175_vm1, %v1211_v51, %v1212_v12  ;;  %v1214_v35 = vrot.slane %v420_v13, 2  ;;  %v683_v49 = vld [vmem:[%s6484_s3 + $0x1e0] sm:$0xff]  ;;  %v541_v59 = vrot.slane %v4959_v31, 1 }
  0x74   : > { %803 = vmatmul.mubr.f32.gmra.mrb[18].mxu0 %v4729_v0  ;;  %3571 = vmatprep.subr.bf16.mxu1 %v6487_v3 }
  0x75   : > { %1470 = vmatmul.mubr.f32.gmra.mrb[18].mxu1 %v4809_v37  ;;  %807 = vmatprep.mubr.f32.mxu0 %v4838_v61  ;;  %v4991_v51 = vsel %vm1175_vm1, %v1212_v12, %v1214_v35  ;;  %v686_v12 = vld [vmem:[%s6484_s3 + $0x1f8] sm:$0xff] }
  0x76   : > { %1474 = vmatprep.mubr.f32.mxu1 %v4844_v2  ;;  %3477 = vmatpush1.bf16.msra.mxu0 %v3476_v44  ;;  %v536_v44 = vrot.slane %v4900_v40, 1 }
  0x77   : > { %3573 = vmatpush1.bf16.msra.mxu1 %v3572_v8  ;;  %3478 = vmatprep.subr.bf16.mxu0 %v6487_v3  ;;  %v3485_v8 = vpack.c.bf16 %v680_v56, %v679_v55  ;;  %v3165_v55 = vld [vmem:[%s6484_s3 + $0x3e0] sm:$0xff]  ;;  %v3166_v56 = vld [vmem:[%s6484_s3 + $0x3e8] sm:$0xff] }
  0x78   : > { %808 = vmatmul.mubr.f32.gmra.mrb[20].mxu0 %v4782_v23  ;;  %3574 = vmatprep.subr.bf16.mxu1 %v6487_v3  ;;  %v4956_v24 = vsel %vm500_vm0, %v536_v44, %v537_v4  ;;  %v542_v44 = vrot.slane %v4965_v39, 1 }
  0x79   : > { %1475 = vmatmul.mubr.f32.gmra.mrb[20].mxu1 %v4838_v61  ;;  %812 = vmatprep.mubr.f32.mxu0 %v4868_v42 }
  0x7a   : > { %1479 = vmatprep.mubr.f32.mxu1 %v4873_v19  ;;  %3480 = vmatpush1.bf16.msra.mxu0 %v3479_v18  ;;  %v682_v18 = vld [vmem:[%s6484_s3 + $0x1d8] sm:$0xff] }
  0x7b   : > { %3576 = vmatpush1.bf16.msra.mxu1 %v3575_v27  ;;  %3481 = vmatprep.subr.bf16.mxu0 %v6487_v3  ;;  %v539_v27 = vrot.slane %v420_v13, 1  ;;  %v3488_v33 = vpack.c.bf16 %v682_v18, %v681_v16  ;;  %v1216_v13 = vrot.slane %v4959_v31, 2  ;;  %v423_v16 = vld [vmem:[%s4393_s6 + $0xd0] sm:$0x3]  ;;  %v3587_v18 = vpack.c.bf16 %v3166_v56, %v3165_v55  ;;  %v5024_v55 = vld [vmem:[%s4393_s6 + $0xe0] sm:$0xff] }
  0x7c   : > { %813 = vmatmul.mubr.f32.gmra.mrb[22].mxu0 %v4788_v29  ;;  %3577 = vmatprep.subr.bf16.mxu1 %v6487_v3  ;;  %6594 = vst [vmem:[#allocation5_spill] sm:$0xff] %v5024_v55 }
  0x7d   : > { %1480 = vmatmul.mubr.f32.gmra.mrb[22].mxu1 %v4868_v42  ;;  %817 = vmatprep.mubr.f32.mxu0 %v4897_v36  ;;  %v4986_v57 = vsel %vm500_vm0, %v537_v4, %v539_v27  ;;  %v685_v4 = vld [vmem:[%s6484_s3 + $0x1f0] sm:$0xff]  ;;  %v5015_v27 = vsel %vm500_vm0, %v541_v59, %v542_v44 }
  0x7e   : > { %1484 = vmatprep.mubr.f32.mxu1 %v4903_v48  ;;  %3483 = vmatpush1.bf16.msra.mxu0 %v3482_v43  ;;  %v3584_v43 = vpack.c.bf16 %v3164_v22, %v3163_v20  ;;  %v3167_v20 = vld [vmem:[%s6484_s3 + $0x3f0] sm:$0xff]  ;;  %v3168_v22 = vld [vmem:[%s6484_s3 + $0x3f8] sm:$0xff]  ;;  %v3494_v35 = vpack.c.bf16 %v686_v12, %v685_v4  ;;  %v1222_v4 = vrot.slane %v5024_v55, 2  ;;  %v426_v12 = vld [vmem:[%s4393_s6 + $0xe8] sm:$0x3] }
  0x7f   : > { %3579 = vmatpush1.bf16.msra.mxu1 %v3578_v52  ;;  %3484 = vmatprep.subr.bf16.mxu0 %v6487_v3  ;;  %v684_v52 = vld [vmem:[%s6484_s3 + $0x1e8] sm:$0xff]  ;;  %v3590_v56 = vpack.c.bf16 %v3168_v22, %v3167_v20  ;;  %v1224_v22 = vrot.slane %v426_v12, 2 }
  0x80   : > { %818 = vmatmul.mubr.f32.gmra.mrb[24].mxu0 %v4841_v1  ;;  %3580 = vmatprep.subr.bf16.mxu1 %v6487_v3 }
  0x81   : > { %1485 = vmatmul.mubr.f32.gmra.mrb[24].mxu1 %v4897_v36  ;;  %822 = vmatprep.mubr.f32.mxu0 %v4927_v63 }
  0x82   : > { %1489 = vmatprep.mubr.f32.mxu1 %v4932_v9  ;;  %3486 = vmatpush1.bf16.msra.mxu0 %v3485_v8  ;;  %v3491_v8 = vpack.c.bf16 %v684_v52, %v683_v49  ;;  %v1219_v49 = vrot.slane %v423_v16, 2  ;;  %v5021_v52 = vld [vmem:[%s4393_s6 + $0xd8] sm:$0xff] }
  0x83   : > { %3582 = vmatpush1.bf16.msra.mxu1 %v3581_v15  ;;  %3487 = vmatprep.subr.bf16.mxu0 %v6487_v3  ;;  %v1217_v15 = vrot.slane %v4965_v39, 2  ;;  %6593 = vst [vmem:[#allocation4_spill] sm:$0xff] %v5021_v52 }
  0x84   : > { %823 = vmatmul.mubr.f32.gmra.mrb[26].mxu0 %v4847_v5  ;;  %3583 = vmatprep.subr.bf16.mxu1 %v6487_v3 }
  0x85   : > { %1490 = vmatmul.mubr.f32.gmra.mrb[26].mxu1 %v4927_v63  ;;  %827 = vmatprep.mubr.f32.mxu0 %v4956_v24 }
  0x86   : > { %1494 = vmatprep.mubr.f32.mxu1 %v4962_v34  ;;  %3489 = vmatpush1.bf16.msra.mxu0 %v3488_v33  ;;  %v544_v33 = vrot.slane %v423_v16, 1  ;;  %v5038_v16 = vsel %vm1175_vm1, %v1217_v15, %v1219_v49 }
  0x87   : > { %3585 = vmatpush1.bf16.msra.mxu1 %v3584_v43  ;;  %3490 = vmatprep.subr.bf16.mxu0 %v6487_v3  ;;  %v5018_v43 = vsel %vm1175_vm1, %v1216_v13, %v1217_v15  ;;  %v547_v13 = vrot.slane %v5024_v55, 1  ;;  %6595 = vst [vmem:[#allocation6_spill] sm:$0xff] %v5038_v16  ;;  %v549_v15 = vrot.slane %v426_v12, 1 }
  0x88   : > { %828 = vmatmul.mubr.f32.gmra.mrb[28].mxu0 %v4900_v40  ;;  %3586 = vmatprep.subr.bf16.mxu1 %v6487_v3  ;;  %v5033_v59 = vsel %vm500_vm0, %v542_v44, %v544_v33  ;;  %v5056_v33 = vld [vmem:[%s4393_s6 + $0xf0] sm:$0xff] }
  0x89   : > { %1495 = vmatmul.mubr.f32.gmra.mrb[28].mxu1 %v4956_v24  ;;  %832 = vmatprep.mubr.f32.mxu0 %v4986_v57  ;;  %6598 = vst [vmem:[#allocation9_spill] sm:$0xff] %v5056_v33  ;;  %v5066_v49 = vsel %vm500_vm0, %v547_v13, %v549_v15  ;;  %v1226_v12 = vrot.slane %v5056_v33, 2 }
  0x8a   : > { %1499 = vmatprep.mubr.f32.mxu1 %v4991_v51  ;;  %3492 = vmatpush1.bf16.msra.mxu0 %v3491_v8  ;;  %v546_v8 = vrot.slane %v5021_v52, 1  ;;  %6600 = vst [vmem:[#allocation11_spill] sm:$0xff] %v5066_v49 }
  0x8b   : > { %3588 = vmatpush1.bf16.msra.mxu1 %v3587_v18  ;;  %3493 = vmatprep.subr.bf16.mxu0 %v6487_v3  ;;  %v1221_v18 = vrot.slane %v5021_v52, 2 }
  0x8c   : > { %833 = vmatmul.mubr.f32.gmra.mrb[30].mxu0 %v4906_v50  ;;  %3589 = vmatprep.subr.bf16.mxu1 %v6487_v3  ;;  %v5050_v44 = vsel %vm500_vm0, %v546_v8, %v547_v13 }
  0x8d   : > { %1500 = vmatmul.mubr.f32.gmra.mrb[30].mxu1 %v4986_v57  ;;  %837 = vmatprep.mubr.f32.mxu0 %v5015_v27  ;;  %6596 = vst [vmem:[#allocation7_spill] sm:$0xff] %v5050_v44  ;;  %v5053_v20 = vsel %vm1175_vm1, %v1221_v18, %v1222_v4  ;;  %v5071_v18 = vsel %vm1175_vm1, %v1222_v4, %v1224_v22 }
  0x8e   : > { %1504 = vmatprep.mubr.f32.mxu1 %v5018_v43  ;;  %3495 = vmatpush1.bf16.msra.mxu0 %v3494_v35  ;;  %6597 = vst [vmem:[#allocation8_spill] sm:$0xff] %v5053_v20  ;;  %v5059_v35 = vld [vmem:[%s4393_s6 + $0xf8] sm:$0xff]  ;;  %6601 = vst [vmem:[#allocation12_spill] sm:$0xff] %v5071_v18 }
  0x8f   : > { %3591 = vmatpush1.bf16.msra.mxu1 %v3590_v56  ;;  %3592 = vmatprep.subr.bf16.mxu0 %v6487_v3  ;;  %6599 = vst [vmem:[#allocation10_spill] sm:$0xff] %v5059_v35  ;;  %v551_v56 = vrot.slane %v5056_v33, 1  ;;  %v552_v8 = vrot.slane %v5059_v35, 1 }
  0x90   : > { %838 = vmatmul.mubr.f32.gmra.mrb[32].mxu0 %v4959_v31  ;;  %3688 = vmatprep.subr.bf16.mxu1 %v6487_v3  ;;  %v1227_v3 = vrot.slane %v5059_v35, 2 }
  0x91   : > { %1505 = vmatmul.mubr.f32.gmra.mrb[32].mxu1 %v5015_v27  ;;  %842 = vmatprep.mubr.f32.mxu0 %v5033_v59  ;;  %v5081_v13 = vsel %vm500_vm0, %v551_v56, %v552_v8 }
  0x92   : > { %1509 = vmatprep.mubr.f32.mxu1 %v5038_v16  ;;  %6602 = vst [vmem:[#allocation13_spill] sm:$0xff] %v5081_v13  ;;  %v5084_v4 = vsel %vm1175_vm1, %v1226_v12, %v1227_v3  ;;  %v5090_v16 = vld [vmem:[%s4393_s6 + $0x110] sm:$0xff] }
  0x93   : > { %6603 = vst [vmem:[#allocation14_spill] sm:$0xff] %v5084_v4  ;;  %6605 = vst [vmem:[#allocation16_spill] sm:$0xff] %v5090_v16 }
  0x94   : > { %843 = vmatmul.mubr.f32.gmra.mrb[34].mxu0 %v4965_v39  ;;  %v429_v39 = vld [vmem:[%s4393_s6 + $0x100] sm:$0x3] }
  0x95   : > { %1510 = vmatmul.mubr.f32.gmra.mrb[34].mxu1 %v5033_v59  ;;  %847 = vmatprep.mubr.f32.mxu0 %v5050_v44  ;;  %v554_v15 = vrot.slane %v429_v39, 1  ;;  %v1229_v22 = vrot.slane %v429_v39, 2  ;;  %v557_v39 = vrot.slane %v5090_v16, 1 }
  0x96   : > { %1514 = vmatprep.mubr.f32.mxu1 %v5053_v20  ;;  %v5087_v20 = vld [vmem:[%s4393_s6 + $0x108] sm:$0xff] }
  0x97   : > { %6604 = vst [vmem:[#allocation15_spill] sm:$0xff] %v5087_v20  ;;  %v5097_v56 = vsel %vm500_vm0, %v552_v8, %v554_v15  ;;  %v556_v12 = vrot.slane %v5087_v20, 1 }
  0x98   : > { %848 = vmatmul.mubr.f32.gmra.mrb[36].mxu0 %v5021_v52  ;;  %6606 = vst [vmem:[#allocation17_spill] sm:$0xff] %v5097_v56  ;;  %v432_v52 = vld [vmem:[%s4393_s6 + $0x118] sm:$0x3] }
  0x99   : > { %1515 = vmatmul.mubr.f32.gmra.mrb[36].mxu1 %v5050_v44  ;;  %852 = vmatprep.mubr.f32.mxu0 %v5066_v49  ;;  %v5112_v8 = vsel %vm500_vm0, %v556_v12, %v557_v39  ;;  %v559_v15 = vrot.slane %v432_v52, 1  ;;  %v5121_v44 = vld [vmem:[%s4393_s6 + $0x128] sm:$0xff] }
  0x9a   : > { %1519 = vmatprep.mubr.f32.mxu1 %v5071_v18  ;;  %v5102_v18 = vsel %vm1175_vm1, %v1227_v3, %v1229_v22  ;;  %6608 = vst [vmem:[#allocation19_spill] sm:$0xff] %v5112_v8  ;;  %v1234_v22 = vrot.slane %v432_v52, 2  ;;  %6611 = vst [vmem:[#allocation22_spill] sm:$0xff] %v5121_v44  ;;  %v562_v52 = vrot.slane %v5121_v44, 1 }
  0x9b   : > { %6607 = vst [vmem:[#allocation18_spill] sm:$0xff] %v5102_v18  ;;  %v5128_v12 = vsel %vm500_vm0, %v557_v39, %v559_v15 }
  0x9c   : > { %853 = vmatmul.mubr.f32.gmra.mrb[38].mxu0 %v5024_v55  ;;  %v1231_v55 = vrot.slane %v5087_v20, 2  ;;  %6612 = vst [vmem:[#allocation23_spill] sm:$0xff] %v5128_v12 }
  0x9d   : > { %1520 = vmatmul.mubr.f32.gmra.mrb[38].mxu1 %v5066_v49  ;;  %857 = vmatprep.mubr.f32.mxu0 %v5081_v13  ;;  %v1232_v49 = vrot.slane %v5090_v16, 2 }
  0x9e   : > { %1524 = vmatprep.mubr.f32.mxu1 %v5084_v4  ;;  %v5118_v4 = vld [vmem:[%s4393_s6 + $0x120] sm:$0xff] }
  0x9f   : > { %v5115_v3 = vsel %vm1175_vm1, %v1231_v55, %v1232_v49  ;;  %6610 = vst [vmem:[#allocation21_spill] sm:$0xff] %v5118_v4  ;;  %v561_v55 = vrot.slane %v5118_v4, 1 }
  0xa0   : > { %858 = vmatmul.mubr.f32.gmra.mrb[40].mxu0 %v5056_v33  ;;  %6609 = vst [vmem:[#allocation20_spill] sm:$0xff] %v5115_v3  ;;  %v435_v33 = vld [vmem:[%s4393_s6 + $0x130] sm:$0x3] }
  0xa1   : > { %1525 = vmatmul.mubr.f32.gmra.mrb[40].mxu1 %v5081_v13  ;;  %862 = vmatprep.mubr.f32.mxu0 %v5097_v56  ;;  %v5143_v39 = vsel %vm500_vm0, %v561_v55, %v562_v52  ;;  %v564_v15 = vrot.slane %v435_v33, 1  ;;  %v5152_v13 = vld [vmem:[%s4393_s6 + $0x140] sm:$0xff] }
  0xa2   : > { %1529 = vmatprep.mubr.f32.mxu1 %v5102_v18  ;;  %v5133_v18 = vsel %vm1175_vm1, %v1232_v49, %v1234_v22  ;;  %6614 = vst [vmem:[#allocation25_spill] sm:$0xff] %v5143_v39  ;;  %v1239_v22 = vrot.slane %v435_v33, 2  ;;  %6617 = vst [vmem:[#allocation28_spill] sm:$0xff] %v5152_v13  ;;  %v567_v33 = vrot.slane %v5152_v13, 1 }
  0xa3   : > { %6613 = vst [vmem:[#allocation24_spill] sm:$0xff] %v5133_v18  ;;  %v5159_v55 = vsel %vm500_vm0, %v562_v52, %v564_v15 }
  0xa4   : > { %863 = vmatmul.mubr.f32.gmra.mrb[42].mxu0 %v5059_v35  ;;  %v1236_v35 = vrot.slane %v5118_v4, 2  ;;  %6618 = vst [vmem:[#allocation29_spill] sm:$0xff] %v5159_v55 }
  0xa5   : > { %1530 = vmatmul.mubr.f32.gmra.mrb[42].mxu1 %v5097_v56  ;;  %867 = vmatprep.mubr.f32.mxu0 %v5112_v8  ;;  %v1237_v56 = vrot.slane %v5121_v44, 2 }
  0xa6   : > { %1534 = vmatprep.mubr.f32.mxu1 %v5115_v3  ;;  %v5149_v3 = vld [vmem:[%s4393_s6 + $0x138] sm:$0xff] }
  0xa7   : > { %v5146_v49 = vsel %vm1175_vm1, %v1236_v35, %v1237_v56  ;;  %6616 = vst [vmem:[#allocation27_spill] sm:$0xff] %v5149_v3  ;;  %v566_v35 = vrot.slane %v5149_v3, 1 }
  0xa8   : > { %868 = vmatmul.mubr.f32.gmra.mrb[44].mxu0 %v5087_v20  ;;  %6615 = vst [vmem:[#allocation26_spill] sm:$0xff] %v5146_v49  ;;  %v438_v20 = vld [vmem:[%s4393_s6 + $0x148] sm:$0x3] }
  0xa9   : > { %1535 = vmatmul.mubr.f32.gmra.mrb[44].mxu1 %v5112_v8  ;;  %872 = vmatprep.mubr.f32.mxu0 %v5128_v12  ;;  %v5174_v52 = vsel %vm500_vm0, %v566_v35, %v567_v33  ;;  %v569_v15 = vrot.slane %v438_v20, 1  ;;  %v5183_v8 = vld [vmem:[%s4393_s6 + $0x158] sm:$0xff] }
  0xaa   : > { %1539 = vmatprep.mubr.f32.mxu1 %v5133_v18  ;;  %v5164_v18 = vsel %vm1175_vm1, %v1237_v56, %v1239_v22  ;;  %6620 = vst [vmem:[#allocation31_spill] sm:$0xff] %v5174_v52  ;;  %v1244_v22 = vrot.slane %v438_v20, 2  ;;  %v572_v20 = vrot.slane %v5183_v8, 1 }
  0xab   : > { %6619 = vst [vmem:[#allocation30_spill] sm:$0xff] %v5164_v18  ;;  %v5190_v35 = vsel %vm500_vm0, %v567_v33, %v569_v15 }
  0xac   : > { %873 = vmatmul.mubr.f32.gmra.mrb[46].mxu0 %v5090_v16  ;;  %v1241_v16 = vrot.slane %v5149_v3, 2  ;;  %6623 = vst [vmem:[#allocation34_spill] sm:$0xff] %v5190_v35 }
  0xad   : > { %1540 = vmatmul.mubr.f32.gmra.mrb[46].mxu1 %v5128_v12  ;;  %877 = vmatprep.mubr.f32.mxu0 %v5143_v39  ;;  %v1242_v12 = vrot.slane %v5152_v13, 2 }
  0xae   : > { %1544 = vmatprep.mubr.f32.mxu1 %v5146_v49  ;;  %v5180_v49 = vld [vmem:[%s4393_s6 + $0x150] sm:$0xff] }
  0xaf   : > { %v5177_v56 = vsel %vm1175_vm1, %v1241_v16, %v1242_v12  ;;  %6622 = vst [vmem:[#allocation33_spill] sm:$0xff] %v5180_v49  ;;  %v571_v16 = vrot.slane %v5180_v49, 1 }
  0xb0   : > { %878 = vmatmul.mubr.f32.gmra.mrb[48].mxu0 %v5118_v4  ;;  %6621 = vst [vmem:[#allocation32_spill] sm:$0xff] %v5177_v56  ;;  %v441_v4 = vld [vmem:[%s4393_s6 + $0x160] sm:$0x3] }
  0xb1   : > { %1545 = vmatmul.mubr.f32.gmra.mrb[48].mxu1 %v5143_v39  ;;  %882 = vmatprep.mubr.f32.mxu0 %v5159_v55  ;;  %v5205_v33 = vsel %vm500_vm0, %v571_v16, %v572_v20  ;;  %v574_v15 = vrot.slane %v441_v4, 1  ;;  %v5214_v39 = vld [vmem:[%s4393_s6 + $0x170] sm:$0xff] }
  0xb2   : > { %1549 = vmatprep.mubr.f32.mxu1 %v5164_v18  ;;  %v5195_v18 = vsel %vm1175_vm1, %v1242_v12, %v1244_v22  ;;  %6625 = vst [vmem:[#allocation36_spill] sm:$0xff] %v5205_v33  ;;  %v1249_v22 = vrot.slane %v441_v4, 2  ;;  %6627 = vst [vmem:[#allocation38_spill] sm:$0xff] %v5214_v39 }
  0xb3   : > { %6624 = vst [vmem:[#allocation35_spill] sm:$0xff] %v5195_v18  ;;  %v5221_v16 = vsel %vm500_vm0, %v572_v20, %v574_v15 }
  0xb4   : > { %883 = vmatmul.mubr.f32.gmra.mrb[50].mxu0 %v5121_v44  ;;  %v1246_v44 = vrot.slane %v5180_v49, 2  ;;  %6628 = vst [vmem:[#allocation39_spill] sm:$0xff] %v5221_v16 }
  0xb5   : > { %1550 = vmatmul.mubr.f32.gmra.mrb[50].mxu1 %v5159_v55  ;;  %887 = vmatprep.mubr.f32.mxu0 %v5174_v52  ;;  %v1247_v55 = vrot.slane %v5183_v8, 2 }
  0xb6   : > { %1554 = vmatprep.mubr.f32.mxu1 %v5177_v56  ;;  %v5211_v56 = vld [vmem:[%s4393_s6 + $0x168] sm:$0xff] }
  0xb7   : > { %v5208_v12 = vsel %vm1175_vm1, %v1246_v44, %v1247_v55  ;;  %v577_v44 = vrot.slane %v5214_v39, 1  ;;  %v5226_v4 = vsel %vm1175_vm1, %v1247_v55, %v1249_v22 }
  0xb8   : > { %888 = vmatmul.mubr.f32.gmra.mrb[52].mxu0 %v5149_v3  ;;  %6626 = vst [vmem:[#allocation37_spill] sm:$0xff] %v5208_v12  ;;  %6629 = vst [vmem:[#allocation40_spill] sm:$0xff] %v5226_v4  ;;  %v1251_v3 = vrot.slane %v5211_v56, 2 }
  0xb9   : > { %1555 = vmatmul.mubr.f32.gmra.mrb[52].mxu1 %v5174_v52  ;;  %892 = vmatprep.mubr.f32.mxu0 %v5190_v35  ;;  %v444_v52 = vld [vmem:[%s4393_s6 + $0x178] sm:$0x3] }
  0xba   : > { %1559 = vmatprep.mubr.f32.mxu1 %v5195_v18  ;;  %v576_v18 = vrot.slane %v5211_v56, 1  ;;  %v579_v15 = vrot.slane %v444_v52, 1  ;;  %v1254_v22 = vrot.slane %v444_v52, 2  ;;  %v3298_v52 = vld [vmem:[%s6484_s3 + $0x608] sm:$0xff] }
  0xbc   : > { %893 = vmatmul.mubr.f32.gmra.mrb[54].mxu0 %v5152_v13  ;;  %v1252_v13 = vrot.slane %v5214_v39, 2  ;;  %v5236_v20 = vsel %vm500_vm0, %v576_v18, %v577_v44  ;;  %v3201_v18 = vld [vmem:[%s6484_s3 + $0x400] sm:$0xff] }
  0xbd   : > { %1560 = vmatmul.mubr.f32.gmra.mrb[54].mxu1 %v5190_v35  ;;  %897 = vmatprep.mubr.f32.mxu0 %v5205_v33 }
  0xbe   : > { %1564 = vmatprep.mubr.f32.mxu1 %v5208_v12  ;;  %v5239_v55 = vsel %vm1175_vm1, %v1251_v3, %v1252_v13  ;;  %v3202_v3 = vld [vmem:[%s6484_s3 + $0x408] sm:$0xff] }
  0xbf   : > { %6630 = vst [vmem:[#allocation41_spill] sm:$0xff] %v5239_v55 }
  0xc0   : > { %898 = vmatmul.mubr.f32.gmra.mrb[56].mxu0 %v5180_v49  ;;  %v5246_v49 = vsel %vm500_vm0, %v577_v44, %v579_v15  ;;  %v3593_v44 = vpack.c.bf16 %v3202_v3, %v3201_v18  ;;  %v3300_v18 = vld [vmem:[%s6484_s3 + $0x618] sm:$0xff] }
  0xc1   : > { %1565 = vmatmul.mubr.f32.gmra.mrb[56].mxu1 %v5205_v33  ;;  %902 = vmatprep.mubr.f32.mxu0 %v5221_v16 }
  0xc2   : > { %1569 = vmatprep.mubr.f32.mxu1 %v5226_v4  ;;  %v5249_v4 = vsel %vm1175_vm1, %v1252_v13, %v1254_v22  ;;  %v3297_v13 = vld [vmem:[%s6484_s3 + $0x600] sm:$0xff]  ;;  %v3203_v22 = vld [vmem:[%s6484_s3 + $0x410] sm:$0xff] }
  0xc3   : > { %6631 = vst [vmem:[#allocation42_spill] sm:$0xff] %v5249_v4  ;;  %v3689_v15 = vpack.c.bf16 %v3298_v52, %v3297_v13  ;;  %v6632_v13 = vmov 0.0|0.0   ;;  %v3205_v52 = vld [vmem:[%s6484_s3 + $0x420] sm:$0xff] }
  0xc4   : > { %903 = vmatmul.mubr.f32.gmra.mrb[58].mxu0 %v5183_v8 }
  0xc5   : > { %1570 = vmatmul.mubr.f32.gmra.mrb[58].mxu1 %v5221_v16  ;;  %907 = vmatprep.mubr.f32.mxu0 %v5236_v20 }
  0xc6   : > { %1574 = vmatprep.mubr.f32.mxu1 %v5239_v55 }
  0xc8   : > { %908 = vmatmul.mubr.f32.gmra.mrb[60].mxu0 %v5211_v56 }
  0xc9   : > { %1575 = vmatmul.mubr.f32.gmra.mrb[60].mxu1 %v5236_v20  ;;  %912 = vmatprep.mubr.f32.mxu0 %v5246_v49 }
  0xca   : > { %1579 = vmatprep.mubr.f32.mxu1 %v5249_v4  ;;  %v3204_v4 = vld [vmem:[%s6484_s3 + $0x418] sm:$0xff] }
  0xcb   : > { %v3596_v3 = vpack.c.bf16 %v3204_v4, %v3203_v22  ;;  %v3301_v4 = vld [vmem:[%s6484_s3 + $0x620] sm:$0xff]  ;;  %v3208_v22 = vld [vmem:[%s6484_s3 + $0x438] sm:$0xff] }
  0xcc   : > { %913 = vmatmul.mubr.f32.gmra.mrb[62].mxu0 %v5214_v39  ;;  %v3299_v39 = vld [vmem:[%s6484_s3 + $0x610] sm:$0xff] }
  0xcd   : > { %1580 = vmatmul.mubr.f32.gmra.mrb[62].mxu1 %v5246_v49  ;;  %982 = vmatprep.mubr.f32.mxu0 %v4603_v41 }
  0xce   : > { %1649 = vmatprep.mubr.f32.mxu1 %v4609_v7  ;;  %v3206_v7 = vld [vmem:[%s6484_s3 + $0x428] sm:$0xff] }
  0xd0   : > { %983 = vmatmul.mubr.f32.vlgmr.msra.gmra.mrb[0].mxu0 %v4570_v53  ;;  %v3692_v53 = vpack.c.bf16 %v3300_v18, %v3299_v39  ;;  %v3302_v39 = vld [vmem:[%s6484_s3 + $0x628] sm:$0xff]  ;;  %v3304_v18 = vld [vmem:[%s6484_s3 + $0x638] sm:$0xff] }
  0xd1   : > { %1650 = vmatmul.mubr.f32.vlgmr.msra.gmra.mrb[0].mxu1 %v4603_v41  ;;  %3594 = vmatpush1.bf16.msra.mxu0 %v3593_v44  ;;  %v3599_v44 = vpack.c.bf16 %v3206_v7, %v3205_v52  ;;  %v3303_v7 = vld [vmem:[%s6484_s3 + $0x630] sm:$0xff]  ;;  %v3210_v52 = vld [vmem:[%s6484_s3 + $0x448] sm:$0xff] }
  0xd2   : > { %3690 = vmatpush1.bf16.msra.mxu1 %v3689_v15  ;;  %987 = vmatprep.mubr.f32.mxu0 %v4632_v14  ;;  %v3207_v15 = vld [vmem:[%s6484_s3 + $0x430] sm:$0xff] }
  0xd3   : > { %1654 = vmatprep.mubr.f32.mxu1 %v4637_v17  ;;  %3595 = vmatprep.subr.bf16.mxu0 %v6632_v13 }
  0xd4   : > { %988 = vmatmul.mubr.f32.gmra.mrb[2].mxu0 %v4573_v54  ;;  %3691 = vmatprep.subr.bf16.mxu1 %v6632_v13  ;;  %v3695_v54 = vpack.c.bf16 %v3302_v39, %v3301_v4  ;;  %v3305_v4 = vld [vmem:[%s6484_s3 + $0x640] sm:$0xff]  ;;  %v3306_v39 = vld [vmem:[%s6484_s3 + $0x648] sm:$0xff] }
  0xd5   : > { %1655 = vmatmul.mubr.f32.gmra.mrb[2].mxu1 %v4632_v14  ;;  %992 = vmatprep.mubr.f32.mxu0 %v4661_v26 }
  0xd6   : > { %1659 = vmatprep.mubr.f32.mxu1 %v4667_v30  ;;  %3597 = vmatpush1.bf16.msra.mxu0 %v3596_v3  ;;  %v3602_v3 = vpack.c.bf16 %v3208_v22, %v3207_v15  ;;  %v3212_v15 = vld [vmem:[%s6484_s3 + $0x458] sm:$0xff]  ;;  %v3307_v22 = vld [vmem:[%s6484_s3 + $0x650] sm:$0xff] }
  0xd7   : > { %3693 = vmatpush1.bf16.msra.mxu1 %v3692_v53  ;;  %3598 = vmatprep.subr.bf16.mxu0 %v6632_v13  ;;  %v3209_v53 = vld [vmem:[%s6484_s3 + $0x440] sm:$0xff] }
  0xd8   : > { %993 = vmatmul.mubr.f32.gmra.mrb[4].mxu0 %v4606_v47  ;;  %3694 = vmatprep.subr.bf16.mxu1 %v6632_v13  ;;  %v3698_v47 = vpack.c.bf16 %v3304_v18, %v3303_v7  ;;  %v3308_v7 = vld [vmem:[%s6484_s3 + $0x658] sm:$0xff] }
  0xd9   : > { %1660 = vmatmul.mubr.f32.gmra.mrb[4].mxu1 %v4661_v26  ;;  %997 = vmatprep.mubr.f32.mxu0 %v4691_v38 }
  0xda   : > { %1664 = vmatprep.mubr.f32.mxu1 %v4696_v45  ;;  %3600 = vmatpush1.bf16.msra.mxu0 %v3599_v44  ;;  %v3605_v44 = vpack.c.bf16 %v3210_v52, %v3209_v53  ;;  %v3309_v53 = vld [vmem:[%s6484_s3 + $0x660] sm:$0xff]  ;;  %v3310_v52 = vld [vmem:[%s6484_s3 + $0x668] sm:$0xff] }
  0xdb   : > { %3696 = vmatpush1.bf16.msra.mxu1 %v3695_v54  ;;  %3601 = vmatprep.subr.bf16.mxu0 %v6632_v13  ;;  %v3211_v54 = vld [vmem:[%s6484_s3 + $0x450] sm:$0xff] }
  0xdc   : > { %998 = vmatmul.mubr.f32.gmra.mrb[6].mxu0 %v4613_v10  ;;  %3697 = vmatprep.subr.bf16.mxu1 %v6632_v13  ;;  %v3701_v10 = vpack.c.bf16 %v3306_v39, %v3305_v4  ;;  %v3608_v18 = vpack.c.bf16 %v3212_v15, %v3211_v54  ;;  %v3215_v39 = vld [vmem:[%s6484_s3 + $0x470] sm:$0xff]  ;;  %v3312_v54 = vld [vmem:[%s6484_s3 + $0x678] sm:$0xff] }
  0xdd   : > { %1665 = vmatmul.mubr.f32.gmra.mrb[6].mxu1 %v4691_v38  ;;  %1002 = vmatprep.mubr.f32.mxu0 %v4720_v58 }
  0xde   : > { %1669 = vmatprep.mubr.f32.mxu1 %v4726_v62  ;;  %3603 = vmatpush1.bf16.msra.mxu0 %v3602_v3  ;;  %v3213_v3 = vld [vmem:[%s6484_s3 + $0x460] sm:$0xff] }
  0xdf   : > { %3699 = vmatpush1.bf16.msra.mxu1 %v3698_v47  ;;  %3604 = vmatprep.subr.bf16.mxu0 %v6632_v13  ;;  %v3214_v47 = vld [vmem:[%s6484_s3 + $0x468] sm:$0xff] }
  0xe0   : > { %1003 = vmatmul.mubr.f32.gmra.mrb[8].mxu0 %v4664_v28  ;;  %3700 = vmatprep.subr.bf16.mxu1 %v6632_v13  ;;  %v3704_v28 = vpack.c.bf16 %v3308_v7, %v3307_v22  ;;  %v3611_v4 = vpack.c.bf16 %v3214_v47, %v3213_v3  ;;  %v3217_v22 = vld [vmem:[%s6484_s3 + $0x480] sm:$0xff]  ;;  %v3218_v7 = vld [vmem:[%s6484_s3 + $0x488] sm:$0xff]  ;;  %v3219_v47 = vld [vmem:[%s6484_s3 + $0x490] sm:$0xff] }
  0xe1   : > { %1670 = vmatmul.mubr.f32.gmra.mrb[8].mxu1 %v4720_v58  ;;  %1007 = vmatprep.mubr.f32.mxu0 %v4750_v6  ;;  %v3617_v3 = vpack.c.bf16 %v3218_v7, %v3217_v22  ;;  %v3224_v22 = vld [vmem:[%s6484_s3 + $0x4b8] sm:$0xff]  ;;  %v3319_v7 = vld [vmem:[%s6484_s3 + $0x6b0] sm:$0xff] }
  0xe2   : > { %1674 = vmatprep.mubr.f32.mxu1 %v4755_v11  ;;  %3606 = vmatpush1.bf16.msra.mxu0 %v3605_v44  ;;  %v3216_v44 = vld [vmem:[%s6484_s3 + $0x478] sm:$0xff] }
  0xe3   : > { %3702 = vmatpush1.bf16.msra.mxu1 %v3701_v10  ;;  %3607 = vmatprep.subr.bf16.mxu0 %v6632_v13  ;;  %v3311_v10 = vld [vmem:[%s6484_s3 + $0x670] sm:$0xff]  ;;  %v3614_v15 = vpack.c.bf16 %v3216_v44, %v3215_v39  ;;  %v3221_v39 = vld [vmem:[%s6484_s3 + $0x4a0] sm:$0xff]  ;;  %v3222_v44 = vld [vmem:[%s6484_s3 + $0x4a8] sm:$0xff] }
  0xe4   : > { %1008 = vmatmul.mubr.f32.gmra.mrb[10].mxu0 %v4670_v32  ;;  %3703 = vmatprep.subr.bf16.mxu1 %v6632_v13  ;;  %v3707_v32 = vpack.c.bf16 %v3310_v52, %v3309_v53  ;;  %v3220_v53 = vld [vmem:[%s6484_s3 + $0x498] sm:$0xff]  ;;  %v3315_v52 = vld [vmem:[%s6484_s3 + $0x690] sm:$0xff] }
  0xe5   : > { %1675 = vmatmul.mubr.f32.gmra.mrb[10].mxu1 %v4750_v6  ;;  %1012 = vmatprep.mubr.f32.mxu0 %v4779_v21 }
  0xe6   : > { %1679 = vmatprep.mubr.f32.mxu1 %v4785_v25  ;;  %3609 = vmatpush1.bf16.msra.mxu0 %v3608_v18  ;;  %v3313_v18 = vld [vmem:[%s6484_s3 + $0x680] sm:$0xff] }
  0xe7   : > { %3705 = vmatpush1.bf16.msra.mxu1 %v3704_v28  ;;  %3610 = vmatprep.subr.bf16.mxu0 %v6632_v13  ;;  %v3314_v28 = vld [vmem:[%s6484_s3 + $0x688] sm:$0xff] }
  0xe8   : > { %1013 = vmatmul.mubr.f32.gmra.mrb[12].mxu0 %v4723_v60  ;;  %3706 = vmatprep.subr.bf16.mxu1 %v6632_v13  ;;  %v3710_v60 = vpack.c.bf16 %v3312_v54, %v3311_v10  ;;  %v3317_v10 = vld [vmem:[%s6484_s3 + $0x6a0] sm:$0xff]  ;;  %v3318_v54 = vld [vmem:[%s6484_s3 + $0x6a8] sm:$0xff] }
  0xe9   : > { %1680 = vmatmul.mubr.f32.gmra.mrb[12].mxu1 %v4779_v21  ;;  %1017 = vmatprep.mubr.f32.mxu0 %v4809_v37 }
  0xea   : > { %1684 = vmatprep.mubr.f32.mxu1 %v4814_v46  ;;  %3612 = vmatpush1.bf16.msra.mxu0 %v3611_v4  ;;  %v3316_v4 = vld [vmem:[%s6484_s3 + $0x698] sm:$0xff] }
  0xeb   : > { %3708 = vmatpush1.bf16.msra.mxu1 %v3707_v32  ;;  %3613 = vmatprep.subr.bf16.mxu0 %v6632_v13  ;;  %v3620_v32 = vpack.c.bf16 %v3220_v53, %v3219_v47  ;;  %v3321_v47 = vld [vmem:[%s6484_s3 + $0x6c0] sm:$0xff]  ;;  %v3322_v53 = vld [vmem:[%s6484_s3 + $0x6c8] sm:$0xff] }
  0xec   : > { %1018 = vmatmul.mubr.f32.gmra.mrb[14].mxu0 %v4729_v0  ;;  %3709 = vmatprep.subr.bf16.mxu1 %v6632_v13  ;;  %v3713_v0 = vpack.c.bf16 %v3314_v28, %v3313_v18  ;;  %v3320_v18 = vld [vmem:[%s6484_s3 + $0x6b8] sm:$0xff] }
  0xed   : > { %1685 = vmatmul.mubr.f32.gmra.mrb[14].mxu1 %v4809_v37  ;;  %1022 = vmatprep.mubr.f32.mxu0 %v4838_v61 }
  0xee   : > { %1689 = vmatprep.mubr.f32.mxu1 %v4844_v2  ;;  %3615 = vmatpush1.bf16.msra.mxu0 %v3614_v15  ;;  %v3623_v15 = vpack.c.bf16 %v3222_v44, %v3221_v39  ;;  %v3324_v39 = vld [vmem:[%s6484_s3 + $0x6d8] sm:$0xff] }
  0xef   : > { %3711 = vmatpush1.bf16.msra.mxu1 %v3710_v60  ;;  %3616 = vmatprep.subr.bf16.mxu0 %v6632_v13  ;;  %v3223_v60 = vld [vmem:[%s6484_s3 + $0x4b0] sm:$0xff] }
  0xf0   : > { %1023 = vmatmul.mubr.f32.gmra.mrb[16].mxu0 %v4782_v23  ;;  %3712 = vmatprep.subr.bf16.mxu1 %v6632_v13  ;;  %v3716_v23 = vpack.c.bf16 %v3316_v4, %v3315_v52  ;;  %v3626_v28 = vpack.c.bf16 %v3224_v22, %v3223_v60  ;;  %v3227_v4 = vld [vmem:[%s6484_s3 + $0x4d0] sm:$0xff] }
  0xf1   : > { %1690 = vmatmul.mubr.f32.gmra.mrb[16].mxu1 %v4838_v61  ;;  %1027 = vmatprep.mubr.f32.mxu0 %v4868_v42  ;;  %v3231_v22 = vld [vmem:[%s6484_s3 + $0x4f0] sm:$0xff] }
  0xf2   : > { %1694 = vmatprep.mubr.f32.mxu1 %v4873_v19  ;;  %3618 = vmatpush1.bf16.msra.mxu0 %v3617_v3  ;;  %v3225_v3 = vld [vmem:[%s6484_s3 + $0x4c0] sm:$0xff] }
  0xf3   : > { %3714 = vmatpush1.bf16.msra.mxu1 %v3713_v0  ;;  %3619 = vmatprep.subr.bf16.mxu0 %v6632_v13  ;;  %v3226_v0 = vld [vmem:[%s6484_s3 + $0x4c8] sm:$0xff] }
  0xf4   : > { %1028 = vmatmul.mubr.f32.gmra.mrb[18].mxu0 %v4788_v29  ;;  %3715 = vmatprep.subr.bf16.mxu1 %v6632_v13  ;;  %v3719_v29 = vpack.c.bf16 %v3318_v54, %v3317_v10  ;;  %v3629_v52 = vpack.c.bf16 %v3226_v0, %v3225_v3  ;;  %v3229_v10 = vld [vmem:[%s6484_s3 + $0x4e0] sm:$0xff]  ;;  %v3230_v54 = vld [vmem:[%s6484_s3 + $0x4e8] sm:$0xff] }
  0xf5   : > { %1695 = vmatmul.mubr.f32.gmra.mrb[18].mxu1 %v4868_v42  ;;  %1032 = vmatprep.mubr.f32.mxu0 %v4897_v36  ;;  %v3635_v60 = vpack.c.bf16 %v3230_v54, %v3229_v10  ;;  %v6634_v0 = vld [vmem:[#allocation3_spill] sm:$0xff]  ;;  %v6645_v10 = vld [vmem:[#allocation18_spill] sm:$0xff] }
  0xf6   : > { %1699 = vmatprep.mubr.f32.mxu1 %v4903_v48  ;;  %3621 = vmatpush1.bf16.msra.mxu0 %v3620_v32  ;;  %v3228_v32 = vld [vmem:[%s6484_s3 + $0x4d8] sm:$0xff]  ;;  %v6646_v54 = vld [vmem:[#allocation10_spill] sm:$0xff] }
  0xf7   : > { %3717 = vmatpush1.bf16.msra.mxu1 %v3716_v23  ;;  %3622 = vmatprep.subr.bf16.mxu0 %v6632_v13  ;;  %v3323_v23 = vld [vmem:[%s6484_s3 + $0x6d0] sm:$0xff]  ;;  %v3632_v44 = vpack.c.bf16 %v3228_v32, %v3227_v4  ;;  %v6640_v32 = vld [vmem:[#allocation5_spill] sm:$0xff] }
  0xf8   : > { %1033 = vmatmul.mubr.f32.gmra.mrb[20].mxu0 %v4841_v1  ;;  %3718 = vmatprep.subr.bf16.mxu1 %v6632_v13  ;;  %v3722_v1 = vpack.c.bf16 %v3320_v18, %v3319_v7  ;;  %v3232_v7 = vld [vmem:[%s6484_s3 + $0x4f8] sm:$0xff]  ;;  %v3327_v18 = vld [vmem:[%s6484_s3 + $0x6f0] sm:$0xff] }
  0xf9   : > { %1700 = vmatmul.mubr.f32.gmra.mrb[20].mxu1 %v4897_v36  ;;  %1037 = vmatprep.mubr.f32.mxu0 %v4927_v63  ;;  %v3638_v3 = vpack.c.bf16 %v3232_v7, %v3231_v22  ;;  %v6639_v4 = vld [vmem:[#allocation12_spill] sm:$0xff] }
  0xfa   : > { %1704 = vmatprep.mubr.f32.mxu1 %v4932_v9  ;;  %3624 = vmatpush1.bf16.msra.mxu0 %v3623_v15  ;;  %v3325_v15 = vld [vmem:[%s6484_s3 + $0x6e0] sm:$0xff]  ;;  %v6651_v22 = vld [vmem:[#allocation24_spill] sm:$0xff] }
  0xfb   : > { %3720 = vmatpush1.bf16.msra.mxu1 %v3719_v29  ;;  %3625 = vmatprep.subr.bf16.mxu0 %v6632_v13  ;;  %v3326_v29 = vld [vmem:[%s6484_s3 + $0x6e8] sm:$0xff]  ;;  %v6652_v7 = vld [vmem:[#allocation16_spill] sm:$0xff] }
  0xfc   : > { %1038 = vmatmul.mubr.f32.gmra.mrb[22].mxu0 %v4847_v5  ;;  %3721 = vmatprep.subr.bf16.mxu1 %v6632_v13  ;;  %v3725_v5 = vpack.c.bf16 %v3322_v53, %v3321_v47  ;;  %v6635_v47 = vld [vmem:[#allocation7_spill] sm:$0xff]  ;;  %v6636_v53 = vld [vmem:[#allocation8_spill] sm:$0xff] }
  0xfd   : > { %1705 = vmatmul.mubr.f32.gmra.mrb[22].mxu1 %v4927_v63  ;;  %1042 = vmatprep.mubr.f32.mxu0 %v4956_v24 }
  0xfe   : > { %1709 = vmatprep.mubr.f32.mxu1 %v4962_v34  ;;  %3627 = vmatpush1.bf16.msra.mxu0 %v3626_v28  ;;  %v3328_v28 = vld [vmem:[%s6484_s3 + $0x6f8] sm:$0xff] }
  0xff   : > { %3723 = vmatpush1.bf16.msra.mxu1 %v3722_v1  ;;  %3628 = vmatprep.subr.bf16.mxu0 %v6632_v13  ;;  %v6633_v1 = vld [vmem:[#allocation6_spill] sm:$0xff] }
 0x100   : > { %1043 = vmatmul.mubr.f32.gmra.mrb[24].mxu0 %v4900_v40  ;;  %3724 = vmatprep.subr.bf16.mxu1 %v6632_v13  ;;  %v3728_v40 = vpack.c.bf16 %v3324_v39, %v3323_v23  ;;  %v6641_v23 = vld [vmem:[#allocation13_spill] sm:$0xff]  ;;  %v6642_v39 = vld [vmem:[#allocation14_spill] sm:$0xff] }
 0x101   : > { %1710 = vmatmul.mubr.f32.gmra.mrb[24].mxu1 %v4956_v24  ;;  %1047 = vmatprep.mubr.f32.mxu0 %v4986_v57 }
 0x102   : > { %1714 = vmatprep.mubr.f32.mxu1 %v4991_v51  ;;  %3630 = vmatpush1.bf16.msra.mxu0 %v3629_v52  ;;  %v6637_v52 = vld [vmem:[#allocation4_spill] sm:$0xff] }
 0x103   : > { %3726 = vmatpush1.bf16.msra.mxu1 %v3725_v5  ;;  %3631 = vmatprep.subr.bf16.mxu0 %v6632_v13  ;;  %v6638_v5 = vld [vmem:[#allocation11_spill] sm:$0xff] }
 0x104   : > { %1048 = vmatmul.mubr.f32.gmra.mrb[26].mxu0 %v4906_v50  ;;  %3727 = vmatprep.subr.bf16.mxu1 %v6632_v13  ;;  %v3731_v50 = vpack.c.bf16 %v3326_v29, %v3325_v15  ;;  %v6647_v15 = vld [vmem:[#allocation19_spill] sm:$0xff]  ;;  %v6648_v29 = vld [vmem:[#allocation20_spill] sm:$0xff] }
 0x105   : > { %1715 = vmatmul.mubr.f32.gmra.mrb[26].mxu1 %v4986_v57  ;;  %1052 = vmatprep.mubr.f32.mxu0 %v5015_v27 }
 0x106   : > { %1719 = vmatprep.mubr.f32.mxu1 %v5018_v43  ;;  %3633 = vmatpush1.bf16.msra.mxu0 %v3632_v44  ;;  %v6643_v44 = vld [vmem:[#allocation9_spill] sm:$0xff] }
 0x107   : > { %3729 = vmatpush1.bf16.msra.mxu1 %v3728_v40  ;;  %3634 = vmatprep.subr.bf16.mxu0 %v6632_v13  ;;  %v6644_v40 = vld [vmem:[#allocation17_spill] sm:$0xff] }
 0x108   : > { %1053 = vmatmul.mubr.f32.gmra.mrb[28].mxu0 %v4959_v31  ;;  %3730 = vmatprep.subr.bf16.mxu1 %v6632_v13  ;;  %v3734_v31 = vpack.c.bf16 %v3328_v28, %v3327_v18  ;;  %v6653_v18 = vld [vmem:[#allocation25_spill] sm:$0xff]  ;;  %v6654_v28 = vld [vmem:[#allocation26_spill] sm:$0xff] }
 0x109   : > { %1720 = vmatmul.mubr.f32.gmra.mrb[28].mxu1 %v5015_v27  ;;  %1057 = vmatprep.mubr.f32.mxu0 %v5033_v59 }
 0x10a   : > { %1724 = vmatprep.mubr.f32.mxu1 %v6633_v1  ;;  %3636 = vmatpush1.bf16.msra.mxu0 %v3635_v60  ;;  %v6649_v60 = vld [vmem:[#allocation15_spill] sm:$0xff] }
 0x10b   : > { %3732 = vmatpush1.bf16.msra.mxu1 %v3731_v50  ;;  %3637 = vmatprep.subr.bf16.mxu0 %v6632_v13  ;;  %v6650_v50 = vld [vmem:[#allocation23_spill] sm:$0xff] }
 0x10c   : > { %1058 = vmatmul.mubr.f32.gmra.mrb[30].mxu0 %v6634_v0  ;;  %3733 = vmatprep.subr.bf16.mxu1 %v6632_v13  ;;  %v6657_v0 = vld [vmem:[#allocation30_spill] sm:$0xff] }
 0x10d   : > { %1725 = vmatmul.mubr.f32.gmra.mrb[30].mxu1 %v5033_v59  ;;  %1062 = vmatprep.mubr.f32.mxu0 %v6635_v47 }
 0x10e   : > { %1729 = vmatprep.mubr.f32.mxu1 %v6636_v53  ;;  %3639 = vmatpush1.bf16.msra.mxu0 %v3638_v3  ;;  %v6655_v3 = vld [vmem:[#allocation21_spill] sm:$0xff] }
 0x10f   : > { %3735 = vmatpush1.bf16.msra.mxu1 %v3734_v31  ;;  %3640 = vmatprep.subr.bf16.mxu0 %v6632_v13  ;;  %v6656_v31 = vld [vmem:[#allocation29_spill] sm:$0xff] }
 0x110   : > { %1063 = vmatmul.mubr.f32.gmra.mrb[32].mxu0 %v6637_v52  ;;  %3736 = vmatprep.subr.bf16.mxu1 %v6632_v13  ;;  %v6658_v52 = vld [vmem:[#allocation22_spill] sm:$0xff] }
 0x111   : > { %1730 = vmatmul.mubr.f32.gmra.mrb[32].mxu1 %v6635_v47  ;;  %1067 = vmatprep.mubr.f32.mxu0 %v6638_v5 }
 0x112   : > { %1734 = vmatprep.mubr.f32.mxu1 %v6639_v4 }
 0x114   : > { %1068 = vmatmul.mubr.f32.gmra.mrb[34].mxu0 %v6640_v32  ;;  %v6659_v32 = vld [vmem:[#allocation31_spill] sm:$0xff] }
 0x115   : > { %1735 = vmatmul.mubr.f32.gmra.mrb[34].mxu1 %v6638_v5  ;;  %1072 = vmatprep.mubr.f32.mxu0 %v6641_v23 }
 0x116   : > { %1739 = vmatprep.mubr.f32.mxu1 %v6642_v39 }
 0x118   : > { %1073 = vmatmul.mubr.f32.gmra.mrb[36].mxu0 %v6643_v44  ;;  %v6660_v44 = vld [vmem:[#allocation32_spill] sm:$0xff] }
 0x119   : > { %1740 = vmatmul.mubr.f32.gmra.mrb[36].mxu1 %v6641_v23  ;;  %1077 = vmatprep.mubr.f32.mxu0 %v6644_v40 }
 0x11a   : > { %1744 = vmatprep.mubr.f32.mxu1 %v6645_v10 }
 0x11c   : > { %1078 = vmatmul.mubr.f32.gmra.mrb[38].mxu0 %v6646_v54  ;;  %v6661_v54 = vld [vmem:[#allocation27_spill] sm:$0xff] }
 0x11d   : > { %1745 = vmatmul.mubr.f32.gmra.mrb[38].mxu1 %v6644_v40  ;;  %1082 = vmatprep.mubr.f32.mxu0 %v6647_v15 }
 0x11e   : > { %1749 = vmatprep.mubr.f32.mxu1 %v6648_v29 }
 0x120   : > { %1083 = vmatmul.mubr.f32.gmra.mrb[40].mxu0 %v6649_v60  ;;  %v6662_v60 = vld [vmem:[#allocation35_spill] sm:$0xff] }
 0x121   : > { %1750 = vmatmul.mubr.f32.gmra.mrb[40].mxu1 %v6647_v15  ;;  %1087 = vmatprep.mubr.f32.mxu0 %v6650_v50 }
 0x122   : > { %1754 = vmatprep.mubr.f32.mxu1 %v6651_v22 }
 0x124   : > { %1088 = vmatmul.mubr.f32.gmra.mrb[42].mxu0 %v6652_v7  ;;  %v6663_v7 = vld [vmem:[#allocation28_spill] sm:$0xff] }
 0x125   : > { %1755 = vmatmul.mubr.f32.gmra.mrb[42].mxu1 %v6650_v50  ;;  %1092 = vmatprep.mubr.f32.mxu0 %v6653_v18 }
 0x126   : > { %1759 = vmatprep.mubr.f32.mxu1 %v6654_v28 }
 0x128   : > { %1093 = vmatmul.mubr.f32.gmra.mrb[44].mxu0 %v6655_v3  ;;  %v6664_v3 = vld [vmem:[#allocation33_spill] sm:$0xff] }
 0x129   : > { %1760 = vmatmul.mubr.f32.gmra.mrb[44].mxu1 %v6653_v18  ;;  %1097 = vmatprep.mubr.f32.mxu0 %v6656_v31 }
 0x12a   : > { %1764 = vmatprep.mubr.f32.mxu1 %v6657_v0 }
 0x12c   : > { %1098 = vmatmul.mubr.f32.gmra.mrb[46].mxu0 %v6658_v52  ;;  %v6665_v52 = vld [vmem:[#allocation40_spill] sm:$0xff] }
 0x12d   : > { %1765 = vmatmul.mubr.f32.gmra.mrb[46].mxu1 %v6656_v31  ;;  %1102 = vmatprep.mubr.f32.mxu0 %v6659_v32 }
 0x12e   : > { %1769 = vmatprep.mubr.f32.mxu1 %v6660_v44 }
 0x130   : > { %1103 = vmatmul.mubr.f32.gmra.mrb[48].mxu0 %v6661_v54  ;;  %v5598_v54 = vld [vmem:[%s5592_s28] sm:$0xff] }
 0x131   : > { %1770 = vmatmul.mubr.f32.gmra.mrb[48].mxu1 %v6659_v32  ;;  %1107 = vmatprep.mubr.f32.mxu0 %v5190_v35  ;;  %6666 = vst [vmem:[#allocation6_spill] sm:$0xff] %v5598_v54  ;;  %v6670_v32 = vld [vmem:[#allocation38_spill] sm:$0xff] }
 0x132   : > { %1774 = vmatprep.mubr.f32.mxu1 %v6662_v60  ;;  %v447_v60 = vld [vmem:[%s5592_s28 + $0x10] sm:$0x3] }
 0x133   : > { %v1291_v44 = vrot.slane %v447_v60, 2 }
 0x134   : > { %1108 = vmatmul.mubr.f32.gmra.mrb[50].mxu0 %v6663_v7  ;;  %v5601_v7 = vld [vmem:[%s5592_s28 + $0x8] sm:$0xff] }
 0x135   : > { %1775 = vmatmul.mubr.f32.gmra.mrb[50].mxu1 %v5190_v35  ;;  %1112 = vmatprep.mubr.f32.mxu0 %v5205_v33  ;;  %6667 = vst [vmem:[#allocation3_spill] sm:$0xff] %v5601_v7 }
 0x136   : > { %1779 = vmatprep.mubr.f32.mxu1 %v5208_v12  ;;  %v617_v12 = vrot.slane %v5601_v7, 1 }
 0x138   : > { %1113 = vmatmul.mubr.f32.gmra.mrb[52].mxu0 %v6664_v3  ;;  %v616_v3 = vrot.slane %v5598_v54, 1 }
 0x139   : > { %1780 = vmatmul.mubr.f32.gmra.mrb[52].mxu1 %v5205_v33  ;;  %1117 = vmatprep.mubr.f32.mxu0 %v5221_v16  ;;  %v1288_v33 = vrot.slane %v5598_v54, 2 }
 0x13a   : > { %1784 = vmatprep.mubr.f32.mxu1 %v6665_v52  ;;  %v1289_v52 = vrot.slane %v5601_v7, 2 }
 0x13c   : > { %1118 = vmatmul.mubr.f32.gmra.mrb[54].mxu0 %v5183_v8  ;;  %v6668_v8 = vld [vmem:[#allocation42_spill] sm:$0xff]  ;;  %v5620_v35 = vsel %vm1175_vm1, %v1288_v33, %v1289_v52 }
 0x13d   : > { %1785 = vmatmul.mubr.f32.gmra.mrb[54].mxu1 %v5221_v16  ;;  %1122 = vmatprep.mubr.f32.mxu0 %v5236_v20  ;;  %v5617_v16 = vsel %vm500_vm0, %v616_v3, %v617_v12  ;;  %6669 = vst [vmem:[#allocation7_spill] sm:$0xff] %v5620_v35  ;;  %v3233_v33 = vld [vmem:[%s6484_s3 + $0x500] sm:$0xff]  ;;  %v3235_v3 = vld [vmem:[%s6484_s3 + $0x510] sm:$0xff] }
 0x13e   : > { %1789 = vmatprep.mubr.f32.mxu1 %v5239_v55  ;;  %v619_v55 = vrot.slane %v447_v60, 1  ;;  %v6672_v60 = vld [vmem:[#allocation2_spill] sm:$0xff] }
 0x140   : > { %1123 = vmatmul.mubr.f32.gmra.mrb[56].mxu0 %v5211_v56  ;;  %v5627_v56 = vsel %vm500_vm0, %v617_v12, %v619_v55  ;;  %v3234_v12 = vld [vmem:[%s6484_s3 + $0x508] sm:$0xff]  ;;  %v3329_v55 = vld [vmem:[%s6484_s3 + $0x700] sm:$0xff] }
 0x141   : > { %1790 = vmatmul.mubr.f32.gmra.mrb[56].mxu1 %v5236_v20  ;;  %1127 = vmatprep.mubr.f32.mxu0 %v5246_v49 }
 0x142   : > { %1794 = vmatprep.mubr.f32.mxu1 %v6668_v8  ;;  %v5630_v8 = vsel %vm1175_vm1, %v1289_v52, %v1291_v44  ;;  %v3641_v44 = vpack.c.bf16 %v3234_v12, %v3233_v33  ;;  %v3332_v33 = vld [vmem:[%s6484_s3 + $0x718] sm:$0xff] }
 0x143   : > { %6671 = vst [vmem:[#allocation8_spill] sm:$0xff] %v5630_v8 }
 0x144   : > { %1128 = vmatmul.mubr.f32.gmra.mrb[58].mxu0 %v6670_v32  ;;  %v3330_v32 = vld [vmem:[%s6484_s3 + $0x708] sm:$0xff] }
 0x145   : > { %1795 = vmatmul.mubr.f32.gmra.mrb[58].mxu1 %v5246_v49  ;;  %1132 = vmatprep.mubr.f32.mxu0 %v5617_v16  ;;  %v3737_v52 = vpack.c.bf16 %v3330_v32, %v3329_v55  ;;  %v3237_v55 = vld [vmem:[%s6484_s3 + $0x520] sm:$0xff]  ;;  %v3238_v32 = vld [vmem:[%s6484_s3 + $0x528] sm:$0xff] }
 0x146   : > { %1799 = vmatprep.mubr.f32.mxu1 %v5620_v35 }
 0x148   : > { %1133 = vmatmul.mubr.f32.gmra.mrb[60].mxu0 %v5598_v54  ;;  %v4196_v54 = vld [vmem:[%s4393_s6 + $0x18] sm:$0xff] }
 0x149   : > { %1800 = vmatmul.mubr.f32.gmra.mrb[60].mxu1 %v5617_v16  ;;  %1137 = vmatprep.mubr.f32.mxu0 %v5627_v56 }
 0x14a   : > { %1804 = vmatprep.mubr.f32.mxu1 %v5630_v8  ;;  %v3236_v8 = vld [vmem:[%s6484_s3 + $0x518] sm:$0xff] }
 0x14b   : > { %v3644_v12 = vpack.c.bf16 %v3236_v8, %v3235_v3  ;;  %v3647_v8 = vpack.c.bf16 %v3238_v32, %v3237_v55  ;;  %v3335_v3 = vld [vmem:[%s6484_s3 + $0x730] sm:$0xff]  ;;  %v3241_v55 = vld [vmem:[%s6484_s3 + $0x540] sm:$0xff]  ;;  %v3242_v32 = vld [vmem:[%s6484_s3 + $0x548] sm:$0xff] }
 0x14c   : > { %1138 = vmatmul.mubr.f32.gmra.mrb[62].mxu0 %v5601_v7  ;;  %v3331_v7 = vld [vmem:[%s6484_s3 + $0x710] sm:$0xff] }
 0x14d   : > { %1805 = vmatmul.mubr.f32.gmra.mrb[62].mxu1 %v5627_v56  ;;  %1982 = vmatprep.mubr.f32.mxu0 %v4603_v41 }
 0x14e   : > { %2537 = vmatprep.mubr.f32.mxu1 %v6672_v60  ;;  %v3239_v60 = vld [vmem:[%s6484_s3 + $0x530] sm:$0xff] }
 0x150   : > { %1983 = vmatmul.mubr.f32.vlgmr.msra.gmra.mrb[64].mxu0 %v4196_v54  ;;  %v3740_v54 = vpack.c.bf16 %v3332_v33, %v3331_v7  ;;  %v3334_v7 = vld [vmem:[%s6484_s3 + $0x728] sm:$0xff]  ;;  %v3336_v33 = vld [vmem:[%s6484_s3 + $0x738] sm:$0xff] }
 0x151   : > { %2538 = vmatmul.mubr.f32.vlgmr.msra.gmra.mrb[64].mxu1 %v4603_v41  ;;  %3642 = vmatpush1.bf16.msra.mxu0 %v3641_v44  ;;  %v4197_v41 = vld [vmem:[%s4393_s6 + $0x20] sm:$0xff] }
 0x152   : > { %3738 = vmatpush1.bf16.msra.mxu1 %v3737_v52  ;;  %1987 = vmatprep.mubr.f32.mxu0 %v4632_v14  ;;  %v3240_v52 = vld [vmem:[%s6484_s3 + $0x538] sm:$0xff] }
 0x153   : > { %2542 = vmatprep.mubr.f32.mxu1 %v4637_v17  ;;  %3643 = vmatprep.subr.bf16.mxu0 %v6632_v13  ;;  %v3333_v17 = vld [vmem:[%s6484_s3 + $0x720] sm:$0xff] }
 0x154   : > { %1988 = vmatmul.mubr.f32.gmra.mrb[66].mxu0 %v4197_v41  ;;  %3739 = vmatprep.subr.bf16.mxu1 %v6632_v13  ;;  %v3743_v44 = vpack.c.bf16 %v3334_v7, %v3333_v17  ;;  %v5715_v41 = vld [vmem:[%s4393_s6 + $0x38] sm:$0xff]  ;;  %v3337_v17 = vld [vmem:[%s6484_s3 + $0x740] sm:$0xff]  ;;  %v3338_v7 = vld [vmem:[%s6484_s3 + $0x748] sm:$0xff] }
 0x155   : > { %2543 = vmatmul.mubr.f32.gmra.mrb[66].mxu1 %v4632_v14  ;;  %1992 = vmatprep.mubr.f32.mxu0 %v4661_v26  ;;  %v5694_v14 = vld [vmem:[%s4393_s6 + $0x30] sm:$0xff] }
 0x156   : > { %2547 = vmatprep.mubr.f32.mxu1 %v4667_v30  ;;  %3645 = vmatpush1.bf16.msra.mxu0 %v3644_v12  ;;  %v3650_v12 = vpack.c.bf16 %v3240_v52, %v3239_v60  ;;  %v3243_v60 = vld [vmem:[%s6484_s3 + $0x550] sm:$0xff]  ;;  %v3244_v52 = vld [vmem:[%s6484_s3 + $0x558] sm:$0xff] }
 0x157   : > { %3741 = vmatpush1.bf16.msra.mxu1 %v3740_v54  ;;  %3646 = vmatprep.subr.bf16.mxu0 %v6632_v13  ;;  %v3746_v54 = vpack.c.bf16 %v3336_v33, %v3335_v3  ;;  %v5736_v3 = vld [vmem:[%s4393_s6 + $0x48] sm:$0xff]  ;;  %v3339_v33 = vld [vmem:[%s6484_s3 + $0x750] sm:$0xff] }
 0x158   : > { %1993 = vmatmul.mubr.f32.gmra.mrb[68].mxu0 %v5694_v14  ;;  %3742 = vmatprep.subr.bf16.mxu1 %v6632_v13 }
 0x159   : > { %2548 = vmatmul.mubr.f32.gmra.mrb[68].mxu1 %v4661_v26  ;;  %1997 = vmatprep.mubr.f32.mxu0 %v4691_v38 }
 0x15a   : > { %2552 = vmatprep.mubr.f32.mxu1 %v4696_v45  ;;  %3648 = vmatpush1.bf16.msra.mxu0 %v3647_v8  ;;  %v3653_v8 = vpack.c.bf16 %v3242_v32, %v3241_v55  ;;  %v3245_v32 = vld [vmem:[%s6484_s3 + $0x560] sm:$0xff] }
 0x15b   : > { %3744 = vmatpush1.bf16.msra.mxu1 %v3743_v44  ;;  %3649 = vmatprep.subr.bf16.mxu0 %v6632_v13  ;;  %v3749_v44 = vpack.c.bf16 %v3338_v7, %v3337_v17  ;;  %v3246_v17 = vld [vmem:[%s6484_s3 + $0x568] sm:$0xff]  ;;  %v5757_v7 = vld [vmem:[%s4393_s6 + $0x50] sm:$0xff] }
 0x15c   : > { %1998 = vmatmul.mubr.f32.gmra.mrb[70].mxu0 %v5715_v41  ;;  %3745 = vmatprep.subr.bf16.mxu1 %v6632_v13  ;;  %6673 = vst [vmem:[#allocation4_spill] sm:$0xff] %v5757_v7 }
 0x15d   : > { %2553 = vmatmul.mubr.f32.gmra.mrb[70].mxu1 %v4691_v38  ;;  %2002 = vmatprep.mubr.f32.mxu0 %v4720_v58 }
 0x15e   : > { %2557 = vmatprep.mubr.f32.mxu1 %v4726_v62  ;;  %3651 = vmatpush1.bf16.msra.mxu0 %v3650_v12  ;;  %v3340_v12 = vld [vmem:[%s6484_s3 + $0x758] sm:$0xff] }
 0x15f   : > { %3747 = vmatpush1.bf16.msra.mxu1 %v3746_v54  ;;  %3652 = vmatprep.subr.bf16.mxu0 %v6632_v13  ;;  %v3656_v54 = vpack.c.bf16 %v3244_v52, %v3243_v60  ;;  %v3752_v55 = vpack.c.bf16 %v3340_v12, %v3339_v33  ;;  %v3659_v60 = vpack.c.bf16 %v3246_v17, %v3245_v32  ;;  %v3247_v33 = vld [vmem:[%s6484_s3 + $0x570] sm:$0xff]  ;;  %v3248_v12 = vld [vmem:[%s6484_s3 + $0x578] sm:$0xff] }
 0x160   : > { %2003 = vmatmul.mubr.f32.gmra.mrb[72].mxu0 %v5736_v3  ;;  %3748 = vmatprep.subr.bf16.mxu1 %v6632_v13  ;;  %v3662_v32 = vpack.c.bf16 %v3248_v12, %v3247_v33 }
 0x161   : > { %2558 = vmatmul.mubr.f32.gmra.mrb[72].mxu1 %v4720_v58  ;;  %2007 = vmatprep.mubr.f32.mxu0 %v4750_v6 }
 0x162   : > { %2562 = vmatprep.mubr.f32.mxu1 %v4755_v11  ;;  %3654 = vmatpush1.bf16.msra.mxu0 %v3653_v8  ;;  %v3341_v8 = vld [vmem:[%s6484_s3 + $0x760] sm:$0xff] }
 0x163   : > { %3750 = vmatpush1.bf16.msra.mxu1 %v3749_v44  ;;  %3655 = vmatprep.subr.bf16.mxu0 %v6632_v13  ;;  %v3342_v44 = vld [vmem:[%s6484_s3 + $0x768] sm:$0xff] }
 0x164   : > { %2008 = vmatmul.mubr.f32.gmra.mrb[74].mxu0 %v5757_v7  ;;  %3751 = vmatprep.subr.bf16.mxu1 %v6632_v13  ;;  %v3755_v52 = vpack.c.bf16 %v3342_v44, %v3341_v8  ;;  %v5778_v7 = vld [vmem:[%s4393_s6 + $0x60] sm:$0xff]  ;;  %v3250_v44 = vld [vmem:[%s6484_s3 + $0x588] sm:$0xff] }
 0x165   : > { %2563 = vmatmul.mubr.f32.gmra.mrb[74].mxu1 %v4750_v6  ;;  %2012 = vmatprep.mubr.f32.mxu0 %v4779_v21  ;;  %6674 = vst [vmem:[#allocation11_spill] sm:$0xff] %v5778_v7  ;;  %v3249_v8 = vld [vmem:[%s6484_s3 + $0x580] sm:$0xff] }
 0x166   : > { %2567 = vmatprep.mubr.f32.mxu1 %v4785_v25  ;;  %3657 = vmatpush1.bf16.msra.mxu0 %v3656_v54  ;;  %v3343_v54 = vld [vmem:[%s6484_s3 + $0x770] sm:$0xff]  ;;  %v3665_v33 = vpack.c.bf16 %v3250_v44, %v3249_v8 }
 0x167   : > { %3753 = vmatpush1.bf16.msra.mxu1 %v3752_v55  ;;  %3658 = vmatprep.subr.bf16.mxu0 %v6632_v13  ;;  %v3344_v55 = vld [vmem:[%s6484_s3 + $0x778] sm:$0xff] }
 0x168   : > { %2013 = vmatmul.mubr.f32.gmra.mrb[76].mxu0 %v5778_v7  ;;  %3754 = vmatprep.subr.bf16.mxu1 %v6632_v13  ;;  %v3758_v17 = vpack.c.bf16 %v3344_v55, %v3343_v54  ;;  %v5799_v7 = vld [vmem:[%s4393_s6 + $0x68] sm:$0xff]  ;;  %v3251_v54 = vld [vmem:[%s6484_s3 + $0x590] sm:$0xff]  ;;  %v3252_v55 = vld [vmem:[%s6484_s3 + $0x598] sm:$0xff] }
 0x169   : > { %2568 = vmatmul.mubr.f32.gmra.mrb[76].mxu1 %v4779_v21  ;;  %2017 = vmatprep.mubr.f32.mxu0 %v4809_v37  ;;  %6675 = vst [vmem:[#allocation12_spill] sm:$0xff] %v5799_v7  ;;  %v3668_v8 = vpack.c.bf16 %v3252_v55, %v3251_v54 }
 0x16a   : > { %2572 = vmatprep.mubr.f32.mxu1 %v4814_v46  ;;  %3660 = vmatpush1.bf16.msra.mxu0 %v3659_v60  ;;  %v3345_v60 = vld [vmem:[%s6484_s3 + $0x780] sm:$0xff] }
 0x16b   : > { %3756 = vmatpush1.bf16.msra.mxu1 %v3755_v52  ;;  %3661 = vmatprep.subr.bf16.mxu0 %v6632_v13  ;;  %v3346_v52 = vld [vmem:[%s6484_s3 + $0x788] sm:$0xff] }
 0x16c   : > { %2018 = vmatmul.mubr.f32.gmra.mrb[78].mxu0 %v5799_v7  ;;  %3757 = vmatprep.subr.bf16.mxu1 %v6632_v13  ;;  %v3761_v12 = vpack.c.bf16 %v3346_v52, %v3345_v60  ;;  %v5820_v7 = vld [vmem:[%s4393_s6 + $0x78] sm:$0xff]  ;;  %v3253_v60 = vld [vmem:[%s6484_s3 + $0x5a0] sm:$0xff]  ;;  %v3254_v52 = vld [vmem:[%s6484_s3 + $0x5a8] sm:$0xff] }
 0x16d   : > { %2573 = vmatmul.mubr.f32.gmra.mrb[78].mxu1 %v4809_v37  ;;  %2022 = vmatprep.mubr.f32.mxu0 %v4838_v61  ;;  %6676 = vst [vmem:[#allocation5_spill] sm:$0xff] %v5820_v7  ;;  %v3671_v54 = vpack.c.bf16 %v3254_v52, %v3253_v60 }
 0x16e   : > { %2577 = vmatprep.mubr.f32.mxu1 %v4844_v2  ;;  %3663 = vmatpush1.bf16.msra.mxu0 %v3662_v32  ;;  %v3347_v32 = vld [vmem:[%s6484_s3 + $0x790] sm:$0xff] }
 0x16f   : > { %3759 = vmatpush1.bf16.msra.mxu1 %v3758_v17  ;;  %3664 = vmatprep.subr.bf16.mxu0 %v6632_v13  ;;  %v3348_v17 = vld [vmem:[%s6484_s3 + $0x798] sm:$0xff] }
 0x170   : > { %2023 = vmatmul.mubr.f32.gmra.mrb[80].mxu0 %v5820_v7  ;;  %3760 = vmatprep.subr.bf16.mxu1 %v6632_v13  ;;  %v3764_v44 = vpack.c.bf16 %v3348_v17, %v3347_v32  ;;  %v5841_v7 = vld [vmem:[%s4393_s6 + $0x80] sm:$0xff]  ;;  %v3255_v32 = vld [vmem:[%s6484_s3 + $0x5b0] sm:$0xff]  ;;  %v3256_v17 = vld [vmem:[%s6484_s3 + $0x5b8] sm:$0xff] }
 0x171   : > { %2578 = vmatmul.mubr.f32.gmra.mrb[80].mxu1 %v4838_v61  ;;  %2027 = vmatprep.mubr.f32.mxu0 %v4868_v42  ;;  %6677 = vst [vmem:[#allocation13_spill] sm:$0xff] %v5841_v7  ;;  %v3674_v60 = vpack.c.bf16 %v3256_v17, %v3255_v32 }
 0x172   : > { %2582 = vmatprep.mubr.f32.mxu1 %v4873_v19  ;;  %3666 = vmatpush1.bf16.msra.mxu0 %v3665_v33  ;;  %v3349_v33 = vld [vmem:[%s6484_s3 + $0x7a0] sm:$0xff] }
 0x173   : > { %3762 = vmatpush1.bf16.msra.mxu1 %v3761_v12  ;;  %3667 = vmatprep.subr.bf16.mxu0 %v6632_v13  ;;  %v3350_v12 = vld [vmem:[%s6484_s3 + $0x7a8] sm:$0xff] }
 0x174   : > { %2028 = vmatmul.mubr.f32.gmra.mrb[82].mxu0 %v5841_v7  ;;  %3763 = vmatprep.subr.bf16.mxu1 %v6632_v13  ;;  %v3767_v55 = vpack.c.bf16 %v3350_v12, %v3349_v33  ;;  %v5862_v7 = vld [vmem:[%s4393_s6 + $0x90] sm:$0xff]  ;;  %v3257_v33 = vld [vmem:[%s6484_s3 + $0x5c0] sm:$0xff]  ;;  %v3258_v12 = vld [vmem:[%s6484_s3 + $0x5c8] sm:$0xff] }
 0x175   : > { %2583 = vmatmul.mubr.f32.gmra.mrb[82].mxu1 %v4868_v42  ;;  %2032 = vmatprep.mubr.f32.mxu0 %v4897_v36  ;;  %6678 = vst [vmem:[#allocation14_spill] sm:$0xff] %v5862_v7  ;;  %v3677_v32 = vpack.c.bf16 %v3258_v12, %v3257_v33 }
 0x176   : > { %2587 = vmatprep.mubr.f32.mxu1 %v4903_v48  ;;  %3669 = vmatpush1.bf16.msra.mxu0 %v3668_v8  ;;  %v3351_v8 = vld [vmem:[%s6484_s3 + $0x7b0] sm:$0xff] }
 0x177   : > { %3765 = vmatpush1.bf16.msra.mxu1 %v3764_v44  ;;  %3670 = vmatprep.subr.bf16.mxu0 %v6632_v13  ;;  %v3352_v44 = vld [vmem:[%s6484_s3 + $0x7b8] sm:$0xff] }
 0x178   : > { %2033 = vmatmul.mubr.f32.gmra.mrb[84].mxu0 %v5862_v7  ;;  %3766 = vmatprep.subr.bf16.mxu1 %v6632_v13  ;;  %v3770_v52 = vpack.c.bf16 %v3352_v44, %v3351_v8  ;;  %v5883_v7 = vld [vmem:[%s4393_s6 + $0x98] sm:$0xff]  ;;  %v3259_v8 = vld [vmem:[%s6484_s3 + $0x5d0] sm:$0xff] }
 0x179   : > { %2588 = vmatmul.mubr.f32.gmra.mrb[84].mxu1 %v4897_v36  ;;  %2037 = vmatprep.mubr.f32.mxu0 %v4927_v63  ;;  %6679 = vst [vmem:[#allocation9_spill] sm:$0xff] %v5883_v7  ;;  %v3260_v44 = vld [vmem:[%s6484_s3 + $0x5d8] sm:$0xff] }
 0x17a   : > { %2592 = vmatprep.mubr.f32.mxu1 %v4932_v9  ;;  %3672 = vmatpush1.bf16.msra.mxu0 %v3671_v54  ;;  %v3353_v54 = vld [vmem:[%s6484_s3 + $0x7c0] sm:$0xff]  ;;  %v3680_v33 = vpack.c.bf16 %v3260_v44, %v3259_v8 }
 0x17b   : > { %3768 = vmatpush1.bf16.msra.mxu1 %v3767_v55  ;;  %3673 = vmatprep.subr.bf16.mxu0 %v6632_v13  ;;  %v3354_v55 = vld [vmem:[%s6484_s3 + $0x7c8] sm:$0xff] }
 0x17c   : > { %2038 = vmatmul.mubr.f32.gmra.mrb[86].mxu0 %v5883_v7  ;;  %3769 = vmatprep.subr.bf16.mxu1 %v6632_v13  ;;  %v3773_v17 = vpack.c.bf16 %v3354_v55, %v3353_v54  ;;  %v5904_v7 = vld [vmem:[%s4393_s6 + $0xa8] sm:$0xff]  ;;  %v3261_v54 = vld [vmem:[%s6484_s3 + $0x5e0] sm:$0xff] }
 0x17d   : > { %2593 = vmatmul.mubr.f32.gmra.mrb[86].mxu1 %v4927_v63  ;;  %2042 = vmatprep.mubr.f32.mxu0 %v4956_v24  ;;  %6680 = vst [vmem:[#allocation17_spill] sm:$0xff] %v5904_v7  ;;  %v3262_v55 = vld [vmem:[%s6484_s3 + $0x5e8] sm:$0xff] }
 0x17e   : > { %2597 = vmatprep.mubr.f32.mxu1 %v4962_v34  ;;  %3675 = vmatpush1.bf16.msra.mxu0 %v3674_v60  ;;  %v3355_v60 = vld [vmem:[%s6484_s3 + $0x7d0] sm:$0xff]  ;;  %v3683_v8 = vpack.c.bf16 %v3262_v55, %v3261_v54 }
 0x17f   : > { %3771 = vmatpush1.bf16.msra.mxu1 %v3770_v52  ;;  %3676 = vmatprep.subr.bf16.mxu0 %v6632_v13  ;;  %v3356_v52 = vld [vmem:[%s6484_s3 + $0x7d8] sm:$0xff] }
 0x180   : > { %2043 = vmatmul.mubr.f32.gmra.mrb[88].mxu0 %v5904_v7  ;;  %3772 = vmatprep.subr.bf16.mxu1 %v6632_v13  ;;  %v3776_v12 = vpack.c.bf16 %v3356_v52, %v3355_v60  ;;  %v5925_v7 = vld [vmem:[%s4393_s6 + $0xb0] sm:$0xff]  ;;  %v3264_v52 = vld [vmem:[%s6484_s3 + $0x5f8] sm:$0xff] }
 0x181   : > { %2598 = vmatmul.mubr.f32.gmra.mrb[88].mxu1 %v4956_v24  ;;  %2047 = vmatprep.mubr.f32.mxu0 %v4986_v57  ;;  %6681 = vst [vmem:[#allocation18_spill] sm:$0xff] %v5925_v7  ;;  %v3263_v60 = vld [vmem:[%s6484_s3 + $0x5f0] sm:$0xff] }
 0x182   : > { %2602 = vmatprep.mubr.f32.mxu1 %v4991_v51  ;;  %3678 = vmatpush1.bf16.msra.mxu0 %v3677_v32  ;;  %v3357_v32 = vld [vmem:[%s6484_s3 + $0x7e0] sm:$0xff]  ;;  %v3686_v54 = vpack.c.bf16 %v3264_v52, %v3263_v60  ;;  %v5997_v60 = vld [vmem:[%s4393_s6 + $0x108] sm:$0xff] }
 0x183   : > { %3774 = vmatpush1.bf16.msra.mxu1 %v3773_v17  ;;  %3679 = vmatprep.subr.bf16.mxu0 %v6632_v13  ;;  %v3358_v17 = vld [vmem:[%s6484_s3 + $0x7e8] sm:$0xff]  ;;  %6683 = vst [vmem:[#allocation15_spill] sm:$0xff] %v5997_v60  ;;  %v6005_v52 = vld [vmem:[%s6485_s4] ss:$0 sm:$0xff] }
 0x184   : > { %2048 = vmatmul.mubr.f32.gmra.mrb[90].mxu0 %v5925_v7  ;;  %3775 = vmatprep.subr.bf16.mxu1 %v6632_v13  ;;  %v3779_v44 = vpack.c.bf16 %v3358_v17, %v3357_v32  ;;  %v5946_v7 = vld [vmem:[%s4393_s6 + $0xc0] sm:$0xff]  ;;  %v5961_v32 = vld [vmem:[%s4393_s6 + $0xc8] sm:$0xff]  ;;  %v5969_v17 = vld [vmem:[%s4393_s6 + $0xd8] sm:$0xff] }
 0x185   : > { %2603 = vmatmul.mubr.f32.gmra.mrb[90].mxu1 %v4986_v57  ;;  %2052 = vmatprep.mubr.f32.mxu0 %v5015_v27 }
 0x186   : > { %2607 = vmatprep.mubr.f32.mxu1 %v5018_v43  ;;  %3681 = vmatpush1.bf16.msra.mxu0 %v3680_v33  ;;  %v3359_v33 = vld [vmem:[%s6484_s3 + $0x7f0] sm:$0xff] }
 0x187   : > { %3777 = vmatpush1.bf16.msra.mxu1 %v3776_v12  ;;  %3682 = vmatprep.subr.bf16.mxu0 %v6632_v13  ;;  %v3360_v12 = vld [vmem:[%s6484_s3 + $0x7f8] sm:$0xff] }
 0x188   : > { %2053 = vmatmul.mubr.f32.gmra.mrb[92].mxu0 %v5946_v7  ;;  %3778 = vmatprep.subr.bf16.mxu1 %v6632_v13  ;;  %v3782_v55 = vpack.c.bf16 %v3360_v12, %v3359_v33 }
 0x189   : > { %2608 = vmatmul.mubr.f32.gmra.mrb[92].mxu1 %v5015_v27  ;;  %2057 = vmatprep.mubr.f32.mxu0 %v5033_v59 }
 0x18a   : > { %2612 = vmatprep.mubr.f32.mxu1 %v6633_v1  ;;  %3684 = vmatpush1.bf16.msra.mxu0 %v3683_v8  ;;  %v5983_v8 = vld [vmem:[%s4393_s6 + $0xf0] sm:$0xff] }
 0x18b   : > { %3780 = vmatpush1.bf16.msra.mxu1 %v3779_v44  ;;  %3685 = vmatprep.subr.bf16.mxu0 %v6632_v13  ;;  %v5990_v44 = vld [vmem:[%s4393_s6 + $0xf8] sm:$0xff] }
 0x18c   : > { %2058 = vmatmul.mubr.f32.gmra.mrb[94].mxu0 %v5961_v32  ;;  %3781 = vmatprep.subr.bf16.mxu1 %v6632_v13  ;;  %v5976_v13 = vld [vmem:[%s4393_s6 + $0xe0] sm:$0xff]  ;;  %6682 = vst [vmem:[#allocation10_spill] sm:$0xff] %v5990_v44 }
 0x18d   : > { %2613 = vmatmul.mubr.f32.gmra.mrb[94].mxu1 %v5033_v59  ;;  %2062 = vmatprep.mubr.f32.mxu0 %v6635_v47 }
 0x18e   : > { %2617 = vmatprep.mubr.f32.mxu1 %v6636_v53  ;;  %3687 = vmatpush1.bf16.msra.mxu0 %v3686_v54 }
 0x18f   : > { %3783 = vmatpush1.bf16.msra.mxu1 %v3782_v55 }
 0x190   : > { %2063 = vmatmul.mubr.f32.gmra.mrb[96].mxu0 %v5969_v17 }
 0x191   : > { %2618 = vmatmul.mubr.f32.gmra.mrb[96].mxu1 %v6635_v47  ;;  %2067 = vmatprep.mubr.f32.mxu0 %v6638_v5 }
 0x192   : > { %2622 = vmatprep.mubr.f32.mxu1 %v6639_v4 }
 0x194   : > { %2068 = vmatmul.mubr.f32.gmra.mrb[98].mxu0 %v5976_v13 }
 0x195   : > { %2623 = vmatmul.mubr.f32.gmra.mrb[98].mxu1 %v6638_v5  ;;  %2072 = vmatprep.mubr.f32.mxu0 %v6641_v23 }
 0x196   : > { %2627 = vmatprep.mubr.f32.mxu1 %v6642_v39 }
 0x198   : > { %2073 = vmatmul.mubr.f32.gmra.mrb[100].mxu0 %v5983_v8 }
 0x199   : > { %2628 = vmatmul.mubr.f32.gmra.mrb[100].mxu1 %v6641_v23  ;;  %2077 = vmatprep.mubr.f32.mxu0 %v6644_v40 }
 0x19a   : > { %2632 = vmatprep.mubr.f32.mxu1 %v6645_v10 }
 0x19c   : > { %2078 = vmatmul.mubr.f32.gmra.mrb[102].mxu0 %v5990_v44 }
 0x19d   : > { %2633 = vmatmul.mubr.f32.gmra.mrb[102].mxu1 %v6644_v40  ;;  %2082 = vmatprep.mubr.f32.mxu0 %v6647_v15 }
 0x19e   : > { %2637 = vmatprep.mubr.f32.mxu1 %v6648_v29 }
 0x1a0   : > { %2083 = vmatmul.mubr.f32.gmra.mrb[104].mxu0 %v5997_v60  ;;  %v6016_v60 = vld [vmem:[%s4393_s6 + $0x110] sm:$0xff] }
 0x1a1   : > { %2638 = vmatmul.mubr.f32.gmra.mrb[104].mxu1 %v6647_v15  ;;  %2087 = vmatprep.mubr.f32.mxu0 %v6650_v50  ;;  %6684 = vst [vmem:[#allocation23_spill] sm:$0xff] %v6016_v60 }
 0x1a2   : > { %2642 = vmatprep.mubr.f32.mxu1 %v6651_v22 }
 0x1a3   : > { %v984_v33 = vpop.f32.mrb[0].mxu0 }
 0x1a4   : > { %v3784_v12 = vadd.f32 %v6005_v52, %v984_v33  ;;  %v1651_v54 = vpop.f32.mrb[0].mxu1  ;;  %v986_v55 = vpop.f32.mrb[1].mxu0  ;;  %2088 = vmatmul.mubr.f32.gmra.mrb[106].mxu0 %v6016_v60  ;;  %v6027_v60 = vld [vmem:[%s4393_s6 + $0x120] sm:$0xff] }
 0x1a5   : > { %v3816_v29 = vadd.f32 %v6005_v52, %v1651_v54  ;;  %v1653_v22 = vpop.f32.mrb[1].mxu1  ;;  %2643 = vmatmul.mubr.f32.gmra.mrb[106].mxu1 %v6650_v50  ;;  %2092 = vmatprep.mubr.f32.mxu0 %v6653_v18  ;;  %6685 = vst [vmem:[#allocation16_spill] sm:$0xff] %v6027_v60 }
 0x1a6   : > { %1143 = vst [vmem:[%s6012_s12] sm:$0xff] %v3784_v12  ;;  %2647 = vmatprep.mubr.f32.mxu1 %v6654_v28 }
 0x1a7   : > { %3169 = vst [vmem:[%s6012_s12 + $0x100] sm:$0xff] %v3816_v29  ;;  %v989_v33 = vpop.f32.mrb[2].mxu0 }
 0x1a8   : > { %v3785_v55 = vadd.f32 %v6005_v52, %v989_v33  ;;  %v1656_v15 = vpop.f32.mrb[2].mxu1  ;;  %v991_v44 = vpop.f32.mrb[3].mxu0  ;;  %2093 = vmatmul.mubr.f32.gmra.mrb[108].mxu0 %v6027_v60  ;;  %v6038_v60 = vld [vmem:[%s4393_s6 + $0x128] sm:$0xff] }
 0x1a9   : > { %v3817_v22 = vadd.f32 %v6005_v52, %v1656_v15  ;;  %v1658_v54 = vpop.f32.mrb[3].mxu1  ;;  %2648 = vmatmul.mubr.f32.gmra.mrb[108].mxu1 %v6653_v18  ;;  %2097 = vmatprep.mubr.f32.mxu0 %v6656_v31  ;;  %6686 = vst [vmem:[#allocation25_spill] sm:$0xff] %v6038_v60 }
 0x1aa   : > { %1144 = vst [vmem:[%s6012_s12 + $0x8] sm:$0xff] %v3785_v55  ;;  %2652 = vmatprep.mubr.f32.mxu1 %v6657_v0  ;;  %v6687_v55 = vld [vmem:[#allocation31_spill] sm:$0xff] }
 0x1ab   : > { %3170 = vst [vmem:[%s6012_s12 + $0x108] sm:$0xff] %v3817_v22  ;;  %v994_v29 = vpop.f32.mrb[4].mxu0  ;;  %v6688_v22 = vld [vmem:[#allocation32_spill] sm:$0xff] }
 0x1ac   : > { %v3786_v44 = vadd.f32 %v6005_v52, %v994_v29  ;;  %v1661_v12 = vpop.f32.mrb[4].mxu1  ;;  %v996_v33 = vpop.f32.mrb[5].mxu0  ;;  %2098 = vmatmul.mubr.f32.gmra.mrb[110].mxu0 %v6038_v60  ;;  %v6049_v60 = vld [vmem:[%s4393_s6 + $0x138] sm:$0xff] }
 0x1ad   : > { %v3818_v15 = vadd.f32 %v6005_v52, %v1661_v12  ;;  %v1663_v54 = vpop.f32.mrb[5].mxu1  ;;  %2653 = vmatmul.mubr.f32.gmra.mrb[110].mxu1 %v6656_v31  ;;  %2102 = vmatprep.mubr.f32.mxu0 %v6687_v55  ;;  %6689 = vst [vmem:[#allocation21_spill] sm:$0xff] %v6049_v60 }
 0x1ae   : > { %1145 = vst [vmem:[%s6012_s12 + $0x10] sm:$0xff] %v3786_v44  ;;  %2657 = vmatprep.mubr.f32.mxu1 %v6688_v22  ;;  %v6690_v44 = vld [vmem:[#allocation34_spill] sm:$0xff] }
 0x1af   : > { %3171 = vst [vmem:[%s6012_s12 + $0x110] sm:$0xff] %v3818_v15  ;;  %v999_v29 = vpop.f32.mrb[6].mxu0  ;;  %v6691_v15 = vld [vmem:[#allocation35_spill] sm:$0xff] }
 0x1b0   : > { %v3787_v33 = vadd.f32 %v6005_v52, %v999_v29  ;;  %v1666_v0 = vpop.f32.mrb[6].mxu1  ;;  %v1001_v28 = vpop.f32.mrb[7].mxu0  ;;  %2103 = vmatmul.mubr.f32.gmra.mrb[112].mxu0 %v6049_v60  ;;  %v6060_v60 = vld [vmem:[%s4393_s6 + $0x140] sm:$0xff] }
 0x1b1   : > { %v3819_v12 = vadd.f32 %v6005_v52, %v1666_v0  ;;  %v1668_v54 = vpop.f32.mrb[7].mxu1  ;;  %2658 = vmatmul.mubr.f32.gmra.mrb[112].mxu1 %v6687_v55  ;;  %2107 = vmatprep.mubr.f32.mxu0 %v6690_v44  ;;  %6692 = vst [vmem:[#allocation22_spill] sm:$0xff] %v6060_v60 }
 0x1b2   : > { %1146 = vst [vmem:[%s6012_s12 + $0x18] sm:$0xff] %v3787_v33  ;;  %2662 = vmatprep.mubr.f32.mxu1 %v6691_v15  ;;  %v6693_v33 = vld [vmem:[#allocation36_spill] sm:$0xff] }
 0x1b3   : > { %3172 = vst [vmem:[%s6012_s12 + $0x118] sm:$0xff] %v3819_v12  ;;  %v1004_v29 = vpop.f32.mrb[8].mxu0  ;;  %v6694_v12 = vld [vmem:[#allocation37_spill] sm:$0xff] }
 0x1b4   : > { %v3788_v28 = vadd.f32 %v6005_v52, %v1004_v29  ;;  %v1671_v22 = vpop.f32.mrb[8].mxu1  ;;  %v1006_v31 = vpop.f32.mrb[9].mxu0  ;;  %2108 = vmatmul.mubr.f32.gmra.mrb[114].mxu0 %v6060_v60  ;;  %v6071_v60 = vld [vmem:[%s4393_s6 + $0x150] sm:$0xff] }
 0x1b5   : > { %v3820_v0 = vadd.f32 %v6005_v52, %v1671_v22  ;;  %v1673_v54 = vpop.f32.mrb[9].mxu1  ;;  %2663 = vmatmul.mubr.f32.gmra.mrb[114].mxu1 %v6690_v44  ;;  %2112 = vmatprep.mubr.f32.mxu0 %v6693_v33  ;;  %6695 = vst [vmem:[#allocation27_spill] sm:$0xff] %v6071_v60 }
 0x1b6   : > { %1147 = vst [vmem:[%s6012_s12 + $0x20] sm:$0xff] %v3788_v28  ;;  %2667 = vmatprep.mubr.f32.mxu1 %v6694_v12  ;;  %v6696_v28 = vld [vmem:[#allocation39_spill] sm:$0xff] }
 0x1b7   : > { %3173 = vst [vmem:[%s6012_s12 + $0x120] sm:$0xff] %v3820_v0  ;;  %v1009_v29 = vpop.f32.mrb[10].mxu0  ;;  %v6697_v0 = vld [vmem:[#allocation40_spill] sm:$0xff] }
 0x1b8   : > { %v3789_v31 = vadd.f32 %v6005_v52, %v1009_v29  ;;  %v1676_v15 = vpop.f32.mrb[10].mxu1  ;;  %v1011_v55 = vpop.f32.mrb[11].mxu0  ;;  %2113 = vmatmul.mubr.f32.gmra.mrb[116].mxu0 %v6071_v60  ;;  %v6082_v60 = vld [vmem:[%s4393_s6 + $0x158] sm:$0xff] }
 0x1b9   : > { %v3821_v22 = vadd.f32 %v6005_v52, %v1676_v15  ;;  %v1678_v54 = vpop.f32.mrb[11].mxu1  ;;  %2668 = vmatmul.mubr.f32.gmra.mrb[116].mxu1 %v6693_v33  ;;  %2117 = vmatprep.mubr.f32.mxu0 %v6696_v28  ;;  %6698 = vst [vmem:[#allocation28_spill] sm:$0xff] %v6082_v60 }
 0x1ba   : > { %1148 = vst [vmem:[%s6012_s12 + $0x28] sm:$0xff] %v3789_v31  ;;  %2672 = vmatprep.mubr.f32.mxu1 %v6697_v0  ;;  %v6699_v31 = vld [vmem:[#allocation41_spill] sm:$0xff] }
 0x1bb   : > { %3174 = vst [vmem:[%s6012_s12 + $0x128] sm:$0xff] %v3821_v22  ;;  %v1014_v29 = vpop.f32.mrb[12].mxu0 }
 0x1bc   : > { %v3790_v55 = vadd.f32 %v6005_v52, %v1014_v29  ;;  %v1681_v12 = vpop.f32.mrb[12].mxu1  ;;  %v1016_v44 = vpop.f32.mrb[13].mxu0  ;;  %2118 = vmatmul.mubr.f32.gmra.mrb[118].mxu0 %v6082_v60  ;;  %v6093_v60 = vld [vmem:[%s4393_s6 + $0x168] sm:$0xff] }
 0x1bd   : > { %v3822_v15 = vadd.f32 %v6005_v52, %v1681_v12  ;;  %v1683_v54 = vpop.f32.mrb[13].mxu1  ;;  %2673 = vmatmul.mubr.f32.gmra.mrb[118].mxu1 %v6696_v28  ;;  %2122 = vmatprep.mubr.f32.mxu0 %v5236_v20  ;;  %v6104_v28 = vld [vmem:[%s4393_s6 + $0x170] sm:$0xff] }
 0x1be   : > { %1149 = vst [vmem:[%s6012_s12 + $0x30] sm:$0xff] %v3790_v55  ;;  %2677 = vmatprep.mubr.f32.mxu1 %v6699_v31  ;;  %v6700_v55 = vld [vmem:[#allocation42_spill] sm:$0xff]  ;;  %6701 = vst [vmem:[#allocation33_spill] sm:$0xff] %v6104_v28 }
 0x1bf   : > { %3175 = vst [vmem:[%s6012_s12 + $0x130] sm:$0xff] %v3822_v15  ;;  %v1019_v22 = vpop.f32.mrb[14].mxu0 }
 0x1c0   : > { %v3791_v44 = vadd.f32 %v6005_v52, %v1019_v22  ;;  %v1686_v29 = vpop.f32.mrb[14].mxu1  ;;  %v1021_v0 = vpop.f32.mrb[15].mxu0  ;;  %2123 = vmatmul.mubr.f32.gmra.mrb[120].mxu0 %v6093_v60 }
 0x1c1   : > { %v3823_v12 = vadd.f32 %v6005_v52, %v1686_v29  ;;  %v1688_v54 = vpop.f32.mrb[15].mxu1  ;;  %2678 = vmatmul.mubr.f32.gmra.mrb[120].mxu1 %v5236_v20  ;;  %2127 = vmatprep.mubr.f32.mxu0 %v5246_v49 }
 0x1c2   : > { %1150 = vst [vmem:[%s6012_s12 + $0x38] sm:$0xff] %v3791_v44  ;;  %2682 = vmatprep.mubr.f32.mxu1 %v6700_v55  ;;  %v6702_v55 = vld [vmem:[#allocation6_spill] sm:$0xff] }
 0x1c3   : > { %3176 = vst [vmem:[%s6012_s12 + $0x138] sm:$0xff] %v3823_v12  ;;  %v1024_v15 = vpop.f32.mrb[16].mxu0 }
 0x1c4   : > { %v3792_v0 = vadd.f32 %v6005_v52, %v1024_v15  ;;  %v1691_v22 = vpop.f32.mrb[16].mxu1  ;;  %v1026_v31 = vpop.f32.mrb[17].mxu0  ;;  %2128 = vmatmul.mubr.f32.gmra.mrb[122].mxu0 %v6104_v28  ;;  %v6704_v28 = vld [vmem:[#allocation3_spill] sm:$0xff] }
 0x1c5   : > { %v3824_v29 = vadd.f32 %v6005_v52, %v1691_v22  ;;  %v1693_v54 = vpop.f32.mrb[17].mxu1  ;;  %2683 = vmatmul.mubr.f32.gmra.mrb[122].mxu1 %v5246_v49  ;;  %2132 = vmatprep.mubr.f32.mxu0 %v5617_v16 }
 0x1c6   : > { %1151 = vst [vmem:[%s6012_s12 + $0x40] sm:$0xff] %v3792_v0  ;;  %2687 = vmatprep.mubr.f32.mxu1 %v5620_v35  ;;  %v6703_v0 = vld [vmem:[#allocation8_spill] sm:$0xff] }
 0x1c7   : > { %3177 = vst [vmem:[%s6012_s12 + $0x140] sm:$0xff] %v3824_v29  ;;  %v1029_v44 = vpop.f32.mrb[18].mxu0 }
 0x1c8   : > { %v3793_v31 = vadd.f32 %v6005_v52, %v1029_v44  ;;  %v1696_v12 = vpop.f32.mrb[18].mxu1  ;;  %v1031_v15 = vpop.f32.mrb[19].mxu0  ;;  %2133 = vmatmul.mubr.f32.gmra.mrb[124].mxu0 %v6702_v55 }
 0x1c9   : > { %v3825_v22 = vadd.f32 %v6005_v52, %v1696_v12  ;;  %v1698_v54 = vpop.f32.mrb[19].mxu1  ;;  %2688 = vmatmul.mubr.f32.gmra.mrb[124].mxu1 %v5617_v16  ;;  %2137 = vmatprep.mubr.f32.mxu0 %v5627_v56 }
 0x1ca   : > { %1152 = vst [vmem:[%s6012_s12 + $0x48] sm:$0xff] %v3793_v31  ;;  %2692 = vmatprep.mubr.f32.mxu1 %v6703_v0 }
 0x1cb   : > { %3178 = vst [vmem:[%s6012_s12 + $0x148] sm:$0xff] %v3825_v22  ;;  %v1034_v29 = vpop.f32.mrb[20].mxu0 }
 0x1cc   : > { %v3794_v44 = vadd.f32 %v6005_v52, %v1034_v29  ;;  %v1701_v35 = vpop.f32.mrb[20].mxu1  ;;  %v1036_v15 = vpop.f32.mrb[21].mxu0  ;;  %2138 = vmatmul.mubr.f32.gmra.mrb[126].mxu0 %v6704_v28 }
 0x1cd   : > { %v3826_v55 = vadd.f32 %v6005_v52, %v1701_v35  ;;  %v1703_v12 = vpop.f32.mrb[21].mxu1  ;;  %2693 = vmatmul.mubr.f32.gmra.mrb[126].mxu1 %v5627_v56  ;;  %2207 = vmatprep.mubr.f32.mxu0 %v4661_v26 }
 0x1ce   : > { %1153 = vst [vmem:[%s6012_s12 + $0x50] sm:$0xff] %v3794_v44  ;;  %2762 = vmatprep.mubr.f32.mxu1 %v4667_v30 }
 0x1cf   : > { %3179 = vst [vmem:[%s6012_s12 + $0x150] sm:$0xff] %v3826_v55  ;;  %v1039_v31 = vpop.f32.mrb[22].mxu0 }
 0x1d0   : > { %v3795_v22 = vadd.f32 %v6005_v52, %v1039_v31  ;;  %v1706_v54 = vpop.f32.mrb[22].mxu1  ;;  %v1041_v29 = vpop.f32.mrb[23].mxu0  ;;  %2208 = vmatmul.mubr.f32.vlgmr.msra.gmra.mrb[64].mxu0 %v5694_v14 }
 0x1d1   : > { %v3827_v35 = vadd.f32 %v6005_v52, %v1706_v54  ;;  %v1708_v28 = vpop.f32.mrb[23].mxu1  ;;  %2763 = vmatmul.mubr.f32.vlgmr.msra.gmra.mrb[64].mxu1 %v4661_v26  ;;  %2212 = vmatprep.mubr.f32.mxu0 %v4691_v38 }
 0x1d2   : > { %1154 = vst [vmem:[%s6012_s12 + $0x58] sm:$0xff] %v3795_v22  ;;  %2767 = vmatprep.mubr.f32.mxu1 %v4696_v45  ;;  %v6705_v28 = vld [vmem:[#allocation4_spill] sm:$0xff] }
 0x1d3   : > { %3180 = vst [vmem:[%s6012_s12 + $0x158] sm:$0xff] %v3827_v35  ;;  %v1044_v30 = vpop.f32.mrb[24].mxu0 }
 0x1d4   : > { %v3796_v44 = vadd.f32 %v6005_v52, %v1044_v30  ;;  %v1711_v15 = vpop.f32.mrb[24].mxu1  ;;  %v1046_v55 = vpop.f32.mrb[25].mxu0  ;;  %2213 = vmatmul.mubr.f32.gmra.mrb[66].mxu0 %v5715_v41 }
 0x1d5   : > { %v3828_v14 = vadd.f32 %v6005_v52, %v1711_v15  ;;  %v1713_v12 = vpop.f32.mrb[25].mxu1  ;;  %2768 = vmatmul.mubr.f32.gmra.mrb[66].mxu1 %v4691_v38  ;;  %2217 = vmatprep.mubr.f32.mxu0 %v4720_v58  ;;  %v6706_v55 = vld [vmem:[#allocation11_spill] sm:$0xff] }
 0x1d6   : > { %1155 = vst [vmem:[%s6012_s12 + $0x60] sm:$0xff] %v3796_v44  ;;  %2772 = vmatprep.mubr.f32.mxu1 %v4726_v62 }
 0x1d7   : > { %3181 = vst [vmem:[%s6012_s12 + $0x160] sm:$0xff] %v3828_v14  ;;  %v1049_v26 = vpop.f32.mrb[26].mxu0 }
 0x1d8   : > { %v3797_v45 = vadd.f32 %v6005_v52, %v1049_v26  ;;  %v1716_v31 = vpop.f32.mrb[26].mxu1  ;;  %v1051_v22 = vpop.f32.mrb[27].mxu0  ;;  %2218 = vmatmul.mubr.f32.gmra.mrb[68].mxu0 %v5736_v3 }
 0x1d9   : > { %v3829_v41 = vadd.f32 %v6005_v52, %v1716_v31  ;;  %v1718_v54 = vpop.f32.mrb[27].mxu1  ;;  %2773 = vmatmul.mubr.f32.gmra.mrb[68].mxu1 %v4720_v58  ;;  %2222 = vmatprep.mubr.f32.mxu0 %v4750_v6  ;;  %v6707_v31 = vld [vmem:[#allocation12_spill] sm:$0xff] }
 0x1da   : > { %1156 = vst [vmem:[%s6012_s12 + $0x68] sm:$0xff] %v3797_v45  ;;  %2777 = vmatprep.mubr.f32.mxu1 %v4755_v11 }
 0x1db   : > { %3182 = vst [vmem:[%s6012_s12 + $0x168] sm:$0xff] %v3829_v41  ;;  %v1054_v38 = vpop.f32.mrb[28].mxu0 }
 0x1dc   : > { %v3798_v62 = vadd.f32 %v6005_v52, %v1054_v38  ;;  %v1721_v29 = vpop.f32.mrb[28].mxu1  ;;  %v1056_v35 = vpop.f32.mrb[29].mxu0  ;;  %2223 = vmatmul.mubr.f32.gmra.mrb[70].mxu0 %v6705_v28 }
 0x1dd   : > { %v3830_v3 = vadd.f32 %v6005_v52, %v1721_v29  ;;  %v1723_v30 = vpop.f32.mrb[29].mxu1  ;;  %2778 = vmatmul.mubr.f32.gmra.mrb[70].mxu1 %v4750_v6  ;;  %2227 = vmatprep.mubr.f32.mxu0 %v4779_v21 }
 0x1de   : > { %1157 = vst [vmem:[%s6012_s12 + $0x70] sm:$0xff] %v3798_v62  ;;  %2782 = vmatprep.mubr.f32.mxu1 %v4785_v25  ;;  %v6708_v62 = vld [vmem:[#allocation5_spill] sm:$0xff] }
 0x1df   : > { %3183 = vst [vmem:[%s6012_s12 + $0x170] sm:$0xff] %v3830_v3  ;;  %v1059_v58 = vpop.f32.mrb[30].mxu0  ;;  %v6709_v30 = vld [vmem:[#allocation13_spill] sm:$0xff] }
 0x1e0   : > { %v3799_v11 = vadd.f32 %v6005_v52, %v1059_v58  ;;  %v1726_v44 = vpop.f32.mrb[30].mxu1  ;;  %v1061_v15 = vpop.f32.mrb[31].mxu0  ;;  %2228 = vmatmul.mubr.f32.gmra.mrb[72].mxu0 %v6706_v55  ;;  %v6710_v55 = vld [vmem:[#allocation14_spill] sm:$0xff] }
 0x1e1   : > { %v3831_v14 = vadd.f32 %v6005_v52, %v1726_v44  ;;  %v1728_v12 = vpop.f32.mrb[31].mxu1  ;;  %2783 = vmatmul.mubr.f32.gmra.mrb[72].mxu1 %v4779_v21  ;;  %2232 = vmatprep.mubr.f32.mxu0 %v4809_v37 }
 0x1e2   : > { %1158 = vst [vmem:[%s6012_s12 + $0x78] sm:$0xff] %v3799_v11  ;;  %2787 = vmatprep.mubr.f32.mxu1 %v4814_v46 }
 0x1e3   : > { %3184 = vst [vmem:[%s6012_s12 + $0x178] sm:$0xff] %v3831_v14  ;;  %v1064_v6 = vpop.f32.mrb[32].mxu0 }
 0x1e4   : > { %v3800_v25 = vadd.f32 %v6005_v52, %v1064_v6  ;;  %v1731_v26 = vpop.f32.mrb[32].mxu1  ;;  %v1066_v45 = vpop.f32.mrb[33].mxu0  ;;  %2233 = vmatmul.mubr.f32.gmra.mrb[74].mxu0 %v6707_v31 }
 0x1e5   : > { %v3832_v22 = vadd.f32 %v6005_v52, %v1731_v26  ;;  %v1733_v41 = vpop.f32.mrb[33].mxu1  ;;  %2788 = vmatmul.mubr.f32.gmra.mrb[74].mxu1 %v4809_v37  ;;  %2237 = vmatprep.mubr.f32.mxu0 %v4838_v61  ;;  %v6711_v26 = vld [vmem:[#allocation9_spill] sm:$0xff] }
 0x1e6   : > { %1159 = vst [vmem:[%s6012_s12 + $0x80] sm:$0xff] %v3800_v25  ;;  %2792 = vmatprep.mubr.f32.mxu1 %v4844_v2 }
 0x1e7   : > { %3185 = vst [vmem:[%s6012_s12 + $0x180] sm:$0xff] %v3832_v22  ;;  %v1069_v21 = vpop.f32.mrb[34].mxu0 }
 0x1e8   : > { %v3801_v46 = vadd.f32 %v6005_v52, %v1069_v21  ;;  %v1736_v54 = vpop.f32.mrb[34].mxu1  ;;  %v1071_v38 = vpop.f32.mrb[35].mxu0  ;;  %2238 = vmatmul.mubr.f32.gmra.mrb[76].mxu0 %v6708_v62  ;;  %v6712_v21 = vld [vmem:[#allocation17_spill] sm:$0xff] }
 0x1e9   : > { %v3833_v29 = vadd.f32 %v6005_v52, %v1736_v54  ;;  %v1738_v35 = vpop.f32.mrb[35].mxu1  ;;  %2793 = vmatmul.mubr.f32.gmra.mrb[76].mxu1 %v4838_v61  ;;  %2242 = vmatprep.mubr.f32.mxu0 %v4868_v42 }
 0x1ea   : > { %1160 = vst [vmem:[%s6012_s12 + $0x88] sm:$0xff] %v3801_v46  ;;  %2797 = vmatprep.mubr.f32.mxu1 %v4873_v19 }
 0x1eb   : > { %3186 = vst [vmem:[%s6012_s12 + $0x188] sm:$0xff] %v3833_v29  ;;  %v1074_v37 = vpop.f32.mrb[36].mxu0  ;;  %v6713_v29 = vld [vmem:[#allocation18_spill] sm:$0xff] }
 0x1ec   : > { %v3802_v2 = vadd.f32 %v6005_v52, %v1074_v37  ;;  %v1741_v28 = vpop.f32.mrb[36].mxu1  ;;  %v1076_v3 = vpop.f32.mrb[37].mxu0  ;;  %2243 = vmatmul.mubr.f32.gmra.mrb[78].mxu0 %v6709_v30 }
 0x1ed   : > { %v3834_v58 = vadd.f32 %v6005_v52, %v1741_v28  ;;  %v1743_v11 = vpop.f32.mrb[37].mxu1  ;;  %2798 = vmatmul.mubr.f32.gmra.mrb[78].mxu1 %v4868_v42  ;;  %2247 = vmatprep.mubr.f32.mxu0 %v4897_v36 }
 0x1ee   : > { %1161 = vst [vmem:[%s6012_s12 + $0x90] sm:$0xff] %v3802_v2  ;;  %2802 = vmatprep.mubr.f32.mxu1 %v4903_v48 }
 0x1ef   : > { %3187 = vst [vmem:[%s6012_s12 + $0x190] sm:$0xff] %v3834_v58  ;;  %v1079_v61 = vpop.f32.mrb[38].mxu0 }
 0x1f0   : > { %v3803_v19 = vadd.f32 %v6005_v52, %v1079_v61  ;;  %v1746_v44 = vpop.f32.mrb[38].mxu1  ;;  %v1081_v15 = vpop.f32.mrb[39].mxu0  ;;  %2248 = vmatmul.mubr.f32.gmra.mrb[80].mxu0 %v6710_v55 }
 0x1f1   : > { %v3835_v14 = vadd.f32 %v6005_v52, %v1746_v44  ;;  %v1748_v12 = vpop.f32.mrb[39].mxu1  ;;  %2803 = vmatmul.mubr.f32.gmra.mrb[80].mxu1 %v4897_v36  ;;  %2252 = vmatprep.mubr.f32.mxu0 %v4927_v63 }
 0x1f2   : > { %1162 = vst [vmem:[%s6012_s12 + $0x98] sm:$0xff] %v3803_v19  ;;  %2807 = vmatprep.mubr.f32.mxu1 %v4932_v9 }
 0x1f3   : > { %3188 = vst [vmem:[%s6012_s12 + $0x198] sm:$0xff] %v3835_v14  ;;  %v1084_v42 = vpop.f32.mrb[40].mxu0 }
 0x1f4   : > { %v3804_v48 = vadd.f32 %v6005_v52, %v1084_v42  ;;  %v1751_v6 = vpop.f32.mrb[40].mxu1  ;;  %v1086_v25 = vpop.f32.mrb[41].mxu0  ;;  %2253 = vmatmul.mubr.f32.gmra.mrb[82].mxu0 %v6711_v26 }
 0x1f5   : > { %v3836_v45 = vadd.f32 %v6005_v52, %v1751_v6  ;;  %v1753_v31 = vpop.f32.mrb[41].mxu1  ;;  %2808 = vmatmul.mubr.f32.gmra.mrb[82].mxu1 %v4927_v63  ;;  %2257 = vmatprep.mubr.f32.mxu0 %v4956_v24 }
 0x1f6   : > { %1163 = vst [vmem:[%s6012_s12 + $0xa0] sm:$0xff] %v3804_v48  ;;  %2812 = vmatprep.mubr.f32.mxu1 %v4962_v34 }
 0x1f7   : > { %3189 = vst [vmem:[%s6012_s12 + $0x1a0] sm:$0xff] %v3836_v45  ;;  %v1089_v36 = vpop.f32.mrb[42].mxu0  ;;  %v6714_v45 = vld [vmem:[#allocation10_spill] sm:$0xff] }
 0x1f8   : > { %v3805_v9 = vadd.f32 %v6005_v52, %v1089_v36  ;;  %v1756_v22 = vpop.f32.mrb[42].mxu1  ;;  %v1091_v41 = vpop.f32.mrb[43].mxu0  ;;  %2258 = vmatmul.mubr.f32.gmra.mrb[84].mxu0 %v6712_v21  ;;  %v6716_v36 = vld [vmem:[#allocation20_spill] sm:$0xff]  ;;  %v6717_v21 = vld [vmem:[#allocation15_spill] sm:$0xff] }
 0x1f9   : > { %v3837_v46 = vadd.f32 %v6005_v52, %v1756_v22  ;;  %v1758_v54 = vpop.f32.mrb[43].mxu1  ;;  %2813 = vmatmul.mubr.f32.gmra.mrb[84].mxu1 %v4956_v24  ;;  %2262 = vmatprep.mubr.f32.mxu0 %v4986_v57 }
 0x1fa   : > { %1164 = vst [vmem:[%s6012_s12 + $0xa8] sm:$0xff] %v3805_v9  ;;  %2817 = vmatprep.mubr.f32.mxu1 %v4991_v51 }
 0x1fb   : > { %3190 = vst [vmem:[%s6012_s12 + $0x1a8] sm:$0xff] %v3837_v46  ;;  %v1094_v63 = vpop.f32.mrb[44].mxu0 }
 0x1fc   : > { %v3806_v34 = vadd.f32 %v6005_v52, %v1094_v63  ;;  %v1761_v38 = vpop.f32.mrb[44].mxu1  ;;  %v1096_v62 = vpop.f32.mrb[45].mxu0  ;;  %2263 = vmatmul.mubr.f32.gmra.mrb[86].mxu0 %v6713_v29  ;;  %v6719_v29 = vld [vmem:[#allocation23_spill] sm:$0xff] }
 0x1fd   : > { %v3838_v35 = vadd.f32 %v6005_v52, %v1761_v38  ;;  %v1763_v37 = vpop.f32.mrb[45].mxu1  ;;  %2818 = vmatmul.mubr.f32.gmra.mrb[86].mxu1 %v4986_v57  ;;  %2267 = vmatprep.mubr.f32.mxu0 %v5015_v27 }
 0x1fe   : > { %1165 = vst [vmem:[%s6012_s12 + $0xb0] sm:$0xff] %v3806_v34  ;;  %2822 = vmatprep.mubr.f32.mxu1 %v5018_v43 }
 0x1ff   : > { %3191 = vst [vmem:[%s6012_s12 + $0x1b0] sm:$0xff] %v3838_v35  ;;  %v1099_v24 = vpop.f32.mrb[46].mxu0 }
 0x200   : > { %v3807_v51 = vadd.f32 %v6005_v52, %v1099_v24  ;;  %v1766_v2 = vpop.f32.mrb[46].mxu1  ;;  %v1101_v28 = vpop.f32.mrb[47].mxu0  ;;  %2268 = vmatmul.mubr.f32.gmra.mrb[88].mxu0 %v5946_v7  ;;  %v6720_v24 = vld [vmem:[#allocation26_spill] sm:$0xff] }
 0x201   : > { %v3839_v3 = vadd.f32 %v6005_v52, %v1766_v2  ;;  %v1768_v30 = vpop.f32.mrb[47].mxu1  ;;  %2823 = vmatmul.mubr.f32.gmra.mrb[88].mxu1 %v5015_v27  ;;  %2272 = vmatprep.mubr.f32.mxu0 %v5033_v59 }
 0x202   : > { %1166 = vst [vmem:[%s6012_s12 + $0xb8] sm:$0xff] %v3807_v51  ;;  %2827 = vmatprep.mubr.f32.mxu1 %v6633_v1  ;;  %v6721_v30 = vld [vmem:[#allocation16_spill] sm:$0xff] }
 0x203   : > { %3192 = vst [vmem:[%s6012_s12 + $0x1b8] sm:$0xff] %v3839_v3  ;;  %v1104_v57 = vpop.f32.mrb[48].mxu0 }
 0x204   : > { %v3808_v43 = vadd.f32 %v6005_v52, %v1104_v57  ;;  %v1771_v58 = vpop.f32.mrb[48].mxu1  ;;  %v1106_v11 = vpop.f32.mrb[49].mxu0  ;;  %2273 = vmatmul.mubr.f32.gmra.mrb[90].mxu0 %v5961_v32 }
 0x205   : > { %v3840_v7 = vadd.f32 %v6005_v52, %v1771_v58  ;;  %v1773_v61 = vpop.f32.mrb[49].mxu1  ;;  %2828 = vmatmul.mubr.f32.gmra.mrb[90].mxu1 %v5033_v59  ;;  %2277 = vmatprep.mubr.f32.mxu0 %v6635_v47  ;;  %v6723_v58 = vld [vmem:[#allocation30_spill] sm:$0xff]  ;;  %v6724_v11 = vld [vmem:[#allocation25_spill] sm:$0xff] }
 0x206   : > { %1167 = vst [vmem:[%s6012_s12 + $0xc0] sm:$0xff] %v3808_v43  ;;  %2832 = vmatprep.mubr.f32.mxu1 %v6636_v53  ;;  %v6726_v61 = vld [vmem:[#allocation32_spill] sm:$0xff] }
 0x207   : > { %3193 = vst [vmem:[%s6012_s12 + $0x1c0] sm:$0xff] %v3840_v7  ;;  %v1109_v27 = vpop.f32.mrb[50].mxu0  ;;  %v6725_v7 = vld [vmem:[#allocation31_spill] sm:$0xff] }
 0x208   : > { %v3809_v1 = vadd.f32 %v6005_v52, %v1109_v27  ;;  %v1776_v19 = vpop.f32.mrb[50].mxu1  ;;  %v1111_v44 = vpop.f32.mrb[51].mxu0  ;;  %2278 = vmatmul.mubr.f32.gmra.mrb[92].mxu0 %v5969_v17  ;;  %v6727_v27 = vld [vmem:[#allocation21_spill] sm:$0xff] }
 0x209   : > { %v3841_v32 = vadd.f32 %v6005_v52, %v1776_v19  ;;  %v1778_v15 = vpop.f32.mrb[51].mxu1  ;;  %2833 = vmatmul.mubr.f32.gmra.mrb[92].mxu1 %v6635_v47  ;;  %2282 = vmatprep.mubr.f32.mxu0 %v6638_v5  ;;  %v6730_v19 = vld [vmem:[#allocation22_spill] sm:$0xff]  ;;  %v6731_v44 = vld [vmem:[#allocation37_spill] sm:$0xff] }
 0x20a   : > { %1168 = vst [vmem:[%s6012_s12 + $0xc8] sm:$0xff] %v3809_v1  ;;  %2837 = vmatprep.mubr.f32.mxu1 %v6639_v4  ;;  %v6729_v1 = vld [vmem:[#allocation35_spill] sm:$0xff] }
 0x20b   : > { %3194 = vst [vmem:[%s6012_s12 + $0x1c8] sm:$0xff] %v3841_v32  ;;  %v1114_v59 = vpop.f32.mrb[52].mxu0  ;;  %v6732_v32 = vld [vmem:[#allocation27_spill] sm:$0xff] }
 0x20c   : > { %v3810_v53 = vadd.f32 %v6005_v52, %v1114_v59  ;;  %v1781_v55 = vpop.f32.mrb[52].mxu1  ;;  %v1116_v14 = vpop.f32.mrb[53].mxu0  ;;  %2283 = vmatmul.mubr.f32.gmra.mrb[94].mxu0 %v5976_v13  ;;  %v6733_v15 = vld [vmem:[#allocation39_spill] sm:$0xff]  ;;  %v6734_v59 = vld [vmem:[#allocation40_spill] sm:$0xff] }
 0x20d   : > { %v3842_v17 = vadd.f32 %v6005_v52, %v1781_v55  ;;  %v1783_v12 = vpop.f32.mrb[53].mxu1  ;;  %2838 = vmatmul.mubr.f32.gmra.mrb[94].mxu1 %v6638_v5  ;;  %2287 = vmatprep.mubr.f32.mxu0 %v6641_v23  ;;  %v6736_v55 = vld [vmem:[#allocation41_spill] sm:$0xff]  ;;  %v448_v14 = vld [vmem:[%s382_s14] sm:$0xff] }
 0x20e   : > { %1169 = vst [vmem:[%s6012_s12 + $0xd0] sm:$0xff] %v3810_v53  ;;  %2842 = vmatprep.mubr.f32.mxu1 %v6642_v39  ;;  %v6735_v53 = vld [vmem:[#allocation28_spill] sm:$0xff]  ;;  %v6738_v12 = vld [vmem:[#allocation33_spill] sm:$0xff] }
 0x20f   : > { %3195 = vst [vmem:[%s6012_s12 + $0x1d0] sm:$0xff] %v3842_v17  ;;  %v1119_v47 = vpop.f32.mrb[54].mxu0  ;;  %v449_v17 = vld [vmem:[%s382_s14 + $0x8] sm:$0xff] }
 0x210   : > { %v3811_v4 = vadd.f32 %v6005_v52, %v1119_v47  ;;  %v1786_v42 = vpop.f32.mrb[54].mxu1  ;;  %v1121_v48 = vpop.f32.mrb[55].mxu0  ;;  %2288 = vmatmul.mubr.f32.gmra.mrb[96].mxu0 %v5983_v8  ;;  %v1846_v47 = vrot.slane %v448_v14, 1 }
 0x211   : > { %v3843_v13 = vadd.f32 %v6005_v52, %v1786_v42  ;;  %v1788_v6 = vpop.f32.mrb[55].mxu1  ;;  %2843 = vmatmul.mubr.f32.gmra.mrb[96].mxu1 %v6641_v23  ;;  %2292 = vmatprep.mubr.f32.mxu0 %v6644_v40  ;;  %v6715_v23 = vld [vmem:[#allocation19_spill] sm:$0xff]  ;;  %v2401_v42 = vrot.slane %v448_v14, 2  ;;  %v2402_v48 = vrot.slane %v449_v17, 2 }
 0x212   : > { %1170 = vst [vmem:[%s6012_s12 + $0xd8] sm:$0xff] %v3811_v4  ;;  %2847 = vmatprep.mubr.f32.mxu1 %v6645_v10  ;;  %v1847_v4 = vrot.slane %v449_v17, 1 }
 0x213   : > { %3196 = vst [vmem:[%s6012_s12 + $0x1d8] sm:$0xff] %v3843_v13  ;;  %v1124_v5 = vpop.f32.mrb[56].mxu0  ;;  %v4226_v13 = vld [vmem:[%s5592_s28] sm:$0xff] }
 0x214   : > { %v3812_v39 = vadd.f32 %v6005_v52, %v1124_v5  ;;  %v1791_v25 = vpop.f32.mrb[56].mxu1  ;;  %v1126_v26 = vpop.f32.mrb[57].mxu0  ;;  %2293 = vmatmul.mubr.f32.gmra.mrb[98].mxu0 %v6714_v45  ;;  %v2403_v5 = vsel %vm1175_vm1, %v2401_v42, %v2402_v48  ;;  %v6375_v42 = vld [vmem:[%s6485_s4] ss:$0 sm:$0xff] }
 0x215   : > { %v3844_v8 = vadd.f32 %v6005_v52, %v1791_v25  ;;  %v1793_v31 = vpop.f32.mrb[57].mxu1  ;;  %2848 = vmatmul.mubr.f32.gmra.mrb[98].mxu1 %v6644_v40  ;;  %2297 = vmatprep.mubr.f32.mxu0 %v6715_v23  ;;  %v6718_v40 = vld [vmem:[#allocation24_spill] sm:$0xff]  ;;  %v4227_v25 = vld [vmem:[%s5592_s28 + $0x8] sm:$0xff] }
 0x216   : > { %1171 = vst [vmem:[%s6012_s12 + $0xe0] sm:$0xff] %v3812_v39  ;;  %2852 = vmatprep.mubr.f32.mxu1 %v6716_v36 }
 0x217   : > { %3197 = vst [vmem:[%s6012_s12 + $0x1e0] sm:$0xff] %v3844_v8  ;;  %v1129_v10 = vpop.f32.mrb[58].mxu0 }
 0x218   : > { %v3813_v9 = vadd.f32 %v6005_v52, %v1129_v10  ;;  %v1796_v22 = vpop.f32.mrb[58].mxu1  ;;  %v1131_v41 = vpop.f32.mrb[59].mxu0  ;;  %2298 = vmatmul.mubr.f32.gmra.mrb[100].mxu0 %v6717_v21 }
 0x219   : > { %v3845_v46 = vadd.f32 %v6005_v52, %v1796_v22  ;;  %v1798_v54 = vpop.f32.mrb[59].mxu1  ;;  %2853 = vmatmul.mubr.f32.gmra.mrb[100].mxu1 %v6715_v23  ;;  %2302 = vmatprep.mubr.f32.mxu0 %v6650_v50 }
 0x21a   : > { %1172 = vst [vmem:[%s6012_s12 + $0xe8] sm:$0xff] %v3813_v9  ;;  %2857 = vmatprep.mubr.f32.mxu1 %v6718_v40 }
 0x21b   : > { %3198 = vst [vmem:[%s6012_s12 + $0x1e8] sm:$0xff] %v3845_v46  ;;  %v1134_v63 = vpop.f32.mrb[60].mxu0 }
 0x21c   : > { %v3814_v34 = vadd.f32 %v6005_v52, %v1134_v63  ;;  %v1801_v38 = vpop.f32.mrb[60].mxu1  ;;  %v1136_v62 = vpop.f32.mrb[61].mxu0  ;;  %2303 = vmatmul.mubr.f32.gmra.mrb[102].mxu0 %v6719_v29 }
 0x21d   : > { %v3846_v35 = vadd.f32 %v6005_v52, %v1801_v38  ;;  %v1803_v37 = vpop.f32.mrb[61].mxu1  ;;  %2858 = vmatmul.mubr.f32.gmra.mrb[102].mxu1 %v6650_v50  ;;  %2307 = vmatprep.mubr.f32.mxu0 %v6653_v18  ;;  %v6722_v50 = vld [vmem:[#allocation29_spill] sm:$0xff] }
 0x21e   : > { %1173 = vst [vmem:[%s6012_s12 + $0xf0] sm:$0xff] %v3814_v34  ;;  %2862 = vmatprep.mubr.f32.mxu1 %v6720_v24 }
 0x21f   : > { %3199 = vst [vmem:[%s6012_s12 + $0x1f0] sm:$0xff] %v3846_v35  ;;  %v1139_v51 = vpop.f32.mrb[62].mxu0 }
 0x220   : > { %v3815_v2 = vadd.f32 %v6005_v52, %v1139_v51  ;;  %v1806_v28 = vpop.f32.mrb[62].mxu1  ;;  %v1141_v3 = vpop.f32.mrb[63].mxu0  ;;  %2308 = vmatmul.mubr.f32.gmra.mrb[104].mxu0 %v6721_v30 }
 0x221   : > { %v3847_v57 = vadd.f32 %v6005_v52, %v1806_v28  ;;  %v1808_v43 = vpop.f32.mrb[63].mxu1  ;;  %2863 = vmatmul.mubr.f32.gmra.mrb[104].mxu1 %v6653_v18  ;;  %2312 = vmatprep.mubr.f32.mxu0 %v6722_v50  ;;  %v6728_v18 = vld [vmem:[#allocation34_spill] sm:$0xff] }
 0x222   : > { %1174 = vst [vmem:[%s6012_s12 + $0xf8] sm:$0xff] %v3815_v2  ;;  %2867 = vmatprep.mubr.f32.mxu1 %v6723_v58 }
 0x223   : > { %3200 = vst [vmem:[%s6012_s12 + $0x1f8] sm:$0xff] %v3847_v57 }
 0x224   : > { %2313 = vmatmul.mubr.f32.gmra.mrb[106].mxu0 %v6724_v11 }
 0x225   : > { %2868 = vmatmul.mubr.f32.gmra.mrb[106].mxu1 %v6722_v50  ;;  %2317 = vmatprep.mubr.f32.mxu0 %v6725_v7 }
 0x226   : > { %2872 = vmatprep.mubr.f32.mxu1 %v6726_v61 }
 0x228   : > { %2318 = vmatmul.mubr.f32.gmra.mrb[108].mxu0 %v6727_v27 }
 0x229   : > { %2873 = vmatmul.mubr.f32.gmra.mrb[108].mxu1 %v6725_v7  ;;  %2322 = vmatprep.mubr.f32.mxu0 %v6728_v18 }
 0x22a   : > { %2877 = vmatprep.mubr.f32.mxu1 %v6729_v1 }
 0x22c   : > { %2323 = vmatmul.mubr.f32.gmra.mrb[110].mxu0 %v6730_v19 }
 0x22d   : > { %2878 = vmatmul.mubr.f32.gmra.mrb[110].mxu1 %v6728_v18  ;;  %2327 = vmatprep.mubr.f32.mxu0 %v6693_v33 }
 0x22e   : > { %2882 = vmatprep.mubr.f32.mxu1 %v6731_v44 }
 0x230   : > { %2328 = vmatmul.mubr.f32.gmra.mrb[112].mxu0 %v6732_v32 }
 0x231   : > { %2883 = vmatmul.mubr.f32.gmra.mrb[112].mxu1 %v6693_v33  ;;  %2332 = vmatprep.mubr.f32.mxu0 %v6733_v15  ;;  %v6737_v33 = vld [vmem:[#allocation42_spill] sm:$0xff] }
 0x232   : > { %2887 = vmatprep.mubr.f32.mxu1 %v6734_v59 }
 0x234   : > { %2333 = vmatmul.mubr.f32.gmra.mrb[114].mxu0 %v6735_v53 }
 0x235   : > { %2888 = vmatmul.mubr.f32.gmra.mrb[114].mxu1 %v6733_v15  ;;  %2337 = vmatprep.mubr.f32.mxu0 %v5236_v20 }
 0x236   : > { %2892 = vmatprep.mubr.f32.mxu1 %v6736_v55 }
 0x238   : > { %2338 = vmatmul.mubr.f32.gmra.mrb[116].mxu0 %v6093_v60  ;;  %v6739_v60 = vld [vmem:[#allocation7_spill] sm:$0xff] }
 0x239   : > { %2893 = vmatmul.mubr.f32.gmra.mrb[116].mxu1 %v5236_v20  ;;  %2342 = vmatprep.mubr.f32.mxu0 %v5246_v49  ;;  %v450_v20 = vld [vmem:[%s382_s14 + $0x10] sm:$0x3] }
 0x23a   : > { %2897 = vmatprep.mubr.f32.mxu1 %v6737_v33  ;;  %v1849_v6 = vrot.slane %v450_v20, 1  ;;  %v2404_v39 = vrot.slane %v450_v20, 2 }
 0x23c   : > { %2343 = vmatmul.mubr.f32.gmra.mrb[118].mxu0 %v6738_v12  ;;  %v2405_v26 = vsel %vm1175_vm1, %v2402_v48, %v2404_v39 }
 0x23d   : > { %2898 = vmatmul.mubr.f32.gmra.mrb[118].mxu1 %v5246_v49  ;;  %2347 = vmatprep.mubr.f32.mxu0 %v5617_v16  ;;  %v1848_v49 = vsel %vm500_vm0, %v1846_v47, %v1847_v4 }
 0x23e   : > { %2902 = vmatprep.mubr.f32.mxu1 %v6739_v60 }
 0x240   : > { %2348 = vmatmul.mubr.f32.gmra.mrb[120].mxu0 %v4226_v13 }
 0x241   : > { %2903 = vmatmul.mubr.f32.gmra.mrb[120].mxu1 %v5617_v16  ;;  %2352 = vmatprep.mubr.f32.mxu0 %v5627_v56  ;;  %v1850_v16 = vsel %vm500_vm0, %v1847_v4, %v1849_v6 }
 0x242   : > { %2907 = vmatprep.mubr.f32.mxu1 %v6703_v0 }
 0x244   : > { %2353 = vmatmul.mubr.f32.gmra.mrb[122].mxu0 %v4227_v25 }
 0x245   : > { %2908 = vmatmul.mubr.f32.gmra.mrb[122].mxu1 %v5627_v56  ;;  %2357 = vmatprep.mubr.f32.mxu0 %v1848_v49 }
 0x246   : > { %2912 = vmatprep.mubr.f32.mxu1 %v2403_v5 }
 0x248   : > { %2358 = vmatmul.mubr.f32.gmra.mrb[124].mxu0 %v448_v14 }
 0x249   : > { %2913 = vmatmul.mubr.f32.gmra.mrb[124].mxu1 %v1848_v49  ;;  %2362 = vmatprep.mubr.f32.mxu0 %v1850_v16 }
 0x24a   : > { %2917 = vmatprep.mubr.f32.mxu1 %v2405_v26 }
 0x24c   : > { %2363 = vmatmul.mubr.f32.gmra.mrb[126].mxu0 %v449_v17 }
 0x24d   : > { %2918 = vmatmul.mubr.f32.gmra.mrb[126].mxu1 %v1850_v16 }
 0x2a3   : > { %v2209_v0 = vpop.f32.mrb[64].mxu0 }
 0x2a4   : > { %v3848_v45 = vadd.f32 %v6005_v52, %v2209_v0  ;;  %v2764_v56 = vpop.f32.mrb[64].mxu1  ;;  %v2211_v8 = vpop.f32.mrb[65].mxu0 }
 0x2a5   : > { %v3880_v31 = vadd.f32 %v6005_v52, %v2764_v56  ;;  %v2766_v23 = vpop.f32.mrb[65].mxu1 }
 0x2a6   : > { %3265 = vst [vmem:[%s6012_s12 + $0x200] sm:$0xff] %v3848_v45 }
 0x2a7   : > { %3361 = vst [vmem:[%s6012_s12 + $0x300] sm:$0xff] %v3880_v31  ;;  %v2214_v36 = vpop.f32.mrb[66].mxu0 }
 0x2a8   : > { %v3849_v10 = vadd.f32 %v6005_v52, %v2214_v36  ;;  %v2769_v9 = vpop.f32.mrb[66].mxu1  ;;  %v2216_v22 = vpop.f32.mrb[67].mxu0 }
 0x2a9   : > { %v3881_v41 = vadd.f32 %v6005_v52, %v2769_v9  ;;  %v2771_v21 = vpop.f32.mrb[67].mxu1 }
 0x2aa   : > { %3266 = vst [vmem:[%s6012_s12 + $0x208] sm:$0xff] %v3849_v10 }
 0x2ab   : > { %3362 = vst [vmem:[%s6012_s12 + $0x308] sm:$0xff] %v3881_v41  ;;  %v2219_v46 = vpop.f32.mrb[68].mxu0 }
 0x2ac   : > { %v3850_v54 = vadd.f32 %v6005_v52, %v2219_v46  ;;  %v2774_v40 = vpop.f32.mrb[68].mxu1  ;;  %v2221_v63 = vpop.f32.mrb[69].mxu0 }
 0x2ad   : > { %v3882_v34 = vadd.f32 %v6005_v52, %v2774_v40  ;;  %v2776_v38 = vpop.f32.mrb[69].mxu1 }
 0x2ae   : > { %3267 = vst [vmem:[%s6012_s12 + $0x210] sm:$0xff] %v3850_v54 }
 0x2af   : > { %3363 = vst [vmem:[%s6012_s12 + $0x310] sm:$0xff] %v3882_v34  ;;  %v2224_v62 = vpop.f32.mrb[70].mxu0 }
 0x2b0   : > { %v3851_v29 = vadd.f32 %v6005_v52, %v2224_v62  ;;  %v2779_v35 = vpop.f32.mrb[70].mxu1  ;;  %v2226_v37 = vpop.f32.mrb[71].mxu0 }
 0x2b1   : > { %v3883_v24 = vadd.f32 %v6005_v52, %v2779_v35  ;;  %v2781_v51 = vpop.f32.mrb[71].mxu1 }
 0x2b2   : > { %3268 = vst [vmem:[%s6012_s12 + $0x218] sm:$0xff] %v3851_v29 }
 0x2b3   : > { %3364 = vst [vmem:[%s6012_s12 + $0x318] sm:$0xff] %v3883_v24  ;;  %v2229_v2 = vpop.f32.mrb[72].mxu0 }
 0x2b4   : > { %v3852_v28 = vadd.f32 %v6005_v52, %v2229_v2  ;;  %v2784_v3 = vpop.f32.mrb[72].mxu1  ;;  %v2231_v30 = vpop.f32.mrb[73].mxu0 }
 0x2b5   : > { %v3884_v57 = vadd.f32 %v6005_v52, %v2784_v3  ;;  %v2786_v43 = vpop.f32.mrb[73].mxu1 }
 0x2b6   : > { %3269 = vst [vmem:[%s6012_s12 + $0x220] sm:$0xff] %v3852_v28 }
 0x2b7   : > { %3365 = vst [vmem:[%s6012_s12 + $0x320] sm:$0xff] %v3884_v57  ;;  %v2234_v50 = vpop.f32.mrb[74].mxu0 }
 0x2b8   : > { %v3853_v58 = vadd.f32 %v6005_v52, %v2234_v50  ;;  %v2789_v11 = vpop.f32.mrb[74].mxu1  ;;  %v2236_v7 = vpop.f32.mrb[75].mxu0 }
 0x2b9   : > { %v3885_v61 = vadd.f32 %v6005_v52, %v2789_v11  ;;  %v2791_v27 = vpop.f32.mrb[75].mxu1 }
 0x2ba   : > { %3270 = vst [vmem:[%s6012_s12 + $0x228] sm:$0xff] %v3853_v58 }
 0x2bb   : > { %3366 = vst [vmem:[%s6012_s12 + $0x328] sm:$0xff] %v3885_v61  ;;  %v2239_v18 = vpop.f32.mrb[76].mxu0 }
 0x2bc   : > { %v3854_v1 = vadd.f32 %v6005_v52, %v2239_v18  ;;  %v2794_v19 = vpop.f32.mrb[76].mxu1  ;;  %v2241_v44 = vpop.f32.mrb[77].mxu0 }
 0x2bd   : > { %v3886_v32 = vadd.f32 %v6005_v52, %v2794_v19  ;;  %v2796_v15 = vpop.f32.mrb[77].mxu1 }
 0x2be   : > { %3271 = vst [vmem:[%s6012_s12 + $0x230] sm:$0xff] %v3854_v1 }
 0x2bf   : > { %3367 = vst [vmem:[%s6012_s12 + $0x330] sm:$0xff] %v3886_v32  ;;  %v2244_v59 = vpop.f32.mrb[78].mxu0 }
 0x2c0   : > { %v3855_v53 = vadd.f32 %v6005_v52, %v2244_v59  ;;  %v2799_v55 = vpop.f32.mrb[78].mxu1  ;;  %v2246_v33 = vpop.f32.mrb[79].mxu0 }
 0x2c1   : > { %v3887_v14 = vadd.f32 %v6005_v52, %v2799_v55  ;;  %v2801_v17 = vpop.f32.mrb[79].mxu1 }
 0x2c2   : > { %3272 = vst [vmem:[%s6012_s12 + $0x238] sm:$0xff] %v3855_v53 }
 0x2c3   : > { %3368 = vst [vmem:[%s6012_s12 + $0x338] sm:$0xff] %v3887_v14  ;;  %v2249_v12 = vpop.f32.mrb[80].mxu0 }
 0x2c4   : > { %v3856_v60 = vadd.f32 %v6005_v52, %v2249_v12  ;;  %v2804_v47 = vpop.f32.mrb[80].mxu1  ;;  %v2251_v4 = vpop.f32.mrb[81].mxu0 }
 0x2c5   : > { %v3888_v48 = vadd.f32 %v6375_v42, %v2804_v47  ;;  %v2806_v20 = vpop.f32.mrb[81].mxu1 }
 0x2c6   : > { %3273 = vst [vmem:[%s6012_s12 + $0x240] sm:$0xff] %v3856_v60 }
 0x2c7   : > { %3369 = vst [vmem:[%s6012_s12 + $0x340] sm:$0xff] %v3888_v48  ;;  %v2254_v13 = vpop.f32.mrb[82].mxu0 }
 0x2c8   : > { %v3857_v49 = vadd.f32 %v6375_v42, %v2254_v13  ;;  %v2809_v6 = vpop.f32.mrb[82].mxu1  ;;  %v2256_v5 = vpop.f32.mrb[83].mxu0 }
 0x2c9   : > { %v3889_v52 = vadd.f32 %v6375_v42, %v2809_v6  ;;  %v2811_v39 = vpop.f32.mrb[83].mxu1 }
 0x2ca   : > { %3274 = vst [vmem:[%s6012_s12 + $0x248] sm:$0xff] %v3857_v49 }
 0x2cb   : > { %3370 = vst [vmem:[%s6012_s12 + $0x348] sm:$0xff] %v3889_v52  ;;  %v2259_v25 = vpop.f32.mrb[84].mxu0 }
 0x2cc   : > { %v3858_v16 = vadd.f32 %v6375_v42, %v2259_v25  ;;  %v2814_v26 = vpop.f32.mrb[84].mxu1  ;;  %v2261_v0 = vpop.f32.mrb[85].mxu0 }
 0x2cd   : > { %v3890_v45 = vadd.f32 %v6375_v42, %v2814_v26  ;;  %v2816_v56 = vpop.f32.mrb[85].mxu1 }
 0x2ce   : > { %3275 = vst [vmem:[%s6012_s12 + $0x250] sm:$0xff] %v3858_v16 }
 0x2cf   : > { %3371 = vst [vmem:[%s6012_s12 + $0x350] sm:$0xff] %v3890_v45  ;;  %v2264_v8 = vpop.f32.mrb[86].mxu0 }
 0x2d0   : > { %v3859_v31 = vadd.f32 %v6375_v42, %v2264_v8  ;;  %v2819_v23 = vpop.f32.mrb[86].mxu1  ;;  %v2266_v36 = vpop.f32.mrb[87].mxu0 }
 0x2d1   : > { %v3891_v10 = vadd.f32 %v6375_v42, %v2819_v23  ;;  %v2821_v9 = vpop.f32.mrb[87].mxu1 }
 0x2d2   : > { %3276 = vst [vmem:[%s6012_s12 + $0x258] sm:$0xff] %v3859_v31 }
 0x2d3   : > { %3372 = vst [vmem:[%s6012_s12 + $0x358] sm:$0xff] %v3891_v10  ;;  %v2269_v22 = vpop.f32.mrb[88].mxu0 }
 0x2d4   : > { %v3860_v41 = vadd.f32 %v6375_v42, %v2269_v22  ;;  %v2824_v21 = vpop.f32.mrb[88].mxu1  ;;  %v2271_v46 = vpop.f32.mrb[89].mxu0 }
 0x2d5   : > { %v3892_v54 = vadd.f32 %v6375_v42, %v2824_v21  ;;  %v2826_v40 = vpop.f32.mrb[89].mxu1 }
 0x2d6   : > { %3277 = vst [vmem:[%s6012_s12 + $0x260] sm:$0xff] %v3860_v41 }
 0x2d7   : > { %3373 = vst [vmem:[%s6012_s12 + $0x360] sm:$0xff] %v3892_v54  ;;  %v2274_v63 = vpop.f32.mrb[90].mxu0 }
 0x2d8   : > { %v3861_v34 = vadd.f32 %v6375_v42, %v2274_v63  ;;  %v2829_v38 = vpop.f32.mrb[90].mxu1  ;;  %v2276_v62 = vpop.f32.mrb[91].mxu0 }
 0x2d9   : > { %v3893_v29 = vadd.f32 %v6375_v42, %v2829_v38  ;;  %v2831_v35 = vpop.f32.mrb[91].mxu1 }
 0x2da   : > { %3278 = vst [vmem:[%s6012_s12 + $0x268] sm:$0xff] %v3861_v34 }
 0x2db   : > { %3374 = vst [vmem:[%s6012_s12 + $0x368] sm:$0xff] %v3893_v29  ;;  %v2279_v37 = vpop.f32.mrb[92].mxu0 }
 0x2dc   : > { %v3862_v24 = vadd.f32 %v6375_v42, %v2279_v37  ;;  %v2834_v51 = vpop.f32.mrb[92].mxu1  ;;  %v2281_v2 = vpop.f32.mrb[93].mxu0 }
 0x2dd   : > { %v3894_v28 = vadd.f32 %v6375_v42, %v2834_v51  ;;  %v2836_v3 = vpop.f32.mrb[93].mxu1 }
 0x2de   : > { %3279 = vst [vmem:[%s6012_s12 + $0x270] sm:$0xff] %v3862_v24 }
 0x2df   : > { %3375 = vst [vmem:[%s6012_s12 + $0x370] sm:$0xff] %v3894_v28  ;;  %v2284_v30 = vpop.f32.mrb[94].mxu0 }
 0x2e0   : > { %v3863_v57 = vadd.f32 %v6375_v42, %v2284_v30  ;;  %v2839_v43 = vpop.f32.mrb[94].mxu1  ;;  %v2286_v50 = vpop.f32.mrb[95].mxu0 }
 0x2e1   : > { %v3895_v58 = vadd.f32 %v6375_v42, %v2839_v43  ;;  %v2841_v11 = vpop.f32.mrb[95].mxu1 }
 0x2e2   : > { %3280 = vst [vmem:[%s6012_s12 + $0x278] sm:$0xff] %v3863_v57 }
 0x2e3   : > { %3376 = vst [vmem:[%s6012_s12 + $0x378] sm:$0xff] %v3895_v58  ;;  %v2289_v7 = vpop.f32.mrb[96].mxu0 }
 0x2e4   : > { %v3864_v61 = vadd.f32 %v6375_v42, %v2289_v7  ;;  %v2844_v27 = vpop.f32.mrb[96].mxu1  ;;  %v2291_v18 = vpop.f32.mrb[97].mxu0 }
 0x2e5   : > { %v3896_v1 = vadd.f32 %v6375_v42, %v2844_v27  ;;  %v2846_v19 = vpop.f32.mrb[97].mxu1 }
 0x2e6   : > { %3281 = vst [vmem:[%s6012_s12 + $0x280] sm:$0xff] %v3864_v61 }
 0x2e7   : > { %3377 = vst [vmem:[%s6012_s12 + $0x380] sm:$0xff] %v3896_v1  ;;  %v2294_v44 = vpop.f32.mrb[98].mxu0 }
 0x2e8   : > { %v3865_v32 = vadd.f32 %v6375_v42, %v2294_v44  ;;  %v2849_v15 = vpop.f32.mrb[98].mxu1  ;;  %v2296_v59 = vpop.f32.mrb[99].mxu0 }
 0x2e9   : > { %v3897_v53 = vadd.f32 %v6375_v42, %v2849_v15  ;;  %v2851_v55 = vpop.f32.mrb[99].mxu1 }
 0x2ea   : > { %3282 = vst [vmem:[%s6012_s12 + $0x288] sm:$0xff] %v3865_v32 }
 0x2eb   : > { %3378 = vst [vmem:[%s6012_s12 + $0x388] sm:$0xff] %v3897_v53  ;;  %v2299_v33 = vpop.f32.mrb[100].mxu0 }
 0x2ec   : > { %v3866_v14 = vadd.f32 %v6375_v42, %v2299_v33  ;;  %v2854_v17 = vpop.f32.mrb[100].mxu1  ;;  %v2301_v12 = vpop.f32.mrb[101].mxu0 }
 0x2ed   : > { %v3898_v60 = vadd.f32 %v6375_v42, %v2854_v17  ;;  %v2856_v47 = vpop.f32.mrb[101].mxu1 }
 0x2ee   : > { %3283 = vst [vmem:[%s6012_s12 + $0x290] sm:$0xff] %v3866_v14 }
 0x2ef   : > { %3379 = vst [vmem:[%s6012_s12 + $0x390] sm:$0xff] %v3898_v60  ;;  %v2304_v4 = vpop.f32.mrb[102].mxu0 }
 0x2f0   : > { %v3867_v48 = vadd.f32 %v6375_v42, %v2304_v4  ;;  %v2859_v20 = vpop.f32.mrb[102].mxu1  ;;  %v2306_v13 = vpop.f32.mrb[103].mxu0 }
 0x2f1   : > { %v3899_v49 = vadd.f32 %v6375_v42, %v2859_v20  ;;  %v2861_v6 = vpop.f32.mrb[103].mxu1 }
 0x2f2   : > { %3284 = vst [vmem:[%s6012_s12 + $0x298] sm:$0xff] %v3867_v48 }
 0x2f3   : > { %3380 = vst [vmem:[%s6012_s12 + $0x398] sm:$0xff] %v3899_v49  ;;  %v2309_v5 = vpop.f32.mrb[104].mxu0 }
 0x2f4   : > { %v3868_v52 = vadd.f32 %v6375_v42, %v2309_v5  ;;  %v2864_v39 = vpop.f32.mrb[104].mxu1  ;;  %v2311_v25 = vpop.f32.mrb[105].mxu0 }
 0x2f5   : > { %v3900_v16 = vadd.f32 %v6375_v42, %v2864_v39  ;;  %v2866_v26 = vpop.f32.mrb[105].mxu1 }
 0x2f6   : > { %3285 = vst [vmem:[%s6012_s12 + $0x2a0] sm:$0xff] %v3868_v52 }
 0x2f7   : > { %3381 = vst [vmem:[%s6012_s12 + $0x3a0] sm:$0xff] %v3900_v16  ;;  %v2314_v0 = vpop.f32.mrb[106].mxu0 }
 0x2f8   : > { %v3869_v45 = vadd.f32 %v6375_v42, %v2314_v0  ;;  %v2869_v56 = vpop.f32.mrb[106].mxu1  ;;  %v2316_v8 = vpop.f32.mrb[107].mxu0 }
 0x2f9   : > { %v3901_v31 = vadd.f32 %v6375_v42, %v2869_v56  ;;  %v2871_v23 = vpop.f32.mrb[107].mxu1 }
 0x2fa   : > { %3286 = vst [vmem:[%s6012_s12 + $0x2a8] sm:$0xff] %v3869_v45 }
 0x2fb   : > { %3382 = vst [vmem:[%s6012_s12 + $0x3a8] sm:$0xff] %v3901_v31  ;;  %v2319_v36 = vpop.f32.mrb[108].mxu0 }
 0x2fc   : > { %v3870_v10 = vadd.f32 %v6375_v42, %v2319_v36  ;;  %v2874_v9 = vpop.f32.mrb[108].mxu1  ;;  %v2321_v22 = vpop.f32.mrb[109].mxu0 }
 0x2fd   : > { %v3902_v41 = vadd.f32 %v6375_v42, %v2874_v9  ;;  %v2876_v21 = vpop.f32.mrb[109].mxu1 }
 0x2fe   : > { %3287 = vst [vmem:[%s6012_s12 + $0x2b0] sm:$0xff] %v3870_v10 }
 0x2ff   : > { %3383 = vst [vmem:[%s6012_s12 + $0x3b0] sm:$0xff] %v3902_v41  ;;  %v2324_v46 = vpop.f32.mrb[110].mxu0 }
 0x300   : > { %v3871_v54 = vadd.f32 %v6375_v42, %v2324_v46  ;;  %v2879_v40 = vpop.f32.mrb[110].mxu1  ;;  %v2326_v63 = vpop.f32.mrb[111].mxu0 }
 0x301   : > { %v3903_v34 = vadd.f32 %v6375_v42, %v2879_v40  ;;  %v2881_v38 = vpop.f32.mrb[111].mxu1 }
 0x302   : > { %3288 = vst [vmem:[%s6012_s12 + $0x2b8] sm:$0xff] %v3871_v54 }
 0x303   : > { %3384 = vst [vmem:[%s6012_s12 + $0x3b8] sm:$0xff] %v3903_v34  ;;  %v2329_v62 = vpop.f32.mrb[112].mxu0 }
 0x304   : > { %v3872_v29 = vadd.f32 %v6375_v42, %v2329_v62  ;;  %v2884_v35 = vpop.f32.mrb[112].mxu1  ;;  %v2331_v37 = vpop.f32.mrb[113].mxu0 }
 0x305   : > { %v3904_v24 = vadd.f32 %v6375_v42, %v2884_v35  ;;  %v2886_v51 = vpop.f32.mrb[113].mxu1 }
 0x306   : > { %3289 = vst [vmem:[%s6012_s12 + $0x2c0] sm:$0xff] %v3872_v29 }
 0x307   : > { %3385 = vst [vmem:[%s6012_s12 + $0x3c0] sm:$0xff] %v3904_v24  ;;  %v2334_v2 = vpop.f32.mrb[114].mxu0 }
 0x308   : > { %v3873_v28 = vadd.f32 %v6375_v42, %v2334_v2  ;;  %v2889_v3 = vpop.f32.mrb[114].mxu1  ;;  %v2336_v30 = vpop.f32.mrb[115].mxu0 }
 0x309   : > { %v3905_v57 = vadd.f32 %v6375_v42, %v2889_v3  ;;  %v2891_v43 = vpop.f32.mrb[115].mxu1 }
 0x30a   : > { %3290 = vst [vmem:[%s6012_s12 + $0x2c8] sm:$0xff] %v3873_v28 }
 0x30b   : > { %3386 = vst [vmem:[%s6012_s12 + $0x3c8] sm:$0xff] %v3905_v57  ;;  %v2339_v50 = vpop.f32.mrb[116].mxu0 }
 0x30c   : > { %v3874_v58 = vadd.f32 %v6375_v42, %v2339_v50  ;;  %v2894_v11 = vpop.f32.mrb[116].mxu1  ;;  %v2341_v7 = vpop.f32.mrb[117].mxu0 }
 0x30d   : > { %v3906_v61 = vadd.f32 %v6375_v42, %v2894_v11  ;;  %v2896_v27 = vpop.f32.mrb[117].mxu1 }
 0x30e   : > { %3291 = vst [vmem:[%s6012_s12 + $0x2d0] sm:$0xff] %v3874_v58 }
 0x30f   : > { %3387 = vst [vmem:[%s6012_s12 + $0x3d0] sm:$0xff] %v3906_v61  ;;  %v2344_v18 = vpop.f32.mrb[118].mxu0 }
 0x310   : > { %v3875_v1 = vadd.f32 %v6375_v42, %v2344_v18  ;;  %v2899_v19 = vpop.f32.mrb[118].mxu1  ;;  %v2346_v44 = vpop.f32.mrb[119].mxu0 }
 0x311   : > { %v3907_v32 = vadd.f32 %v6375_v42, %v2899_v19  ;;  %v2901_v15 = vpop.f32.mrb[119].mxu1 }
 0x312   : > { %3292 = vst [vmem:[%s6012_s12 + $0x2d8] sm:$0xff] %v3875_v1 }
 0x313   : > { %3388 = vst [vmem:[%s6012_s12 + $0x3d8] sm:$0xff] %v3907_v32  ;;  %v2349_v59 = vpop.f32.mrb[120].mxu0 }
 0x314   : > { %v3876_v53 = vadd.f32 %v6375_v42, %v2349_v59  ;;  %v2904_v55 = vpop.f32.mrb[120].mxu1  ;;  %v2351_v33 = vpop.f32.mrb[121].mxu0 }
 0x315   : > { %v3908_v14 = vadd.f32 %v6375_v42, %v2904_v55  ;;  %v2906_v17 = vpop.f32.mrb[121].mxu1 }
 0x316   : > { %3293 = vst [vmem:[%s6012_s12 + $0x2e0] sm:$0xff] %v3876_v53 }
 0x317   : > { %3389 = vst [vmem:[%s6012_s12 + $0x3e0] sm:$0xff] %v3908_v14  ;;  %v2354_v12 = vpop.f32.mrb[122].mxu0 }
 0x318   : > { %v3877_v60 = vadd.f32 %v6375_v42, %v2354_v12  ;;  %v2909_v47 = vpop.f32.mrb[122].mxu1  ;;  %v2356_v4 = vpop.f32.mrb[123].mxu0 }
 0x319   : > { %v3909_v48 = vadd.f32 %v6375_v42, %v2909_v47  ;;  %v2911_v20 = vpop.f32.mrb[123].mxu1 }
 0x31a   : > { %3294 = vst [vmem:[%s6012_s12 + $0x2e8] sm:$0xff] %v3877_v60 }
 0x31b   : > { %3390 = vst [vmem:[%s6012_s12 + $0x3e8] sm:$0xff] %v3909_v48  ;;  %v2359_v13 = vpop.f32.mrb[124].mxu0 }
 0x31c   : > { %v3878_v49 = vadd.f32 %v6375_v42, %v2359_v13  ;;  %v2914_v6 = vpop.f32.mrb[124].mxu1  ;;  %v2361_v5 = vpop.f32.mrb[125].mxu0 }
 0x31d   : > { %v3910_v52 = vadd.f32 %v6375_v42, %v2914_v6  ;;  %v2916_v39 = vpop.f32.mrb[125].mxu1 }
 0x31e   : > { %3295 = vst [vmem:[%s6012_s12 + $0x2f0] sm:$0xff] %v3878_v49 }
 0x31f   : > { %3391 = vst [vmem:[%s6012_s12 + $0x3f0] sm:$0xff] %v3910_v52  ;;  %v2364_v25 = vpop.f32.mrb[126].mxu0 }
 0x320   : > { %v3879_v16 = vadd.f32 %v6375_v42, %v2364_v25  ;;  %v2919_v26 = vpop.f32.mrb[126].mxu1  ;;  %v2366_v0 = vpop.f32.mrb[127].mxu0 }
 0x321   : > { %v3911_v45 = vadd.f32 %v6375_v42, %v2919_v26  ;;  %v2921_v56 = vpop.f32.mrb[127].mxu1 }
 0x322   : > { %3296 = vst [vmem:[%s6012_s12 + $0x2f8] sm:$0xff] %v3879_v16 }
 0x323   : > { %3392 = vst [vmem:[%s6012_s12 + $0x3f8] sm:$0xff] %v3911_v45 }
 0x324 PF: > { %s15_s20 = sadd.s32 1, %s4251_s20   ;;  %s6740_s18 = smov %s4247_s19 }
 0x325   : > { %p12_p5 = scmp.ge.s32.totalorder %s15_s20, 4   ;;  %s6741_s19 = smov %s6743_s21 }
 0x327   :  { %14 = sbr.rel (!%p12_p5) target bundleno = 2 (0x2), region = 82 }

</bundles_post_ra>
